<compile_context>
chip_gen: v7x
topology: tpu7x:2x2x1
jax: 0.10.0
libtpu: 0.0.40
codegen_flags: <defaults>
</compile_context>

<pallas_src>
import jax
import jax.numpy as jnp
from jax.experimental import pallas as pl
from jax.experimental.pallas import tpu as pltpu


def _round_up(x, m):
    return (x + m - 1) // m * m


def _pick_time_chunk(T, max_chunk=16):
    for c in range(min(T, max_chunk), 0, -1):
        if T % c == 0:
            return c
    return 1


# ---------------------------------------------------------------------------
# Tiled matmul + bias kernels (used for input projections and the FC head).
# Grid over rows only (K / N are small and kept whole); rows marked parallel.
# ---------------------------------------------------------------------------
def _matmul_bias_kernel(x_ref, w_ref, b_ref, o_ref):
    acc = jnp.dot(x_ref[...].astype(jnp.bfloat16), w_ref[...],
                  preferred_element_type=jnp.float32)
    o_ref[...] = (acc + b_ref[...]).astype(o_ref.dtype)


def matmul_bias(x, w_t, b_row, *, tm=256):
    """x: (M, K) f32, w_t: (K, N) bf16, b_row: (1, N) f32 -> (M, N) f32."""
    M, K = x.shape
    N = w_t.shape[1]
    tm = min(tm, _round_up(M, 8))
    Mp = _round_up(M, tm)
    if Mp != M:
        x = jnp.pad(x, ((0, Mp - M), (0, 0)))
    out = pl.pallas_call(
        _matmul_bias_kernel,
        out_shape=jax.ShapeDtypeStruct((Mp, N), jnp.float32),
        grid_spec=pltpu.PrefetchScalarGridSpec(
            num_scalar_prefetch=0,
            grid=(Mp // tm,),
            in_specs=[
                pl.BlockSpec((tm, K), lambda i: (i, 0)),
                pl.BlockSpec((K, N), lambda i: (0, 0)),
                pl.BlockSpec((1, N), lambda i: (0, 0)),
            ],
            out_specs=pl.BlockSpec((tm, N), lambda i: (i, 0)),
        ),
        compiler_params=pltpu.CompilerParams(
            dimension_semantics=("parallel",)),
    )(x, w_t, b_row)
    return out[:M] if Mp != M else out


def _dual_matmul_bias_kernel(a_ref, b_ref, wa_ref, wb_ref, bias_ref, o_ref):
    acc = jnp.dot(a_ref[...].astype(jnp.bfloat16), wa_ref[...],
                  preferred_element_type=jnp.float32)
    acc += jnp.dot(b_ref[...].astype(jnp.bfloat16), wb_ref[...],
                   preferred_element_type=jnp.float32)
    o_ref[...] = (acc + bias_ref[...]).astype(o_ref.dtype)


def dual_matmul_bias(a, b, wa_t, wb_t, bias_row, *, tm=256):
    """a @ wa_t + b @ wb_t + bias.  Avoids concatenating direction outputs."""
    M, Ka = a.shape
    Kb = b.shape[1]
    N = wa_t.shape[1]
    tm = min(tm, _round_up(M, 8))
    Mp = _round_up(M, tm)
    if Mp != M:
        a = jnp.pad(a, ((0, Mp - M), (0, 0)))
        b = jnp.pad(b, ((0, Mp - M), (0, 0)))
    out = pl.pallas_call(
        _dual_matmul_bias_kernel,
        out_shape=jax.ShapeDtypeStruct((Mp, N), jnp.float32),
        grid_spec=pltpu.PrefetchScalarGridSpec(
            num_scalar_prefetch=0,
            grid=(Mp // tm,),
            in_specs=[
                pl.BlockSpec((tm, Ka), lambda i: (i, 0)),
                pl.BlockSpec((tm, Kb), lambda i: (i, 0)),
                pl.BlockSpec((Ka, N), lambda i: (0, 0)),
                pl.BlockSpec((Kb, N), lambda i: (0, 0)),
                pl.BlockSpec((1, N), lambda i: (0, 0)),
            ],
            out_specs=pl.BlockSpec((tm, N), lambda i: (i, 0)),
        ),
        compiler_params=pltpu.CompilerParams(
            dimension_semantics=("parallel",)),
    )(a, b, wa_t, wb_t, bias_row)
    return out[:M] if Mp != M else out


# ---------------------------------------------------------------------------
# Fused bidirectional LSTM recurrence.  Grid iterates over time-chunks; the
# h/c state of both directions lives in VMEM scratch and persists across grid
# steps.  The backward direction reads its (pre-projected) input and writes
# its output with a time-reversed index_map.  Gate order matches PyTorch:
# i, f, g, o — each gate occupies a 128-lane-aligned slab of width Hp.
# ---------------------------------------------------------------------------
def _bilstm_recurrence_kernel(xf_ref, xb_ref, whhf_ref, whhb_ref,
                              outf_ref, outb_ref, hf, cf, hb, cb):
    @pl.when(pl.program_id(0) == 0)
    def _():
        hf[...] = jnp.zeros_like(hf)
        cf[...] = jnp.zeros_like(cf)
        hb[...] = jnp.zeros_like(hb)
        cb[...] = jnp.zeros_like(cb)

    Hp = hf.shape[-1]
    tc = xf_ref.shape[0]
    w_f = whhf_ref[...]   # (Hp, 4Hp) bf16, resident for the whole chunk
    w_b = whhb_ref[...]

    def cell(x_pre, h, c, w):
        # x_pre already contains x @ W_ih^T + b_ih + b_hh (f32).
        gates = x_pre + jnp.dot(h.astype(jnp.bfloat16), w,
                                preferred_element_type=jnp.float32)
        i = jax.nn.sigmoid(gates[:, 0 * Hp:1 * Hp])
        f = jax.nn.sigmoid(gates[:, 1 * Hp:2 * Hp])
        g = jnp.tanh(gates[:, 2 * Hp:3 * Hp])
        o = jax.nn.sigmoid(gates[:, 3 * Hp:4 * Hp])
        c_new = f * c + i * g
        h_new = o * jnp.tanh(c_new)
        return h_new, c_new

    h_f, c_f = hf[...], cf[...]
    h_b, c_b = hb[...], cb[...]
    for s in range(tc):  # static, fully unrolled chunk loop
        h_f, c_f = cell(xf_ref[s], h_f, c_f, w_f)
        h_b, c_b = cell(xb_ref[tc - 1 - s], h_b, c_b, w_b)
        outf_ref[s] = h_f.astype(outf_ref.dtype)
        outb_ref[tc - 1 - s] = h_b.astype(outb_ref.dtype)

    hf[...], cf[...] = h_f, c_f
    hb[...], cb[...] = h_b, c_b


def bilstm_recurrence(xproj_f, xproj_b, whh_f_t, whh_b_t):
    """xproj_*: (T, Bp, 4Hp) f32; whh_*_t: (Hp, 4Hp) bf16.
    Returns (out_f, out_b), each (T, Bp, Hp) f32."""
    T, Bp, G = xproj_f.shape
    Hp = G // 4
    tc = _pick_time_chunk(T)
    n_chunks = T // tc
    return pl.pallas_call(
        _bilstm_recurrence_kernel,
        out_shape=(jax.ShapeDtypeStruct((T, Bp, Hp), jnp.float32),
                   jax.ShapeDtypeStruct((T, Bp, Hp), jnp.float32)),
        grid_spec=pltpu.PrefetchScalarGridSpec(
            num_scalar_prefetch=0,
            grid=(n_chunks,),
            in_specs=[
                pl.BlockSpec((tc, Bp, G), lambda i: (i, 0, 0)),
                pl.BlockSpec((tc, Bp, G), lambda i: (n_chunks - 1 - i, 0, 0)),
                pl.BlockSpec((Hp, G), lambda i: (0, 0)),
                pl.BlockSpec((Hp, G), lambda i: (0, 0)),
            ],
            out_specs=[
                pl.BlockSpec((tc, Bp, Hp), lambda i: (i, 0, 0)),
                pl.BlockSpec((tc, Bp, Hp), lambda i: (n_chunks - 1 - i, 0, 0)),
            ],
            scratch_shapes=[pltpu.VMEM((Bp, Hp), jnp.float32)] * 4,
        ),
        compiler_params=pltpu.CompilerParams(
            dimension_semantics=("arbitrary",)),  # time is sequential
    )(xproj_f, xproj_b, whh_f_t, whh_b_t)


# ---------------------------------------------------------------------------
# Parameter init (PyTorch nn.LSTM shapes) and kernel-layout preparation.
# ---------------------------------------------------------------------------
def init_params(key, input_size, hidden_size, num_layers, num_classes):
    """Deterministic synthetic weights with PyTorch nn.LSTM shapes."""
    H = hidden_size
    params = {"lstm": []}
    for layer in range(num_layers):
        d_in = input_size if layer == 0 else 2 * H
        dirs = []
        for _direction in range(2):
            key, k1, k2, k3, k4 = jax.random.split(key, 5)
            w_ih = jax.random.normal(k1, (4 * H, d_in), jnp.float32) * 0.1
            w_hh = jax.random.normal(k2, (4 * H, H), jnp.float32) * 0.1
            b_ih = jax.random.normal(k3, (4 * H,), jnp.float32) * 0.1
            b_hh = jax.random.normal(k4, (4 * H,), jnp.float32) * 0.1
            dirs.append((w_ih, w_hh, b_ih + b_hh))
        params["lstm"].append(tuple(dirs))
    key, k1, k2 = jax.random.split(key, 3)
    params["fc_w"] = jax.random.normal(k1, (num_classes, 2 * H), jnp.float32) * 0.1
    params["fc_b"] = jax.random.normal(k2, (num_classes,), jnp.float32) * 0.1
    return params


def _gate_pad_t(w, H, Hp, dtype=jnp.bfloat16):
    """w: (4H, K) gate-stacked (i,f,g,o) -> (K, 4*Hp) transposed, each gate in
    a lane-aligned slab of width Hp; padded lanes are zero."""
    K = w.shape[1]
    out = jnp.zeros((K, 4 * Hp), dtype)
    for k in range(4):
        out = out.at[:, k * Hp:k * Hp + H].set(
            w[k * H:(k + 1) * H, :].T.astype(dtype))
    return out


def _gate_pad_bias(b, H, Hp):
    out = jnp.zeros((1, 4 * Hp), jnp.float32)
    for k in range(4):
        out = out.at[0, k * Hp:k * Hp + H].set(b[k * H:(k + 1) * H])
    return out


def _pad_rows(w_t, Kp):
    K = w_t.shape[0]
    if K == Kp:
        return w_t
    return jnp.pad(w_t, ((0, Kp - K), (0, 0)))


def prepare_params(params, hidden_size, num_classes):
    """Pad / transpose / cast raw PyTorch-shaped weights into kernel layout."""
    H = hidden_size
    Hp = _round_up(H, 128)
    C = num_classes
    Cp = _round_up(C, 128)
    prepped = {"layers": [], "Hp": Hp, "C": C, "Cp": Cp, "H": H}
    for layer_idx, dirs in enumerate(params["lstm"]):
        layer = []
        for (w_ih, w_hh, b) in dirs:
            if layer_idx == 0:
                wih_pair = (_gate_pad_t(w_ih, H, Hp),)                 # (D, 4Hp)
            else:
                wih_pair = (
                    _pad_rows(_gate_pad_t(w_ih[:, :H], H, Hp), Hp),    # fwd half
                    _pad_rows(_gate_pad_t(w_ih[:, H:], H, Hp), Hp),    # bwd half
                )
            whh_t = _pad_rows(_gate_pad_t(w_hh, H, Hp), Hp)            # (Hp, 4Hp)
            bias = _gate_pad_bias(b, H, Hp)                            # (1, 4Hp)
            layer.append((wih_pair, whh_t, bias))
        prepped["layers"].append(tuple(layer))
    fc_w, fc_b = params["fc_w"], params["fc_b"]
    wfc_f = jnp.zeros((Hp, Cp), jnp.bfloat16).at[:H, :C].set(
        fc_w[:, :H].T.astype(jnp.bfloat16))
    wfc_b = jnp.zeros((Hp, Cp), jnp.bfloat16).at[:H, :C].set(
        fc_w[:, H:].T.astype(jnp.bfloat16))
    bfc = jnp.zeros((1, Cp), jnp.float32).at[0, :C].set(fc_b)
    prepped["fc"] = (wfc_f, wfc_b, bfc)
    return prepped


# ---------------------------------------------------------------------------
# Full BiLSTM forward (PyTorch nn.LSTM bidirectional, batch_first) + fc.
# ---------------------------------------------------------------------------
def bilstm_forward(x, prepped):
    """x: (B, T, input_size) -> (B, T, num_classes)."""
    B, T, D = x.shape
    Hp = prepped["Hp"]
    Bp = _round_up(max(B, 8), 8)          # sublane-dense batch

    xp = jnp.pad(x, ((0, Bp - B), (0, 0), (0, 0)))          # (Bp, T, D)
    xt = jnp.transpose(xp, (1, 0, 2)).reshape(T * Bp, D)    # time-major, flat

    out_f = out_b = None
    for layer_idx, layer in enumerate(prepped["layers"]):
        (wih_f, whh_f, bias_f), (wih_b, whh_b, bias_b) = layer
        if layer_idx == 0:
            # Input projection hoisted out of the recurrence (bias folded in).
            proj_f = matmul_bias(xt, wih_f[0], bias_f)
            proj_b = matmul_bias(xt, wih_b[0], bias_b)
        else:
            # Consume previous layer's two direction outputs without concat.
            proj_f = dual_matmul_bias(out_f, out_b, wih_f[0], wih_f[1], bias_f)
            proj_b = dual_matmul_bias(out_f, out_b, wih_b[0], wih_b[1], bias_b)
        xproj_f = proj_f.reshape(T, Bp, 4 * Hp)
        xproj_b = proj_b.reshape(T, Bp, 4 * Hp)
        of, ob = bilstm_recurrence(xproj_f, xproj_b, whh_f, whh_b)
        out_f = of.reshape(T * Bp, Hp)
        out_b = ob.reshape(T * Bp, Hp)

    wfc_f, wfc_b, bfc = prepped["fc"]
    y = dual_matmul_bias(out_f, out_b, wfc_f, wfc_b, bfc)    # (T*Bp, Cp)
    y = y.reshape(T, Bp, prepped["Cp"])[:, :B, :prepped["C"]]
    return jnp.transpose(y, (1, 0, 2))                       # (B, T, C)


if __name__ == "__main__":
    B, T = 2, 8
    input_size, hidden_size, num_layers, num_classes = 16, 32, 2, 4

    key = jax.random.PRNGKey(0)
    key, kx = jax.random.split(key)
    x = jax.random.normal(kx, (B, T, input_size), jnp.float32)

    raw_params = init_params(key, input_size, hidden_size, num_layers,
                             num_classes)
    params = prepare_params(raw_params, hidden_size, num_classes)

    out = jax.jit(lambda xx: bilstm_forward(xx, params))(x)
    out = jax.block_until_ready(out)

    assert out.shape == (B, T, num_classes), out.shape
    assert out.dtype == jnp.float32
    print("KERNEL_OK")
</pallas_src>

<mosaic_0001>
module attributes {stable_mosaic.version = 11 : i64} {
  func.func @_matmul_bias_kernel(%arg0: i32, %arg1: memref<64x16xf32, #tpu.memory_space<vmem>>, %arg2: memref<16x512xbf16, #tpu.memory_space<vmem>>, %arg3: memref<1x512xf32, #tpu.memory_space<vmem>>, %arg4: memref<64x512xf32, #tpu.memory_space<vmem>>) attributes {dimension_semantics = [#tpu.dimension_semantics<parallel>], iteration_bounds = array<i64: 1>, scalar_prefetch = 0 : i64, scratch_operands = 0 : i64, tpu.core_type = #tpu.core_type<tc>, window_params = [{transform_indices = @transform_0, window_bounds = array<i64: 64, 16>}, {pipeline_mode = #tpu.pipeline_mode<synchronous>, transform_indices = @transform_1, window_bounds = array<i64: 16, 512>}, {pipeline_mode = #tpu.pipeline_mode<synchronous>, transform_indices = @transform_2, window_bounds = array<i64: 1, 512>}, {transform_indices = @transform_3, window_bounds = array<i64: 64, 512>}]} {
    %c0 = arith.constant 0 : index
    %c0_0 = arith.constant 0 : index
    %0 = vector.load %arg1[%c0, %c0_0] : memref<64x16xf32, #tpu.memory_space<vmem>>, vector<64x16xf32>
    %1 = arith.truncf %0 : vector<64x16xf32> to vector<64x16xbf16>
    %c0_1 = arith.constant 0 : index
    %c0_2 = arith.constant 0 : index
    %2 = vector.load %arg2[%c0_1, %c0_2] : memref<16x512xbf16, #tpu.memory_space<vmem>>, vector<16x512xbf16>
    %cst = arith.constant dense<0.000000e+00> : vector<64x512xf32>
    %3 = tpu.matmul %1, %2, %cst {dimension_numbers = #tpu.dot_dimension_numbers<[1], [0], [0], [1], [0, 0, 1, 1], [], []>} : vector<64x16xbf16>, vector<16x512xbf16>, vector<64x512xf32> -> vector<64x512xf32>
    %c0_3 = arith.constant 0 : index
    %c0_4 = arith.constant 0 : index
    %4 = vector.load %arg3[%c0_3, %c0_4] : memref<1x512xf32, #tpu.memory_space<vmem>>, vector<1x512xf32>
    %5 = vector.broadcast %4 : vector<1x512xf32> to vector<64x512xf32>
    %6 = arith.addf %3, %5 : vector<64x512xf32>
    %c0_5 = arith.constant 0 : index
    %c0_6 = arith.constant 0 : index
    %7 = vector.load %arg4[%c0_5, %c0_6] : memref<64x512xf32, #tpu.memory_space<vmem>>, vector<64x512xf32>
    tpu.vector_store %arg4[%c0_5, %c0_6], %6 {strides = array<i32>} : memref<64x512xf32, #tpu.memory_space<vmem>>, vector<64x512xf32>,
    return
  }
  func.func @transform_0(%arg0: i32) -> (i32, i32) {
    %c0_i32 = arith.constant 0 : i32
    %c0_i32_0 = arith.constant 0 : i32
    return %arg0, %c0_i32 : i32, i32
  }
  func.func @transform_1(%arg0: i32) -> (i32, i32) {
    %c0_i32 = arith.constant 0 : i32
    %c0_i32_0 = arith.constant 0 : i32
    %c0_i32_1 = arith.constant 0 : i32
    return %c0_i32, %c0_i32_0 : i32, i32
  }
  func.func @transform_2(%arg0: i32) -> (i32, i32) {
    %c0_i32 = arith.constant 0 : i32
    %c0_i32_0 = arith.constant 0 : i32
    %c0_i32_1 = arith.constant 0 : i32
    return %c0_i32, %c0_i32_0 : i32, i32
  }
  func.func @transform_3(%arg0: i32) -> (i32, i32) {
    %c0_i32 = arith.constant 0 : i32
    %c0_i32_0 = arith.constant 0 : i32
    return %arg0, %c0_i32 : i32, i32
  }
}

module attributes {stable_mosaic.version = 11 : i64} {
  func.func @_dual_matmul_bias_kernel(%arg0: i32, %arg1: memref<64x128xf32, #tpu.memory_space<vmem>>, %arg2: memref<64x128xf32, #tpu.memory_space<vmem>>, %arg3: memref<128x512xbf16, #tpu.memory_space<vmem>>, %arg4: memref<128x512xbf16, #tpu.memory_space<vmem>>, %arg5: memref<1x512xf32, #tpu.memory_space<vmem>>, %arg6: memref<64x512xf32, #tpu.memory_space<vmem>>) attributes {dimension_semantics = [#tpu.dimension_semantics<parallel>], iteration_bounds = array<i64: 1>, scalar_prefetch = 0 : i64, scratch_operands = 0 : i64, tpu.core_type = #tpu.core_type<tc>, window_params = [{transform_indices = @transform_0, window_bounds = array<i64: 64, 128>}, {transform_indices = @transform_1, window_bounds = array<i64: 64, 128>}, {pipeline_mode = #tpu.pipeline_mode<synchronous>, transform_indices = @transform_2, window_bounds = array<i64: 128, 512>}, {pipeline_mode = #tpu.pipeline_mode<synchronous>, transform_indices = @transform_3, window_bounds = array<i64: 128, 512>}, {pipeline_mode = #tpu.pipeline_mode<synchronous>, transform_indices = @transform_4, window_bounds = array<i64: 1, 512>}, {transform_indices = @transform_5, window_bounds = array<i64: 64, 512>}]} {
    %c0 = arith.constant 0 : index
    %c0_0 = arith.constant 0 : index
    %0 = vector.load %arg1[%c0, %c0_0] : memref<64x128xf32, #tpu.memory_space<vmem>>, vector<64x128xf32>
    %1 = arith.truncf %0 : vector<64x128xf32> to vector<64x128xbf16>
    %c0_1 = arith.constant 0 : index
    %c0_2 = arith.constant 0 : index
    %2 = vector.load %arg3[%c0_1, %c0_2] : memref<128x512xbf16, #tpu.memory_space<vmem>>, vector<128x512xbf16>
    %cst = arith.constant dense<0.000000e+00> : vector<64x512xf32>
    %3 = tpu.matmul %1, %2, %cst {dimension_numbers = #tpu.dot_dimension_numbers<[1], [0], [0], [1], [0, 0, 1, 1], [], []>} : vector<64x128xbf16>, vector<128x512xbf16>, vector<64x512xf32> -> vector<64x512xf32>
    %c0_3 = arith.constant 0 : index
    %c0_4 = arith.constant 0 : index
    %4 = vector.load %arg2[%c0_3, %c0_4] : memref<64x128xf32, #tpu.memory_space<vmem>>, vector<64x128xf32>
    %5 = arith.truncf %4 : vector<64x128xf32> to vector<64x128xbf16>
    %c0_5 = arith.constant 0 : index
    %c0_6 = arith.constant 0 : index
    %6 = vector.load %arg4[%c0_5, %c0_6] : memref<128x512xbf16, #tpu.memory_space<vmem>>, vector<128x512xbf16>
    %cst_7 = arith.constant dense<0.000000e+00> : vector<64x512xf32>
    %7 = tpu.matmul %5, %6, %cst_7 {dimension_numbers = #tpu.dot_dimension_numbers<[1], [0], [0], [1], [0, 0, 1, 1], [], []>} : vector<64x128xbf16>, vector<128x512xbf16>, vector<64x512xf32> -> vector<64x512xf32>
    %8 = arith.addf %3, %7 : vector<64x512xf32>
    %c0_8 = arith.constant 0 : index
    %c0_9 = arith.constant 0 : index
    %9 = vector.load %arg5[%c0_8, %c0_9] : memref<1x512xf32, #tpu.memory_space<vmem>>, vector<1x512xf32>
    %10 = vector.broadcast %9 : vector<1x512xf32> to vector<64x512xf32>
    %11 = arith.addf %8, %10 : vector<64x512xf32>
    %c0_10 = arith.constant 0 : index
    %c0_11 = arith.constant 0 : index
    %12 = vector.load %arg6[%c0_10, %c0_11] : memref<64x512xf32, #tpu.memory_space<vmem>>, vector<64x512xf32>
    tpu.vector_store %arg6[%c0_10, %c0_11], %11 {strides = array<i32>} : memref<64x512xf32, #tpu.memory_space<vmem>>, vector<64x512xf32>,
    return
  }
  func.func @transform_0(%arg0: i32) -> (i32, i32) {
    %c0_i32 = arith.constant 0 : i32
    %c0_i32_0 = arith.constant 0 : i32
    return %arg0, %c0_i32 : i32, i32
  }
  func.func @transform_1(%arg0: i32) -> (i32, i32) {
    %c0_i32 = arith.constant 0 : i32
    %c0_i32_0 = arith.constant 0 : i32
    return %arg0, %c0_i32 : i32, i32
  }
  func.func @transform_2(%arg0: i32) -> (i32, i32) {
    %c0_i32 = arith.constant 0 : i32
    %c0_i32_0 = arith.constant 0 : i32
    %c0_i32_1 = arith.constant 0 : i32
    return %c0_i32, %c0_i32_0 : i32, i32
  }
  func.func @transform_3(%arg0: i32) -> (i32, i32) {
    %c0_i32 = arith.constant 0 : i32
    %c0_i32_0 = arith.constant 0 : i32
    %c0_i32_1 = arith.constant 0 : i32
    return %c0_i32, %c0_i32_0 : i32, i32
  }
  func.func @transform_4(%arg0: i32) -> (i32, i32) {
    %c0_i32 = arith.constant 0 : i32
    %c0_i32_0 = arith.constant 0 : i32
    %c0_i32_1 = arith.constant 0 : i32
    return %c0_i32, %c0_i32_0 : i32, i32
  }
  func.func @transform_5(%arg0: i32) -> (i32, i32) {
    %c0_i32 = arith.constant 0 : i32
    %c0_i32_0 = arith.constant 0 : i32
    return %arg0, %c0_i32 : i32, i32
  }
}

module attributes {stable_mosaic.version = 11 : i64} {
  func.func @_dual_matmul_bias_kernel(%arg0: i32, %arg1: memref<64x128xf32, #tpu.memory_space<vmem>>, %arg2: memref<64x128xf32, #tpu.memory_space<vmem>>, %arg3: memref<128x128xbf16, #tpu.memory_space<vmem>>, %arg4: memref<128x128xbf16, #tpu.memory_space<vmem>>, %arg5: memref<1x128xf32, #tpu.memory_space<vmem>>, %arg6: memref<64x128xf32, #tpu.memory_space<vmem>>) attributes {dimension_semantics = [#tpu.dimension_semantics<parallel>], iteration_bounds = array<i64: 1>, scalar_prefetch = 0 : i64, scratch_operands = 0 : i64, tpu.core_type = #tpu.core_type<tc>, window_params = [{transform_indices = @transform_0, window_bounds = array<i64: 64, 128>}, {transform_indices = @transform_1, window_bounds = array<i64: 64, 128>}, {pipeline_mode = #tpu.pipeline_mode<synchronous>, transform_indices = @transform_2, window_bounds = array<i64: 128, 128>}, {pipeline_mode = #tpu.pipeline_mode<synchronous>, transform_indices = @transform_3, window_bounds = array<i64: 128, 128>}, {pipeline_mode = #tpu.pipeline_mode<synchronous>, transform_indices = @transform_4, window_bounds = array<i64: 1, 128>}, {transform_indices = @transform_5, window_bounds = array<i64: 64, 128>}]} {
    %c0 = arith.constant 0 : index
    %c0_0 = arith.constant 0 : index
    %0 = vector.load %arg1[%c0, %c0_0] : memref<64x128xf32, #tpu.memory_space<vmem>>, vector<64x128xf32>
    %1 = arith.truncf %0 : vector<64x128xf32> to vector<64x128xbf16>
    %c0_1 = arith.constant 0 : index
    %c0_2 = arith.constant 0 : index
    %2 = vector.load %arg3[%c0_1, %c0_2] : memref<128x128xbf16, #tpu.memory_space<vmem>>, vector<128x128xbf16>
    %cst = arith.constant dense<0.000000e+00> : vector<64x128xf32>
    %3 = tpu.matmul %1, %2, %cst {dimension_numbers = #tpu.dot_dimension_numbers<[1], [0], [0], [1], [0, 0, 1, 1], [], []>} : vector<64x128xbf16>, vector<128x128xbf16>, vector<64x128xf32> -> vector<64x128xf32>
    %c0_3 = arith.constant 0 : index
    %c0_4 = arith.constant 0 : index
    %4 = vector.load %arg2[%c0_3, %c0_4] : memref<64x128xf32, #tpu.memory_space<vmem>>, vector<64x128xf32>
    %5 = arith.truncf %4 : vector<64x128xf32> to vector<64x128xbf16>
    %c0_5 = arith.constant 0 : index
    %c0_6 = arith.constant 0 : index
    %6 = vector.load %arg4[%c0_5, %c0_6] : memref<128x128xbf16, #tpu.memory_space<vmem>>, vector<128x128xbf16>
    %cst_7 = arith.constant dense<0.000000e+00> : vector<64x128xf32>
    %7 = tpu.matmul %5, %6, %cst_7 {dimension_numbers = #tpu.dot_dimension_numbers<[1], [0], [0], [1], [0, 0, 1, 1], [], []>} : vector<64x128xbf16>, vector<128x128xbf16>, vector<64x128xf32> -> vector<64x128xf32>
    %8 = arith.addf %3, %7 : vector<64x128xf32>
    %c0_8 = arith.constant 0 : index
    %c0_9 = arith.constant 0 : index
    %9 = vector.load %arg5[%c0_8, %c0_9] : memref<1x128xf32, #tpu.memory_space<vmem>>, vector<1x128xf32>
    %10 = vector.broadcast %9 : vector<1x128xf32> to vector<64x128xf32>
    %11 = arith.addf %8, %10 : vector<64x128xf32>
    %c0_10 = arith.constant 0 : index
    %c0_11 = arith.constant 0 : index
    %12 = vector.load %arg6[%c0_10, %c0_11] : memref<64x128xf32, #tpu.memory_space<vmem>>, vector<64x128xf32>
    tpu.vector_store %arg6[%c0_10, %c0_11], %11 {strides = array<i32>} : memref<64x128xf32, #tpu.memory_space<vmem>>, vector<64x128xf32>,
    return
  }
  func.func @transform_0(%arg0: i32) -> (i32, i32) {
    %c0_i32 = arith.constant 0 : i32
    %c0_i32_0 = arith.constant 0 : i32
    return %arg0, %c0_i32 : i32, i32
  }
  func.func @transform_1(%arg0: i32) -> (i32, i32) {
    %c0_i32 = arith.constant 0 : i32
    %c0_i32_0 = arith.constant 0 : i32
    return %arg0, %c0_i32 : i32, i32
  }
  func.func @transform_2(%arg0: i32) -> (i32, i32) {
    %c0_i32 = arith.constant 0 : i32
    %c0_i32_0 = arith.constant 0 : i32
    %c0_i32_1 = arith.constant 0 : i32
    return %c0_i32, %c0_i32_0 : i32, i32
  }
  func.func @transform_3(%arg0: i32) -> (i32, i32) {
    %c0_i32 = arith.constant 0 : i32
    %c0_i32_0 = arith.constant 0 : i32
    %c0_i32_1 = arith.constant 0 : i32
    return %c0_i32, %c0_i32_0 : i32, i32
  }
  func.func @transform_4(%arg0: i32) -> (i32, i32) {
    %c0_i32 = arith.constant 0 : i32
    %c0_i32_0 = arith.constant 0 : i32
    %c0_i32_1 = arith.constant 0 : i32
    return %c0_i32, %c0_i32_0 : i32, i32
  }
  func.func @transform_5(%arg0: i32) -> (i32, i32) {
    %c0_i32 = arith.constant 0 : i32
    %c0_i32_0 = arith.constant 0 : i32
    return %arg0, %c0_i32 : i32, i32
  }
}

module attributes {stable_mosaic.version = 11 : i64} {
  func.func @_bilstm_recurrence_kernel(%arg0: i32, %arg1: memref<8x8x512xf32, #tpu.memory_space<vmem>>, %arg2: memref<8x8x512xf32, #tpu.memory_space<vmem>>, %arg3: memref<128x512xbf16, #tpu.memory_space<vmem>>, %arg4: memref<128x512xbf16, #tpu.memory_space<vmem>>, %arg5: memref<8x8x128xf32, #tpu.memory_space<vmem>>, %arg6: memref<8x8x128xf32, #tpu.memory_space<vmem>>, %arg7: memref<8x128xf32, #tpu.memory_space<vmem>>, %arg8: memref<8x128xf32, #tpu.memory_space<vmem>>, %arg9: memref<8x128xf32, #tpu.memory_space<vmem>>, %arg10: memref<8x128xf32, #tpu.memory_space<vmem>>) attributes {dimension_semantics = [#tpu.dimension_semantics<arbitrary>], iteration_bounds = array<i64: 1>, scalar_prefetch = 0 : i64, scratch_operands = 4 : i64, tpu.core_type = #tpu.core_type<tc>, window_params = [{transform_indices = @transform_0, window_bounds = array<i64: 8, 8, 512>}, {transform_indices = @transform_1, window_bounds = array<i64: 8, 8, 512>}, {pipeline_mode = #tpu.pipeline_mode<synchronous>, transform_indices = @transform_2, window_bounds = array<i64: 128, 512>}, {pipeline_mode = #tpu.pipeline_mode<synchronous>, transform_indices = @transform_3, window_bounds = array<i64: 128, 512>}, {transform_indices = @transform_4, window_bounds = array<i64: 8, 8, 128>}, {transform_indices = @transform_5, window_bounds = array<i64: 8, 8, 128>}]} {
    %c0_i32 = arith.constant 0 : i32
    %0 = arith.cmpi eq, %arg0, %c0_i32 : i32
    %1 = arith.extui %0 : i1 to i32
    %c0_i32_0 = arith.constant 0 : i32
    %2 = arith.cmpi ne, %1, %c0_i32_0 : i32
    scf.if %2 {
      %cst_172 = arith.constant 0.000000e+00 : f32
      %541 = vector.broadcast %cst_172 : f32 to vector<8x128xf32>
      %c0_173 = arith.constant 0 : index
      %c0_174 = arith.constant 0 : index
      %542 = vector.load %arg7[%c0_173, %c0_174] : memref<8x128xf32, #tpu.memory_space<vmem>>, vector<8x128xf32>
      tpu.vector_store %arg7[%c0_173, %c0_174], %541 {strides = array<i32>} : memref<8x128xf32, #tpu.memory_space<vmem>>, vector<8x128xf32>,
      %cst_175 = arith.constant 0.000000e+00 : f32
      %543 = vector.broadcast %cst_175 : f32 to vector<8x128xf32>
      %c0_176 = arith.constant 0 : index
      %c0_177 = arith.constant 0 : index
      %544 = vector.load %arg8[%c0_176, %c0_177] : memref<8x128xf32, #tpu.memory_space<vmem>>, vector<8x128xf32>
      tpu.vector_store %arg8[%c0_176, %c0_177], %543 {strides = array<i32>} : memref<8x128xf32, #tpu.memory_space<vmem>>, vector<8x128xf32>,
      %cst_178 = arith.constant 0.000000e+00 : f32
      %545 = vector.broadcast %cst_178 : f32 to vector<8x128xf32>
      %c0_179 = arith.constant 0 : index
      %c0_180 = arith.constant 0 : index
      %546 = vector.load %arg9[%c0_179, %c0_180] : memref<8x128xf32, #tpu.memory_space<vmem>>, vector<8x128xf32>
      tpu.vector_store %arg9[%c0_179, %c0_180], %545 {strides = array<i32>} : memref<8x128xf32, #tpu.memory_space<vmem>>, vector<8x128xf32>,
      %cst_181 = arith.constant 0.000000e+00 : f32
      %547 = vector.broadcast %cst_181 : f32 to vector<8x128xf32>
      %c0_182 = arith.constant 0 : index
      %c0_183 = arith.constant 0 : index
      %548 = vector.load %arg10[%c0_182, %c0_183] : memref<8x128xf32, #tpu.memory_space<vmem>>, vector<8x128xf32>
      tpu.vector_store %arg10[%c0_182, %c0_183], %547 {strides = array<i32>} : memref<8x128xf32, #tpu.memory_space<vmem>>, vector<8x128xf32>,
    } else {
    }
    %c0 = arith.constant 0 : index
    %c0_1 = arith.constant 0 : index
    %3 = vector.load %arg3[%c0, %c0_1] : memref<128x512xbf16, #tpu.memory_space<vmem>>, vector<128x512xbf16>
    %c0_2 = arith.constant 0 : index
    %c0_3 = arith.constant 0 : index
    %4 = vector.load %arg4[%c0_2, %c0_3] : memref<128x512xbf16, #tpu.memory_space<vmem>>, vector<128x512xbf16>
    %c0_4 = arith.constant 0 : index
    %c0_5 = arith.constant 0 : index
    %5 = vector.load %arg7[%c0_4, %c0_5] : memref<8x128xf32, #tpu.memory_space<vmem>>, vector<8x128xf32>
    %c0_6 = arith.constant 0 : index
    %c0_7 = arith.constant 0 : index
    %6 = vector.load %arg8[%c0_6, %c0_7] : memref<8x128xf32, #tpu.memory_space<vmem>>, vector<8x128xf32>
    %c0_8 = arith.constant 0 : index
    %c0_9 = arith.constant 0 : index
    %7 = vector.load %arg9[%c0_8, %c0_9] : memref<8x128xf32, #tpu.memory_space<vmem>>, vector<8x128xf32>
    %c0_10 = arith.constant 0 : index
    %c0_11 = arith.constant 0 : index
    %8 = vector.load %arg10[%c0_10, %c0_11] : memref<8x128xf32, #tpu.memory_space<vmem>>, vector<8x128xf32>
    %c0_12 = arith.constant 0 : index
    %c0_13 = arith.constant 0 : index
    %c0_14 = arith.constant 0 : index
    %9 = vector.load %arg1[%c0_12, %c0_13, %c0_14] : memref<8x8x512xf32, #tpu.memory_space<vmem>>, vector<1x8x512xf32>
    %10 = vector.shape_cast %9 : vector<1x8x512xf32> to vector<8x512xf32>
    %11 = arith.truncf %5 : vector<8x128xf32> to vector<8x128xbf16>
    %cst = arith.constant dense<0.000000e+00> : vector<8x512xf32>
    %12 = tpu.matmul %11, %3, %cst {dimension_numbers = #tpu.dot_dimension_numbers<[1], [0], [0], [1], [0, 0, 1, 1], [], []>} : vector<8x128xbf16>, vector<128x512xbf16>, vector<8x512xf32> -> vector<8x512xf32>
    %13 = arith.addf %10, %12 : vector<8x512xf32>
    %14 = vector.extract_strided_slice %13 {offsets = [0, 0], sizes = [8, 128], strides = [1, 1]} : vector<8x512xf32> to vector<8x128xf32>
    %15 = arith.negf %14 : vector<8x128xf32>
    %16 = math.exp %15 : vector<8x128xf32>
    %cst_15 = arith.constant 1.000000e+00 : f32
    %17 = vector.broadcast %cst_15 : f32 to vector<8x128xf32>
    %18 = arith.addf %17, %16 : vector<8x128xf32>
    %19 = arith.divf %17, %18 : vector<8x128xf32>
    %20 = vector.extract_strided_slice %13 {offsets = [0, 128], sizes = [8, 128], strides = [1, 1]} : vector<8x512xf32> to vector<8x128xf32>
    %21 = arith.negf %20 : vector<8x128xf32>
    %22 = math.exp %21 : vector<8x128xf32>
    %cst_16 = arith.constant 1.000000e+00 : f32
    %23 = vector.broadcast %cst_16 : f32 to vector<8x128xf32>
    %24 = arith.addf %23, %22 : vector<8x128xf32>
    %25 = arith.divf %23, %24 : vector<8x128xf32>
    %26 = vector.extract_strided_slice %13 {offsets = [0, 256], sizes = [8, 128], strides = [1, 1]} : vector<8x512xf32> to vector<8x128xf32>
    %27 = math.tanh %26 : vector<8x128xf32>
    %28 = vector.extract_strided_slice %13 {offsets = [0, 384], sizes = [8, 128], strides = [1, 1]} : vector<8x512xf32> to vector<8x128xf32>
    %29 = arith.negf %28 : vector<8x128xf32>
    %30 = math.exp %29 : vector<8x128xf32>
    %cst_17 = arith.constant 1.000000e+00 : f32
    %31 = vector.broadcast %cst_17 : f32 to vector<8x128xf32>
    %32 = arith.addf %31, %30 : vector<8x128xf32>
    %33 = arith.divf %31, %32 : vector<8x128xf32>
    %34 = arith.mulf %25, %6 : vector<8x128xf32>
    %35 = arith.mulf %19, %27 : vector<8x128xf32>
    %36 = arith.addf %34, %35 : vector<8x128xf32>
    %37 = math.tanh %36 : vector<8x128xf32>
    %38 = arith.mulf %33, %37 : vector<8x128xf32>
    %c7 = arith.constant 7 : index
    %c0_18 = arith.constant 0 : index
    %c0_19 = arith.constant 0 : index
    %39 = vector.load %arg2[%c7, %c0_18, %c0_19] : memref<8x8x512xf32, #tpu.memory_space<vmem>>, vector<1x8x512xf32>
    %40 = vector.shape_cast %39 : vector<1x8x512xf32> to vector<8x512xf32>
    %41 = arith.truncf %7 : vector<8x128xf32> to vector<8x128xbf16>
    %cst_20 = arith.constant dense<0.000000e+00> : vector<8x512xf32>
    %42 = tpu.matmul %41, %4, %cst_20 {dimension_numbers = #tpu.dot_dimension_numbers<[1], [0], [0], [1], [0, 0, 1, 1], [], []>} : vector<8x128xbf16>, vector<128x512xbf16>, vector<8x512xf32> -> vector<8x512xf32>
    %43 = arith.addf %40, %42 : vector<8x512xf32>
    %44 = vector.extract_strided_slice %43 {offsets = [0, 0], sizes = [8, 128], strides = [1, 1]} : vector<8x512xf32> to vector<8x128xf32>
    %45 = arith.negf %44 : vector<8x128xf32>
    %46 = math.exp %45 : vector<8x128xf32>
    %cst_21 = arith.constant 1.000000e+00 : f32
    %47 = vector.broadcast %cst_21 : f32 to vector<8x128xf32>
    %48 = arith.addf %47, %46 : vector<8x128xf32>
    %49 = arith.divf %47, %48 : vector<8x128xf32>
    %50 = vector.extract_strided_slice %43 {offsets = [0, 128], sizes = [8, 128], strides = [1, 1]} : vector<8x512xf32> to vector<8x128xf32>
    %51 = arith.negf %50 : vector<8x128xf32>
    %52 = math.exp %51 : vector<8x128xf32>
    %cst_22 = arith.constant 1.000000e+00 : f32
    %53 = vector.broadcast %cst_22 : f32 to vector<8x128xf32>
    %54 = arith.addf %53, %52 : vector<8x128xf32>
    %55 = arith.divf %53, %54 : vector<8x128xf32>
    %56 = vector.extract_strided_slice %43 {offsets = [0, 256], sizes = [8, 128], strides = [1, 1]} : vector<8x512xf32> to vector<8x128xf32>
    %57 = math.tanh %56 : vector<8x128xf32>
    %58 = vector.extract_strided_slice %43 {offsets = [0, 384], sizes = [8, 128], strides = [1, 1]} : vector<8x512xf32> to vector<8x128xf32>
    %59 = arith.negf %58 : vector<8x128xf32>
    %60 = math.exp %59 : vector<8x128xf32>
    %cst_23 = arith.constant 1.000000e+00 : f32
    %61 = vector.broadcast %cst_23 : f32 to vector<8x128xf32>
    %62 = arith.addf %61, %60 : vector<8x128xf32>
    %63 = arith.divf %61, %62 : vector<8x128xf32>
    %64 = arith.mulf %55, %8 : vector<8x128xf32>
    %65 = arith.mulf %49, %57 : vector<8x128xf32>
    %66 = arith.addf %64, %65 : vector<8x128xf32>
    %67 = math.tanh %66 : vector<8x128xf32>
    %68 = arith.mulf %63, %67 : vector<8x128xf32>
    %c0_24 = arith.constant 0 : index
    %c0_25 = arith.constant 0 : index
    %c0_26 = arith.constant 0 : index
    %69 = vector.load %arg5[%c0_24, %c0_25, %c0_26] : memref<8x8x128xf32, #tpu.memory_space<vmem>>, vector<1x8x128xf32>
    %70 = vector.shape_cast %69 : vector<1x8x128xf32> to vector<8x128xf32>
    %71 = vector.shape_cast %38 : vector<8x128xf32> to vector<1x8x128xf32>
    tpu.vector_store %arg5[%c0_24, %c0_25, %c0_26], %71 {strides = array<i32>} : memref<8x8x128xf32, #tpu.memory_space<vmem>>, vector<1x8x128xf32>,
    %c7_27 = arith.constant 7 : index
    %c0_28 = arith.constant 0 : index
    %c0_29 = arith.constant 0 : index
    %72 = vector.load %arg6[%c7_27, %c0_28, %c0_29] : memref<8x8x128xf32, #tpu.memory_space<vmem>>, vector<1x8x128xf32>
    %73 = vector.shape_cast %72 : vector<1x8x128xf32> to vector<8x128xf32>
    %74 = vector.shape_cast %68 : vector<8x128xf32> to vector<1x8x128xf32>
    tpu.vector_store %arg6[%c7_27, %c0_28, %c0_29], %74 {strides = array<i32>} : memref<8x8x128xf32, #tpu.memory_space<vmem>>, vector<1x8x128xf32>,
    %c1 = arith.constant 1 : index
    %c0_30 = arith.constant 0 : index
    %c0_31 = arith.constant 0 : index
    %75 = vector.load %arg1[%c1, %c0_30, %c0_31] : memref<8x8x512xf32, #tpu.memory_space<vmem>>, vector<1x8x512xf32>
    %76 = vector.shape_cast %75 : vector<1x8x512xf32> to vector<8x512xf32>
    %77 = arith.truncf %38 : vector<8x128xf32> to vector<8x128xbf16>
    %cst_32 = arith.constant dense<0.000000e+00> : vector<8x512xf32>
    %78 = tpu.matmul %77, %3, %cst_32 {dimension_numbers = #tpu.dot_dimension_numbers<[1], [0], [0], [1], [0, 0, 1, 1], [], []>} : vector<8x128xbf16>, vector<128x512xbf16>, vector<8x512xf32> -> vector<8x512xf32>
    %79 = arith.addf %76, %78 : vector<8x512xf32>
    %80 = vector.extract_strided_slice %79 {offsets = [0, 0], sizes = [8, 128], strides = [1, 1]} : vector<8x512xf32> to vector<8x128xf32>
    %81 = arith.negf %80 : vector<8x128xf32>
    %82 = math.exp %81 : vector<8x128xf32>
    %cst_33 = arith.constant 1.000000e+00 : f32
    %83 = vector.broadcast %cst_33 : f32 to vector<8x128xf32>
    %84 = arith.addf %83, %82 : vector<8x128xf32>
    %85 = arith.divf %83, %84 : vector<8x128xf32>
    %86 = vector.extract_strided_slice %79 {offsets = [0, 128], sizes = [8, 128], strides = [1, 1]} : vector<8x512xf32> to vector<8x128xf32>
    %87 = arith.negf %86 : vector<8x128xf32>
    %88 = math.exp %87 : vector<8x128xf32>
    %cst_34 = arith.constant 1.000000e+00 : f32
    %89 = vector.broadcast %cst_34 : f32 to vector<8x128xf32>
    %90 = arith.addf %89, %88 : vector<8x128xf32>
    %91 = arith.divf %89, %90 : vector<8x128xf32>
    %92 = vector.extract_strided_slice %79 {offsets = [0, 256], sizes = [8, 128], strides = [1, 1]} : vector<8x512xf32> to vector<8x128xf32>
    %93 = math.tanh %92 : vector<8x128xf32>
    %94 = vector.extract_strided_slice %79 {offsets = [0, 384], sizes = [8, 128], strides = [1, 1]} : vector<8x512xf32> to vector<8x128xf32>
    %95 = arith.negf %94 : vector<8x128xf32>
    %96 = math.exp %95 : vector<8x128xf32>
    %cst_35 = arith.constant 1.000000e+00 : f32
    %97 = vector.broadcast %cst_35 : f32 to vector<8x128xf32>
    %98 = arith.addf %97, %96 : vector<8x128xf32>
    %99 = arith.divf %97, %98 : vector<8x128xf32>
    %100 = arith.mulf %91, %36 : vector<8x128xf32>
    %101 = arith.mulf %85, %93 : vector<8x128xf32>
    %102 = arith.addf %100, %101 : vector<8x128xf32>
    %103 = math.tanh %102 : vector<8x128xf32>
    %104 = arith.mulf %99, %103 : vector<8x128xf32>
    %c6 = arith.constant 6 : index
    %c0_36 = arith.constant 0 : index
    %c0_37 = arith.constant 0 : index
    %105 = vector.load %arg2[%c6, %c0_36, %c0_37] : memref<8x8x512xf32, #tpu.memory_space<vmem>>, vector<1x8x512xf32>
    %106 = vector.shape_cast %105 : vector<1x8x512xf32> to vector<8x512xf32>
    %107 = arith.truncf %68 : vector<8x128xf32> to vector<8x128xbf16>
    %cst_38 = arith.constant dense<0.000000e+00> : vector<8x512xf32>
    %108 = tpu.matmul %107, %4, %cst_38 {dimension_numbers = #tpu.dot_dimension_numbers<[1], [0], [0], [1], [0, 0, 1, 1], [], []>} : vector<8x128xbf16>, vector<128x512xbf16>, vector<8x512xf32> -> vector<8x512xf32>
    %109 = arith.addf %106, %108 : vector<8x512xf32>
    %110 = vector.extract_strided_slice %109 {offsets = [0, 0], sizes = [8, 128], strides = [1, 1]} : vector<8x512xf32> to vector<8x128xf32>
    %111 = arith.negf %110 : vector<8x128xf32>
    %112 = math.exp %111 : vector<8x128xf32>
    %cst_39 = arith.constant 1.000000e+00 : f32
    %113 = vector.broadcast %cst_39 : f32 to vector<8x128xf32>
    %114 = arith.addf %113, %112 : vector<8x128xf32>
    %115 = arith.divf %113, %114 : vector<8x128xf32>
    %116 = vector.extract_strided_slice %109 {offsets = [0, 128], sizes = [8, 128], strides = [1, 1]} : vector<8x512xf32> to vector<8x128xf32>
    %117 = arith.negf %116 : vector<8x128xf32>
    %118 = math.exp %117 : vector<8x128xf32>
    %cst_40 = arith.constant 1.000000e+00 : f32
    %119 = vector.broadcast %cst_40 : f32 to vector<8x128xf32>
    %120 = arith.addf %119, %118 : vector<8x128xf32>
    %121 = arith.divf %119, %120 : vector<8x128xf32>
    %122 = vector.extract_strided_slice %109 {offsets = [0, 256], sizes = [8, 128], strides = [1, 1]} : vector<8x512xf32> to vector<8x128xf32>
    %123 = math.tanh %122 : vector<8x128xf32>
    %124 = vector.extract_strided_slice %109 {offsets = [0, 384], sizes = [8, 128], strides = [1, 1]} : vector<8x512xf32> to vector<8x128xf32>
    %125 = arith.negf %124 : vector<8x128xf32>
    %126 = math.exp %125 : vector<8x128xf32>
    %cst_41 = arith.constant 1.000000e+00 : f32
    %127 = vector.broadcast %cst_41 : f32 to vector<8x128xf32>
    %128 = arith.addf %127, %126 : vector<8x128xf32>
    %129 = arith.divf %127, %128 : vector<8x128xf32>
    %130 = arith.mulf %121, %66 : vector<8x128xf32>
    %131 = arith.mulf %115, %123 : vector<8x128xf32>
    %132 = arith.addf %130, %131 : vector<8x128xf32>
    %133 = math.tanh %132 : vector<8x128xf32>
    %134 = arith.mulf %129, %133 : vector<8x128xf32>
    %c1_42 = arith.constant 1 : index
    %c0_43 = arith.constant 0 : index
    %c0_44 = arith.constant 0 : index
    %135 = vector.load %arg5[%c1_42, %c0_43, %c0_44] : memref<8x8x128xf32, #tpu.memory_space<vmem>>, vector<1x8x128xf32>
    %136 = vector.shape_cast %135 : vector<1x8x128xf32> to vector<8x128xf32>
    %137 = vector.shape_cast %104 : vector<8x128xf32> to vector<1x8x128xf32>
    tpu.vector_store %arg5[%c1_42, %c0_43, %c0_44], %137 {strides = array<i32>} : memref<8x8x128xf32, #tpu.memory_space<vmem>>, vector<1x8x128xf32>,
    %c6_45 = arith.constant 6 : index
    %c0_46 = arith.constant 0 : index
    %c0_47 = arith.constant 0 : index
    %138 = vector.load %arg6[%c6_45, %c0_46, %c0_47] : memref<8x8x128xf32, #tpu.memory_space<vmem>>, vector<1x8x128xf32>
    %139 = vector.shape_cast %138 : vector<1x8x128xf32> to vector<8x128xf32>
    %140 = vector.shape_cast %134 : vector<8x128xf32> to vector<1x8x128xf32>
    tpu.vector_store %arg6[%c6_45, %c0_46, %c0_47], %140 {strides = array<i32>} : memref<8x8x128xf32, #tpu.memory_space<vmem>>, vector<1x8x128xf32>,
    %c2 = arith.constant 2 : index
    %c0_48 = arith.constant 0 : index
    %c0_49 = arith.constant 0 : index
    %141 = vector.load %arg1[%c2, %c0_48, %c0_49] : memref<8x8x512xf32, #tpu.memory_space<vmem>>, vector<1x8x512xf32>
    %142 = vector.shape_cast %141 : vector<1x8x512xf32> to vector<8x512xf32>
    %143 = arith.truncf %104 : vector<8x128xf32> to vector<8x128xbf16>
    %cst_50 = arith.constant dense<0.000000e+00> : vector<8x512xf32>
    %144 = tpu.matmul %143, %3, %cst_50 {dimension_numbers = #tpu.dot_dimension_numbers<[1], [0], [0], [1], [0, 0, 1, 1], [], []>} : vector<8x128xbf16>, vector<128x512xbf16>, vector<8x512xf32> -> vector<8x512xf32>
    %145 = arith.addf %142, %144 : vector<8x512xf32>
    %146 = vector.extract_strided_slice %145 {offsets = [0, 0], sizes = [8, 128], strides = [1, 1]} : vector<8x512xf32> to vector<8x128xf32>
    %147 = arith.negf %146 : vector<8x128xf32>
    %148 = math.exp %147 : vector<8x128xf32>
    %cst_51 = arith.constant 1.000000e+00 : f32
    %149 = vector.broadcast %cst_51 : f32 to vector<8x128xf32>
    %150 = arith.addf %149, %148 : vector<8x128xf32>
    %151 = arith.divf %149, %150 : vector<8x128xf32>
    %152 = vector.extract_strided_slice %145 {offsets = [0, 128], sizes = [8, 128], strides = [1, 1]} : vector<8x512xf32> to vector<8x128xf32>
    %153 = arith.negf %152 : vector<8x128xf32>
    %154 = math.exp %153 : vector<8x128xf32>
    %cst_52 = arith.constant 1.000000e+00 : f32
    %155 = vector.broadcast %cst_52 : f32 to vector<8x128xf32>
    %156 = arith.addf %155, %154 : vector<8x128xf32>
    %157 = arith.divf %155, %156 : vector<8x128xf32>
    %158 = vector.extract_strided_slice %145 {offsets = [0, 256], sizes = [8, 128], strides = [1, 1]} : vector<8x512xf32> to vector<8x128xf32>
    %159 = math.tanh %158 : vector<8x128xf32>
    %160 = vector.extract_strided_slice %145 {offsets = [0, 384], sizes = [8, 128], strides = [1, 1]} : vector<8x512xf32> to vector<8x128xf32>
    %161 = arith.negf %160 : vector<8x128xf32>
    %162 = math.exp %161 : vector<8x128xf32>
    %cst_53 = arith.constant 1.000000e+00 : f32
    %163 = vector.broadcast %cst_53 : f32 to vector<8x128xf32>
    %164 = arith.addf %163, %162 : vector<8x128xf32>
    %165 = arith.divf %163, %164 : vector<8x128xf32>
    %166 = arith.mulf %157, %102 : vector<8x128xf32>
    %167 = arith.mulf %151, %159 : vector<8x128xf32>
    %168 = arith.addf %166, %167 : vector<8x128xf32>
    %169 = math.tanh %168 : vector<8x128xf32>
    %170 = arith.mulf %165, %169 : vector<8x128xf32>
    %c5 = arith.constant 5 : index
    %c0_54 = arith.constant 0 : index
    %c0_55 = arith.constant 0 : index
    %171 = vector.load %arg2[%c5, %c0_54, %c0_55] : memref<8x8x512xf32, #tpu.memory_space<vmem>>, vector<1x8x512xf32>
    %172 = vector.shape_cast %171 : vector<1x8x512xf32> to vector<8x512xf32>
    %173 = arith.truncf %134 : vector<8x128xf32> to vector<8x128xbf16>
    %cst_56 = arith.constant dense<0.000000e+00> : vector<8x512xf32>
    %174 = tpu.matmul %173, %4, %cst_56 {dimension_numbers = #tpu.dot_dimension_numbers<[1], [0], [0], [1], [0, 0, 1, 1], [], []>} : vector<8x128xbf16>, vector<128x512xbf16>, vector<8x512xf32> -> vector<8x512xf32>
    %175 = arith.addf %172, %174 : vector<8x512xf32>
    %176 = vector.extract_strided_slice %175 {offsets = [0, 0], sizes = [8, 128], strides = [1, 1]} : vector<8x512xf32> to vector<8x128xf32>
    %177 = arith.negf %176 : vector<8x128xf32>
    %178 = math.exp %177 : vector<8x128xf32>
    %cst_57 = arith.constant 1.000000e+00 : f32
    %179 = vector.broadcast %cst_57 : f32 to vector<8x128xf32>
    %180 = arith.addf %179, %178 : vector<8x128xf32>
    %181 = arith.divf %179, %180 : vector<8x128xf32>
    %182 = vector.extract_strided_slice %175 {offsets = [0, 128], sizes = [8, 128], strides = [1, 1]} : vector<8x512xf32> to vector<8x128xf32>
    %183 = arith.negf %182 : vector<8x128xf32>
    %184 = math.exp %183 : vector<8x128xf32>
    %cst_58 = arith.constant 1.000000e+00 : f32
    %185 = vector.broadcast %cst_58 : f32 to vector<8x128xf32>
    %186 = arith.addf %185, %184 : vector<8x128xf32>
    %187 = arith.divf %185, %186 : vector<8x128xf32>
    %188 = vector.extract_strided_slice %175 {offsets = [0, 256], sizes = [8, 128], strides = [1, 1]} : vector<8x512xf32> to vector<8x128xf32>
    %189 = math.tanh %188 : vector<8x128xf32>
    %190 = vector.extract_strided_slice %175 {offsets = [0, 384], sizes = [8, 128], strides = [1, 1]} : vector<8x512xf32> to vector<8x128xf32>
    %191 = arith.negf %190 : vector<8x128xf32>
    %192 = math.exp %191 : vector<8x128xf32>
    %cst_59 = arith.constant 1.000000e+00 : f32
    %193 = vector.broadcast %cst_59 : f32 to vector<8x128xf32>
    %194 = arith.addf %193, %192 : vector<8x128xf32>
    %195 = arith.divf %193, %194 : vector<8x128xf32>
    %196 = arith.mulf %187, %132 : vector<8x128xf32>
    %197 = arith.mulf %181, %189 : vector<8x128xf32>
    %198 = arith.addf %196, %197 : vector<8x128xf32>
    %199 = math.tanh %198 : vector<8x128xf32>
    %200 = arith.mulf %195, %199 : vector<8x128xf32>
    %c2_60 = arith.constant 2 : index
    %c0_61 = arith.constant 0 : index
    %c0_62 = arith.constant 0 : index
    %201 = vector.load %arg5[%c2_60, %c0_61, %c0_62] : memref<8x8x128xf32, #tpu.memory_space<vmem>>, vector<1x8x128xf32>
    %202 = vector.shape_cast %201 : vector<1x8x128xf32> to vector<8x128xf32>
    %203 = vector.shape_cast %170 : vector<8x128xf32> to vector<1x8x128xf32>
    tpu.vector_store %arg5[%c2_60, %c0_61, %c0_62], %203 {strides = array<i32>} : memref<8x8x128xf32, #tpu.memory_space<vmem>>, vector<1x8x128xf32>,
    %c5_63 = arith.constant 5 : index
    %c0_64 = arith.constant 0 : index
    %c0_65 = arith.constant 0 : index
    %204 = vector.load %arg6[%c5_63, %c0_64, %c0_65] : memref<8x8x128xf32, #tpu.memory_space<vmem>>, vector<1x8x128xf32>
    %205 = vector.shape_cast %204 : vector<1x8x128xf32> to vector<8x128xf32>
    %206 = vector.shape_cast %200 : vector<8x128xf32> to vector<1x8x128xf32>
    tpu.vector_store %arg6[%c5_63, %c0_64, %c0_65], %206 {strides = array<i32>} : memref<8x8x128xf32, #tpu.memory_space<vmem>>, vector<1x8x128xf32>,
    %c3 = arith.constant 3 : index
    %c0_66 = arith.constant 0 : index
    %c0_67 = arith.constant 0 : index
    %207 = vector.load %arg1[%c3, %c0_66, %c0_67] : memref<8x8x512xf32, #tpu.memory_space<vmem>>, vector<1x8x512xf32>
    %208 = vector.shape_cast %207 : vector<1x8x512xf32> to vector<8x512xf32>
    %209 = arith.truncf %170 : vector<8x128xf32> to vector<8x128xbf16>
    %cst_68 = arith.constant dense<0.000000e+00> : vector<8x512xf32>
    %210 = tpu.matmul %209, %3, %cst_68 {dimension_numbers = #tpu.dot_dimension_numbers<[1], [0], [0], [1], [0, 0, 1, 1], [], []>} : vector<8x128xbf16>, vector<128x512xbf16>, vector<8x512xf32> -> vector<8x512xf32>
    %211 = arith.addf %208, %210 : vector<8x512xf32>
    %212 = vector.extract_strided_slice %211 {offsets = [0, 0], sizes = [8, 128], strides = [1, 1]} : vector<8x512xf32> to vector<8x128xf32>
    %213 = arith.negf %212 : vector<8x128xf32>
    %214 = math.exp %213 : vector<8x128xf32>
    %cst_69 = arith.constant 1.000000e+00 : f32
    %215 = vector.broadcast %cst_69 : f32 to vector<8x128xf32>
    %216 = arith.addf %215, %214 : vector<8x128xf32>
    %217 = arith.divf %215, %216 : vector<8x128xf32>
    %218 = vector.extract_strided_slice %211 {offsets = [0, 128], sizes = [8, 128], strides = [1, 1]} : vector<8x512xf32> to vector<8x128xf32>
    %219 = arith.negf %218 : vector<8x128xf32>
    %220 = math.exp %219 : vector<8x128xf32>
    %cst_70 = arith.constant 1.000000e+00 : f32
    %221 = vector.broadcast %cst_70 : f32 to vector<8x128xf32>
    %222 = arith.addf %221, %220 : vector<8x128xf32>
    %223 = arith.divf %221, %222 : vector<8x128xf32>
    %224 = vector.extract_strided_slice %211 {offsets = [0, 256], sizes = [8, 128], strides = [1, 1]} : vector<8x512xf32> to vector<8x128xf32>
    %225 = math.tanh %224 : vector<8x128xf32>
    %226 = vector.extract_strided_slice %211 {offsets = [0, 384], sizes = [8, 128], strides = [1, 1]} : vector<8x512xf32> to vector<8x128xf32>
    %227 = arith.negf %226 : vector<8x128xf32>
    %228 = math.exp %227 : vector<8x128xf32>
    %cst_71 = arith.constant 1.000000e+00 : f32
    %229 = vector.broadcast %cst_71 : f32 to vector<8x128xf32>
    %230 = arith.addf %229, %228 : vector<8x128xf32>
    %231 = arith.divf %229, %230 : vector<8x128xf32>
    %232 = arith.mulf %223, %168 : vector<8x128xf32>
    %233 = arith.mulf %217, %225 : vector<8x128xf32>
    %234 = arith.addf %232, %233 : vector<8x128xf32>
    %235 = math.tanh %234 : vector<8x128xf32>
    %236 = arith.mulf %231, %235 : vector<8x128xf32>
    %c4 = arith.constant 4 : index
    %c0_72 = arith.constant 0 : index
    %c0_73 = arith.constant 0 : index
    %237 = vector.load %arg2[%c4, %c0_72, %c0_73] : memref<8x8x512xf32, #tpu.memory_space<vmem>>, vector<1x8x512xf32>
    %238 = vector.shape_cast %237 : vector<1x8x512xf32> to vector<8x512xf32>
    %239 = arith.truncf %200 : vector<8x128xf32> to vector<8x128xbf16>
    %cst_74 = arith.constant dense<0.000000e+00> : vector<8x512xf32>
    %240 = tpu.matmul %239, %4, %cst_74 {dimension_numbers = #tpu.dot_dimension_numbers<[1], [0], [0], [1], [0, 0, 1, 1], [], []>} : vector<8x128xbf16>, vector<128x512xbf16>, vector<8x512xf32> -> vector<8x512xf32>
    %241 = arith.addf %238, %240 : vector<8x512xf32>
    %242 = vector.extract_strided_slice %241 {offsets = [0, 0], sizes = [8, 128], strides = [1, 1]} : vector<8x512xf32> to vector<8x128xf32>
    %243 = arith.negf %242 : vector<8x128xf32>
    %244 = math.exp %243 : vector<8x128xf32>
    %cst_75 = arith.constant 1.000000e+00 : f32
    %245 = vector.broadcast %cst_75 : f32 to vector<8x128xf32>
    %246 = arith.addf %245, %244 : vector<8x128xf32>
    %247 = arith.divf %245, %246 : vector<8x128xf32>
    %248 = vector.extract_strided_slice %241 {offsets = [0, 128], sizes = [8, 128], strides = [1, 1]} : vector<8x512xf32> to vector<8x128xf32>
    %249 = arith.negf %248 : vector<8x128xf32>
    %250 = math.exp %249 : vector<8x128xf32>
    %cst_76 = arith.constant 1.000000e+00 : f32
    %251 = vector.broadcast %cst_76 : f32 to vector<8x128xf32>
    %252 = arith.addf %251, %250 : vector<8x128xf32>
    %253 = arith.divf %251, %252 : vector<8x128xf32>
    %254 = vector.extract_strided_slice %241 {offsets = [0, 256], sizes = [8, 128], strides = [1, 1]} : vector<8x512xf32> to vector<8x128xf32>
    %255 = math.tanh %254 : vector<8x128xf32>
    %256 = vector.extract_strided_slice %241 {offsets = [0, 384], sizes = [8, 128], strides = [1, 1]} : vector<8x512xf32> to vector<8x128xf32>
    %257 = arith.negf %256 : vector<8x128xf32>
    %258 = math.exp %257 : vector<8x128xf32>
    %cst_77 = arith.constant 1.000000e+00 : f32
    %259 = vector.broadcast %cst_77 : f32 to vector<8x128xf32>
    %260 = arith.addf %259, %258 : vector<8x128xf32>
    %261 = arith.divf %259, %260 : vector<8x128xf32>
    %262 = arith.mulf %253, %198 : vector<8x128xf32>
    %263 = arith.mulf %247, %255 : vector<8x128xf32>
    %264 = arith.addf %262, %263 : vector<8x128xf32>
    %265 = math.tanh %264 : vector<8x128xf32>
    %266 = arith.mulf %261, %265 : vector<8x128xf32>
    %c3_78 = arith.constant 3 : index
    %c0_79 = arith.constant 0 : index
    %c0_80 = arith.constant 0 : index
    %267 = vector.load %arg5[%c3_78, %c0_79, %c0_80] : memref<8x8x128xf32, #tpu.memory_space<vmem>>, vector<1x8x128xf32>
    %268 = vector.shape_cast %267 : vector<1x8x128xf32> to vector<8x128xf32>
    %269 = vector.shape_cast %236 : vector<8x128xf32> to vector<1x8x128xf32>
    tpu.vector_store %arg5[%c3_78, %c0_79, %c0_80], %269 {strides = array<i32>} : memref<8x8x128xf32, #tpu.memory_space<vmem>>, vector<1x8x128xf32>,
    %c4_81 = arith.constant 4 : index
    %c0_82 = arith.constant 0 : index
    %c0_83 = arith.constant 0 : index
    %270 = vector.load %arg6[%c4_81, %c0_82, %c0_83] : memref<8x8x128xf32, #tpu.memory_space<vmem>>, vector<1x8x128xf32>
    %271 = vector.shape_cast %270 : vector<1x8x128xf32> to vector<8x128xf32>
    %272 = vector.shape_cast %266 : vector<8x128xf32> to vector<1x8x128xf32>
    tpu.vector_store %arg6[%c4_81, %c0_82, %c0_83], %272 {strides = array<i32>} : memref<8x8x128xf32, #tpu.memory_space<vmem>>, vector<1x8x128xf32>,
    %c4_84 = arith.constant 4 : index
    %c0_85 = arith.constant 0 : index
    %c0_86 = arith.constant 0 : index
    %273 = vector.load %arg1[%c4_84, %c0_85, %c0_86] : memref<8x8x512xf32, #tpu.memory_space<vmem>>, vector<1x8x512xf32>
    %274 = vector.shape_cast %273 : vector<1x8x512xf32> to vector<8x512xf32>
    %275 = arith.truncf %236 : vector<8x128xf32> to vector<8x128xbf16>
    %cst_87 = arith.constant dense<0.000000e+00> : vector<8x512xf32>
    %276 = tpu.matmul %275, %3, %cst_87 {dimension_numbers = #tpu.dot_dimension_numbers<[1], [0], [0], [1], [0, 0, 1, 1], [], []>} : vector<8x128xbf16>, vector<128x512xbf16>, vector<8x512xf32> -> vector<8x512xf32>
    %277 = arith.addf %274, %276 : vector<8x512xf32>
    %278 = vector.extract_strided_slice %277 {offsets = [0, 0], sizes = [8, 128], strides = [1, 1]} : vector<8x512xf32> to vector<8x128xf32>
    %279 = arith.negf %278 : vector<8x128xf32>
    %280 = math.exp %279 : vector<8x128xf32>
    %cst_88 = arith.constant 1.000000e+00 : f32
    %281 = vector.broadcast %cst_88 : f32 to vector<8x128xf32>
    %282 = arith.addf %281, %280 : vector<8x128xf32>
    %283 = arith.divf %281, %282 : vector<8x128xf32>
    %284 = vector.extract_strided_slice %277 {offsets = [0, 128], sizes = [8, 128], strides = [1, 1]} : vector<8x512xf32> to vector<8x128xf32>
    %285 = arith.negf %284 : vector<8x128xf32>
    %286 = math.exp %285 : vector<8x128xf32>
    %cst_89 = arith.constant 1.000000e+00 : f32
    %287 = vector.broadcast %cst_89 : f32 to vector<8x128xf32>
    %288 = arith.addf %287, %286 : vector<8x128xf32>
    %289 = arith.divf %287, %288 : vector<8x128xf32>
    %290 = vector.extract_strided_slice %277 {offsets = [0, 256], sizes = [8, 128], strides = [1, 1]} : vector<8x512xf32> to vector<8x128xf32>
    %291 = math.tanh %290 : vector<8x128xf32>
    %292 = vector.extract_strided_slice %277 {offsets = [0, 384], sizes = [8, 128], strides = [1, 1]} : vector<8x512xf32> to vector<8x128xf32>
    %293 = arith.negf %292 : vector<8x128xf32>
    %294 = math.exp %293 : vector<8x128xf32>
    %cst_90 = arith.constant 1.000000e+00 : f32
    %295 = vector.broadcast %cst_90 : f32 to vector<8x128xf32>
    %296 = arith.addf %295, %294 : vector<8x128xf32>
    %297 = arith.divf %295, %296 : vector<8x128xf32>
    %298 = arith.mulf %289, %234 : vector<8x128xf32>
    %299 = arith.mulf %283, %291 : vector<8x128xf32>
    %300 = arith.addf %298, %299 : vector<8x128xf32>
    %301 = math.tanh %300 : vector<8x128xf32>
    %302 = arith.mulf %297, %301 : vector<8x128xf32>
    %c3_91 = arith.constant 3 : index
    %c0_92 = arith.constant 0 : index
    %c0_93 = arith.constant 0 : index
    %303 = vector.load %arg2[%c3_91, %c0_92, %c0_93] : memref<8x8x512xf32, #tpu.memory_space<vmem>>, vector<1x8x512xf32>
    %304 = vector.shape_cast %303 : vector<1x8x512xf32> to vector<8x512xf32>
    %305 = arith.truncf %266 : vector<8x128xf32> to vector<8x128xbf16>
    %cst_94 = arith.constant dense<0.000000e+00> : vector<8x512xf32>
    %306 = tpu.matmul %305, %4, %cst_94 {dimension_numbers = #tpu.dot_dimension_numbers<[1], [0], [0], [1], [0, 0, 1, 1], [], []>} : vector<8x128xbf16>, vector<128x512xbf16>, vector<8x512xf32> -> vector<8x512xf32>
    %307 = arith.addf %304, %306 : vector<8x512xf32>
    %308 = vector.extract_strided_slice %307 {offsets = [0, 0], sizes = [8, 128], strides = [1, 1]} : vector<8x512xf32> to vector<8x128xf32>
    %309 = arith.negf %308 : vector<8x128xf32>
    %310 = math.exp %309 : vector<8x128xf32>
    %cst_95 = arith.constant 1.000000e+00 : f32
    %311 = vector.broadcast %cst_95 : f32 to vector<8x128xf32>
    %312 = arith.addf %311, %310 : vector<8x128xf32>
    %313 = arith.divf %311, %312 : vector<8x128xf32>
    %314 = vector.extract_strided_slice %307 {offsets = [0, 128], sizes = [8, 128], strides = [1, 1]} : vector<8x512xf32> to vector<8x128xf32>
    %315 = arith.negf %314 : vector<8x128xf32>
    %316 = math.exp %315 : vector<8x128xf32>
    %cst_96 = arith.constant 1.000000e+00 : f32
    %317 = vector.broadcast %cst_96 : f32 to vector<8x128xf32>
    %318 = arith.addf %317, %316 : vector<8x128xf32>
    %319 = arith.divf %317, %318 : vector<8x128xf32>
    %320 = vector.extract_strided_slice %307 {offsets = [0, 256], sizes = [8, 128], strides = [1, 1]} : vector<8x512xf32> to vector<8x128xf32>
    %321 = math.tanh %320 : vector<8x128xf32>
    %322 = vector.extract_strided_slice %307 {offsets = [0, 384], sizes = [8, 128], strides = [1, 1]} : vector<8x512xf32> to vector<8x128xf32>
    %323 = arith.negf %322 : vector<8x128xf32>
    %324 = math.exp %323 : vector<8x128xf32>
    %cst_97 = arith.constant 1.000000e+00 : f32
    %325 = vector.broadcast %cst_97 : f32 to vector<8x128xf32>
    %326 = arith.addf %325, %324 : vector<8x128xf32>
    %327 = arith.divf %325, %326 : vector<8x128xf32>
    %328 = arith.mulf %319, %264 : vector<8x128xf32>
    %329 = arith.mulf %313, %321 : vector<8x128xf32>
    %330 = arith.addf %328, %329 : vector<8x128xf32>
    %331 = math.tanh %330 : vector<8x128xf32>
    %332 = arith.mulf %327, %331 : vector<8x128xf32>
    %c4_98 = arith.constant 4 : index
    %c0_99 = arith.constant 0 : index
    %c0_100 = arith.constant 0 : index
    %333 = vector.load %arg5[%c4_98, %c0_99, %c0_100] : memref<8x8x128xf32, #tpu.memory_space<vmem>>, vector<1x8x128xf32>
    %334 = vector.shape_cast %333 : vector<1x8x128xf32> to vector<8x128xf32>
    %335 = vector.shape_cast %302 : vector<8x128xf32> to vector<1x8x128xf32>
    tpu.vector_store %arg5[%c4_98, %c0_99, %c0_100], %335 {strides = array<i32>} : memref<8x8x128xf32, #tpu.memory_space<vmem>>, vector<1x8x128xf32>,
    %c3_101 = arith.constant 3 : index
    %c0_102 = arith.constant 0 : index
    %c0_103 = arith.constant 0 : index
    %336 = vector.load %arg6[%c3_101, %c0_102, %c0_103] : memref<8x8x128xf32, #tpu.memory_space<vmem>>, vector<1x8x128xf32>
    %337 = vector.shape_cast %336 : vector<1x8x128xf32> to vector<8x128xf32>
    %338 = vector.shape_cast %332 : vector<8x128xf32> to vector<1x8x128xf32>
    tpu.vector_store %arg6[%c3_101, %c0_102, %c0_103], %338 {strides = array<i32>} : memref<8x8x128xf32, #tpu.memory_space<vmem>>, vector<1x8x128xf32>,
    %c5_104 = arith.constant 5 : index
    %c0_105 = arith.constant 0 : index
    %c0_106 = arith.constant 0 : index
    %339 = vector.load %arg1[%c5_104, %c0_105, %c0_106] : memref<8x8x512xf32, #tpu.memory_space<vmem>>, vector<1x8x512xf32>
    %340 = vector.shape_cast %339 : vector<1x8x512xf32> to vector<8x512xf32>
    %341 = arith.truncf %302 : vector<8x128xf32> to vector<8x128xbf16>
    %cst_107 = arith.constant dense<0.000000e+00> : vector<8x512xf32>
    %342 = tpu.matmul %341, %3, %cst_107 {dimension_numbers = #tpu.dot_dimension_numbers<[1], [0], [0], [1], [0, 0, 1, 1], [], []>} : vector<8x128xbf16>, vector<128x512xbf16>, vector<8x512xf32> -> vector<8x512xf32>
    %343 = arith.addf %340, %342 : vector<8x512xf32>
    %344 = vector.extract_strided_slice %343 {offsets = [0, 0], sizes = [8, 128], strides = [1, 1]} : vector<8x512xf32> to vector<8x128xf32>
    %345 = arith.negf %344 : vector<8x128xf32>
    %346 = math.exp %345 : vector<8x128xf32>
    %cst_108 = arith.constant 1.000000e+00 : f32
    %347 = vector.broadcast %cst_108 : f32 to vector<8x128xf32>
    %348 = arith.addf %347, %346 : vector<8x128xf32>
    %349 = arith.divf %347, %348 : vector<8x128xf32>
    %350 = vector.extract_strided_slice %343 {offsets = [0, 128], sizes = [8, 128], strides = [1, 1]} : vector<8x512xf32> to vector<8x128xf32>
    %351 = arith.negf %350 : vector<8x128xf32>
    %352 = math.exp %351 : vector<8x128xf32>
    %cst_109 = arith.constant 1.000000e+00 : f32
    %353 = vector.broadcast %cst_109 : f32 to vector<8x128xf32>
    %354 = arith.addf %353, %352 : vector<8x128xf32>
    %355 = arith.divf %353, %354 : vector<8x128xf32>
    %356 = vector.extract_strided_slice %343 {offsets = [0, 256], sizes = [8, 128], strides = [1, 1]} : vector<8x512xf32> to vector<8x128xf32>
    %357 = math.tanh %356 : vector<8x128xf32>
    %358 = vector.extract_strided_slice %343 {offsets = [0, 384], sizes = [8, 128], strides = [1, 1]} : vector<8x512xf32> to vector<8x128xf32>
    %359 = arith.negf %358 : vector<8x128xf32>
    %360 = math.exp %359 : vector<8x128xf32>
    %cst_110 = arith.constant 1.000000e+00 : f32
    %361 = vector.broadcast %cst_110 : f32 to vector<8x128xf32>
    %362 = arith.addf %361, %360 : vector<8x128xf32>
    %363 = arith.divf %361, %362 : vector<8x128xf32>
    %364 = arith.mulf %355, %300 : vector<8x128xf32>
    %365 = arith.mulf %349, %357 : vector<8x128xf32>
    %366 = arith.addf %364, %365 : vector<8x128xf32>
    %367 = math.tanh %366 : vector<8x128xf32>
    %368 = arith.mulf %363, %367 : vector<8x128xf32>
    %c2_111 = arith.constant 2 : index
    %c0_112 = arith.constant 0 : index
    %c0_113 = arith.constant 0 : index
    %369 = vector.load %arg2[%c2_111, %c0_112, %c0_113] : memref<8x8x512xf32, #tpu.memory_space<vmem>>, vector<1x8x512xf32>
    %370 = vector.shape_cast %369 : vector<1x8x512xf32> to vector<8x512xf32>
    %371 = arith.truncf %332 : vector<8x128xf32> to vector<8x128xbf16>
    %cst_114 = arith.constant dense<0.000000e+00> : vector<8x512xf32>
    %372 = tpu.matmul %371, %4, %cst_114 {dimension_numbers = #tpu.dot_dimension_numbers<[1], [0], [0], [1], [0, 0, 1, 1], [], []>} : vector<8x128xbf16>, vector<128x512xbf16>, vector<8x512xf32> -> vector<8x512xf32>
    %373 = arith.addf %370, %372 : vector<8x512xf32>
    %374 = vector.extract_strided_slice %373 {offsets = [0, 0], sizes = [8, 128], strides = [1, 1]} : vector<8x512xf32> to vector<8x128xf32>
    %375 = arith.negf %374 : vector<8x128xf32>
    %376 = math.exp %375 : vector<8x128xf32>
    %cst_115 = arith.constant 1.000000e+00 : f32
    %377 = vector.broadcast %cst_115 : f32 to vector<8x128xf32>
    %378 = arith.addf %377, %376 : vector<8x128xf32>
    %379 = arith.divf %377, %378 : vector<8x128xf32>
    %380 = vector.extract_strided_slice %373 {offsets = [0, 128], sizes = [8, 128], strides = [1, 1]} : vector<8x512xf32> to vector<8x128xf32>
    %381 = arith.negf %380 : vector<8x128xf32>
    %382 = math.exp %381 : vector<8x128xf32>
    %cst_116 = arith.constant 1.000000e+00 : f32
    %383 = vector.broadcast %cst_116 : f32 to vector<8x128xf32>
    %384 = arith.addf %383, %382 : vector<8x128xf32>
    %385 = arith.divf %383, %384 : vector<8x128xf32>
    %386 = vector.extract_strided_slice %373 {offsets = [0, 256], sizes = [8, 128], strides = [1, 1]} : vector<8x512xf32> to vector<8x128xf32>
    %387 = math.tanh %386 : vector<8x128xf32>
    %388 = vector.extract_strided_slice %373 {offsets = [0, 384], sizes = [8, 128], strides = [1, 1]} : vector<8x512xf32> to vector<8x128xf32>
    %389 = arith.negf %388 : vector<8x128xf32>
    %390 = math.exp %389 : vector<8x128xf32>
    %cst_117 = arith.constant 1.000000e+00 : f32
    %391 = vector.broadcast %cst_117 : f32 to vector<8x128xf32>
    %392 = arith.addf %391, %390 : vector<8x128xf32>
    %393 = arith.divf %391, %392 : vector<8x128xf32>
    %394 = arith.mulf %385, %330 : vector<8x128xf32>
    %395 = arith.mulf %379, %387 : vector<8x128xf32>
    %396 = arith.addf %394, %395 : vector<8x128xf32>
    %397 = math.tanh %396 : vector<8x128xf32>
    %398 = arith.mulf %393, %397 : vector<8x128xf32>
    %c5_118 = arith.constant 5 : index
    %c0_119 = arith.constant 0 : index
    %c0_120 = arith.constant 0 : index
    %399 = vector.load %arg5[%c5_118, %c0_119, %c0_120] : memref<8x8x128xf32, #tpu.memory_space<vmem>>, vector<1x8x128xf32>
    %400 = vector.shape_cast %399 : vector<1x8x128xf32> to vector<8x128xf32>
    %401 = vector.shape_cast %368 : vector<8x128xf32> to vector<1x8x128xf32>
    tpu.vector_store %arg5[%c5_118, %c0_119, %c0_120], %401 {strides = array<i32>} : memref<8x8x128xf32, #tpu.memory_space<vmem>>, vector<1x8x128xf32>,
    %c2_121 = arith.constant 2 : index
    %c0_122 = arith.constant 0 : index
    %c0_123 = arith.constant 0 : index
    %402 = vector.load %arg6[%c2_121, %c0_122, %c0_123] : memref<8x8x128xf32, #tpu.memory_space<vmem>>, vector<1x8x128xf32>
    %403 = vector.shape_cast %402 : vector<1x8x128xf32> to vector<8x128xf32>
    %404 = vector.shape_cast %398 : vector<8x128xf32> to vector<1x8x128xf32>
    tpu.vector_store %arg6[%c2_121, %c0_122, %c0_123], %404 {strides = array<i32>} : memref<8x8x128xf32, #tpu.memory_space<vmem>>, vector<1x8x128xf32>,
    %c6_124 = arith.constant 6 : index
    %c0_125 = arith.constant 0 : index
    %c0_126 = arith.constant 0 : index
    %405 = vector.load %arg1[%c6_124, %c0_125, %c0_126] : memref<8x8x512xf32, #tpu.memory_space<vmem>>, vector<1x8x512xf32>
    %406 = vector.shape_cast %405 : vector<1x8x512xf32> to vector<8x512xf32>
    %407 = arith.truncf %368 : vector<8x128xf32> to vector<8x128xbf16>
    %cst_127 = arith.constant dense<0.000000e+00> : vector<8x512xf32>
    %408 = tpu.matmul %407, %3, %cst_127 {dimension_numbers = #tpu.dot_dimension_numbers<[1], [0], [0], [1], [0, 0, 1, 1], [], []>} : vector<8x128xbf16>, vector<128x512xbf16>, vector<8x512xf32> -> vector<8x512xf32>
    %409 = arith.addf %406, %408 : vector<8x512xf32>
    %410 = vector.extract_strided_slice %409 {offsets = [0, 0], sizes = [8, 128], strides = [1, 1]} : vector<8x512xf32> to vector<8x128xf32>
    %411 = arith.negf %410 : vector<8x128xf32>
    %412 = math.exp %411 : vector<8x128xf32>
    %cst_128 = arith.constant 1.000000e+00 : f32
    %413 = vector.broadcast %cst_128 : f32 to vector<8x128xf32>
    %414 = arith.addf %413, %412 : vector<8x128xf32>
    %415 = arith.divf %413, %414 : vector<8x128xf32>
    %416 = vector.extract_strided_slice %409 {offsets = [0, 128], sizes = [8, 128], strides = [1, 1]} : vector<8x512xf32> to vector<8x128xf32>
    %417 = arith.negf %416 : vector<8x128xf32>
    %418 = math.exp %417 : vector<8x128xf32>
    %cst_129 = arith.constant 1.000000e+00 : f32
    %419 = vector.broadcast %cst_129 : f32 to vector<8x128xf32>
    %420 = arith.addf %419, %418 : vector<8x128xf32>
    %421 = arith.divf %419, %420 : vector<8x128xf32>
    %422 = vector.extract_strided_slice %409 {offsets = [0, 256], sizes = [8, 128], strides = [1, 1]} : vector<8x512xf32> to vector<8x128xf32>
    %423 = math.tanh %422 : vector<8x128xf32>
    %424 = vector.extract_strided_slice %409 {offsets = [0, 384], sizes = [8, 128], strides = [1, 1]} : vector<8x512xf32> to vector<8x128xf32>
    %425 = arith.negf %424 : vector<8x128xf32>
    %426 = math.exp %425 : vector<8x128xf32>
    %cst_130 = arith.constant 1.000000e+00 : f32
    %427 = vector.broadcast %cst_130 : f32 to vector<8x128xf32>
    %428 = arith.addf %427, %426 : vector<8x128xf32>
    %429 = arith.divf %427, %428 : vector<8x128xf32>
    %430 = arith.mulf %421, %366 : vector<8x128xf32>
    %431 = arith.mulf %415, %423 : vector<8x128xf32>
    %432 = arith.addf %430, %431 : vector<8x128xf32>
    %433 = math.tanh %432 : vector<8x128xf32>
    %434 = arith.mulf %429, %433 : vector<8x128xf32>
    %c1_131 = arith.constant 1 : index
    %c0_132 = arith.constant 0 : index
    %c0_133 = arith.constant 0 : index
    %435 = vector.load %arg2[%c1_131, %c0_132, %c0_133] : memref<8x8x512xf32, #tpu.memory_space<vmem>>, vector<1x8x512xf32>
    %436 = vector.shape_cast %435 : vector<1x8x512xf32> to vector<8x512xf32>
    %437 = arith.truncf %398 : vector<8x128xf32> to vector<8x128xbf16>
    %cst_134 = arith.constant dense<0.000000e+00> : vector<8x512xf32>
    %438 = tpu.matmul %437, %4, %cst_134 {dimension_numbers = #tpu.dot_dimension_numbers<[1], [0], [0], [1], [0, 0, 1, 1], [], []>} : vector<8x128xbf16>, vector<128x512xbf16>, vector<8x512xf32> -> vector<8x512xf32>
    %439 = arith.addf %436, %438 : vector<8x512xf32>
    %440 = vector.extract_strided_slice %439 {offsets = [0, 0], sizes = [8, 128], strides = [1, 1]} : vector<8x512xf32> to vector<8x128xf32>
    %441 = arith.negf %440 : vector<8x128xf32>
    %442 = math.exp %441 : vector<8x128xf32>
    %cst_135 = arith.constant 1.000000e+00 : f32
    %443 = vector.broadcast %cst_135 : f32 to vector<8x128xf32>
    %444 = arith.addf %443, %442 : vector<8x128xf32>
    %445 = arith.divf %443, %444 : vector<8x128xf32>
    %446 = vector.extract_strided_slice %439 {offsets = [0, 128], sizes = [8, 128], strides = [1, 1]} : vector<8x512xf32> to vector<8x128xf32>
    %447 = arith.negf %446 : vector<8x128xf32>
    %448 = math.exp %447 : vector<8x128xf32>
    %cst_136 = arith.constant 1.000000e+00 : f32
    %449 = vector.broadcast %cst_136 : f32 to vector<8x128xf32>
    %450 = arith.addf %449, %448 : vector<8x128xf32>
    %451 = arith.divf %449, %450 : vector<8x128xf32>
    %452 = vector.extract_strided_slice %439 {offsets = [0, 256], sizes = [8, 128], strides = [1, 1]} : vector<8x512xf32> to vector<8x128xf32>
    %453 = math.tanh %452 : vector<8x128xf32>
    %454 = vector.extract_strided_slice %439 {offsets = [0, 384], sizes = [8, 128], strides = [1, 1]} : vector<8x512xf32> to vector<8x128xf32>
    %455 = arith.negf %454 : vector<8x128xf32>
    %456 = math.exp %455 : vector<8x128xf32>
    %cst_137 = arith.constant 1.000000e+00 : f32
    %457 = vector.broadcast %cst_137 : f32 to vector<8x128xf32>
    %458 = arith.addf %457, %456 : vector<8x128xf32>
    %459 = arith.divf %457, %458 : vector<8x128xf32>
    %460 = arith.mulf %451, %396 : vector<8x128xf32>
    %461 = arith.mulf %445, %453 : vector<8x128xf32>
    %462 = arith.addf %460, %461 : vector<8x128xf32>
    %463 = math.tanh %462 : vector<8x128xf32>
    %464 = arith.mulf %459, %463 : vector<8x128xf32>
    %c6_138 = arith.constant 6 : index
    %c0_139 = arith.constant 0 : index
    %c0_140 = arith.constant 0 : index
    %465 = vector.load %arg5[%c6_138, %c0_139, %c0_140] : memref<8x8x128xf32, #tpu.memory_space<vmem>>, vector<1x8x128xf32>
    %466 = vector.shape_cast %465 : vector<1x8x128xf32> to vector<8x128xf32>
    %467 = vector.shape_cast %434 : vector<8x128xf32> to vector<1x8x128xf32>
    tpu.vector_store %arg5[%c6_138, %c0_139, %c0_140], %467 {strides = array<i32>} : memref<8x8x128xf32, #tpu.memory_space<vmem>>, vector<1x8x128xf32>,
    %c1_141 = arith.constant 1 : index
    %c0_142 = arith.constant 0 : index
    %c0_143 = arith.constant 0 : index
    %468 = vector.load %arg6[%c1_141, %c0_142, %c0_143] : memref<8x8x128xf32, #tpu.memory_space<vmem>>, vector<1x8x128xf32>
    %469 = vector.shape_cast %468 : vector<1x8x128xf32> to vector<8x128xf32>
    %470 = vector.shape_cast %464 : vector<8x128xf32> to vector<1x8x128xf32>
    tpu.vector_store %arg6[%c1_141, %c0_142, %c0_143], %470 {strides = array<i32>} : memref<8x8x128xf32, #tpu.memory_space<vmem>>, vector<1x8x128xf32>,
    %c7_144 = arith.constant 7 : index
    %c0_145 = arith.constant 0 : index
    %c0_146 = arith.constant 0 : index
    %471 = vector.load %arg1[%c7_144, %c0_145, %c0_146] : memref<8x8x512xf32, #tpu.memory_space<vmem>>, vector<1x8x512xf32>
    %472 = vector.shape_cast %471 : vector<1x8x512xf32> to vector<8x512xf32>
    %473 = arith.truncf %434 : vector<8x128xf32> to vector<8x128xbf16>
    %cst_147 = arith.constant dense<0.000000e+00> : vector<8x512xf32>
    %474 = tpu.matmul %473, %3, %cst_147 {dimension_numbers = #tpu.dot_dimension_numbers<[1], [0], [0], [1], [0, 0, 1, 1], [], []>} : vector<8x128xbf16>, vector<128x512xbf16>, vector<8x512xf32> -> vector<8x512xf32>
    %475 = arith.addf %472, %474 : vector<8x512xf32>
    %476 = vector.extract_strided_slice %475 {offsets = [0, 0], sizes = [8, 128], strides = [1, 1]} : vector<8x512xf32> to vector<8x128xf32>
    %477 = arith.negf %476 : vector<8x128xf32>
    %478 = math.exp %477 : vector<8x128xf32>
    %cst_148 = arith.constant 1.000000e+00 : f32
    %479 = vector.broadcast %cst_148 : f32 to vector<8x128xf32>
    %480 = arith.addf %479, %478 : vector<8x128xf32>
    %481 = arith.divf %479, %480 : vector<8x128xf32>
    %482 = vector.extract_strided_slice %475 {offsets = [0, 128], sizes = [8, 128], strides = [1, 1]} : vector<8x512xf32> to vector<8x128xf32>
    %483 = arith.negf %482 : vector<8x128xf32>
    %484 = math.exp %483 : vector<8x128xf32>
    %cst_149 = arith.constant 1.000000e+00 : f32
    %485 = vector.broadcast %cst_149 : f32 to vector<8x128xf32>
    %486 = arith.addf %485, %484 : vector<8x128xf32>
    %487 = arith.divf %485, %486 : vector<8x128xf32>
    %488 = vector.extract_strided_slice %475 {offsets = [0, 256], sizes = [8, 128], strides = [1, 1]} : vector<8x512xf32> to vector<8x128xf32>
    %489 = math.tanh %488 : vector<8x128xf32>
    %490 = vector.extract_strided_slice %475 {offsets = [0, 384], sizes = [8, 128], strides = [1, 1]} : vector<8x512xf32> to vector<8x128xf32>
    %491 = arith.negf %490 : vector<8x128xf32>
    %492 = math.exp %491 : vector<8x128xf32>
    %cst_150 = arith.constant 1.000000e+00 : f32
    %493 = vector.broadcast %cst_150 : f32 to vector<8x128xf32>
    %494 = arith.addf %493, %492 : vector<8x128xf32>
    %495 = arith.divf %493, %494 : vector<8x128xf32>
    %496 = arith.mulf %487, %432 : vector<8x128xf32>
    %497 = arith.mulf %481, %489 : vector<8x128xf32>
    %498 = arith.addf %496, %497 : vector<8x128xf32>
    %499 = math.tanh %498 : vector<8x128xf32>
    %500 = arith.mulf %495, %499 : vector<8x128xf32>
    %c0_151 = arith.constant 0 : index
    %c0_152 = arith.constant 0 : index
    %c0_153 = arith.constant 0 : index
    %501 = vector.load %arg2[%c0_151, %c0_152, %c0_153] : memref<8x8x512xf32, #tpu.memory_space<vmem>>, vector<1x8x512xf32>
    %502 = vector.shape_cast %501 : vector<1x8x512xf32> to vector<8x512xf32>
    %503 = arith.truncf %464 : vector<8x128xf32> to vector<8x128xbf16>
    %cst_154 = arith.constant dense<0.000000e+00> : vector<8x512xf32>
    %504 = tpu.matmul %503, %4, %cst_154 {dimension_numbers = #tpu.dot_dimension_numbers<[1], [0], [0], [1], [0, 0, 1, 1], [], []>} : vector<8x128xbf16>, vector<128x512xbf16>, vector<8x512xf32> -> vector<8x512xf32>
    %505 = arith.addf %502, %504 : vector<8x512xf32>
    %506 = vector.extract_strided_slice %505 {offsets = [0, 0], sizes = [8, 128], strides = [1, 1]} : vector<8x512xf32> to vector<8x128xf32>
    %507 = arith.negf %506 : vector<8x128xf32>
    %508 = math.exp %507 : vector<8x128xf32>
    %cst_155 = arith.constant 1.000000e+00 : f32
    %509 = vector.broadcast %cst_155 : f32 to vector<8x128xf32>
    %510 = arith.addf %509, %508 : vector<8x128xf32>
    %511 = arith.divf %509, %510 : vector<8x128xf32>
    %512 = vector.extract_strided_slice %505 {offsets = [0, 128], sizes = [8, 128], strides = [1, 1]} : vector<8x512xf32> to vector<8x128xf32>
    %513 = arith.negf %512 : vector<8x128xf32>
    %514 = math.exp %513 : vector<8x128xf32>
    %cst_156 = arith.constant 1.000000e+00 : f32
    %515 = vector.broadcast %cst_156 : f32 to vector<8x128xf32>
    %516 = arith.addf %515, %514 : vector<8x128xf32>
    %517 = arith.divf %515, %516 : vector<8x128xf32>
    %518 = vector.extract_strided_slice %505 {offsets = [0, 256], sizes = [8, 128], strides = [1, 1]} : vector<8x512xf32> to vector<8x128xf32>
    %519 = math.tanh %518 : vector<8x128xf32>
    %520 = vector.extract_strided_slice %505 {offsets = [0, 384], sizes = [8, 128], strides = [1, 1]} : vector<8x512xf32> to vector<8x128xf32>
    %521 = arith.negf %520 : vector<8x128xf32>
    %522 = math.exp %521 : vector<8x128xf32>
    %cst_157 = arith.constant 1.000000e+00 : f32
    %523 = vector.broadcast %cst_157 : f32 to vector<8x128xf32>
    %524 = arith.addf %523, %522 : vector<8x128xf32>
    %525 = arith.divf %523, %524 : vector<8x128xf32>
    %526 = arith.mulf %517, %462 : vector<8x128xf32>
    %527 = arith.mulf %511, %519 : vector<8x128xf32>
    %528 = arith.addf %526, %527 : vector<8x128xf32>
    %529 = math.tanh %528 : vector<8x128xf32>
    %530 = arith.mulf %525, %529 : vector<8x128xf32>
    %c7_158 = arith.constant 7 : index
    %c0_159 = arith.constant 0 : index
    %c0_160 = arith.constant 0 : index
    %531 = vector.load %arg5[%c7_158, %c0_159, %c0_160] : memref<8x8x128xf32, #tpu.memory_space<vmem>>, vector<1x8x128xf32>
    %532 = vector.shape_cast %531 : vector<1x8x128xf32> to vector<8x128xf32>
    %533 = vector.shape_cast %500 : vector<8x128xf32> to vector<1x8x128xf32>
    tpu.vector_store %arg5[%c7_158, %c0_159, %c0_160], %533 {strides = array<i32>} : memref<8x8x128xf32, #tpu.memory_space<vmem>>, vector<1x8x128xf32>,
    %c0_161 = arith.constant 0 : index
    %c0_162 = arith.constant 0 : index
    %c0_163 = arith.constant 0 : index
    %534 = vector.load %arg6[%c0_161, %c0_162, %c0_163] : memref<8x8x128xf32, #tpu.memory_space<vmem>>, vector<1x8x128xf32>
    %535 = vector.shape_cast %534 : vector<1x8x128xf32> to vector<8x128xf32>
    %536 = vector.shape_cast %530 : vector<8x128xf32> to vector<1x8x128xf32>
    tpu.vector_store %arg6[%c0_161, %c0_162, %c0_163], %536 {strides = array<i32>} : memref<8x8x128xf32, #tpu.memory_space<vmem>>, vector<1x8x128xf32>,
    %c0_164 = arith.constant 0 : index
    %c0_165 = arith.constant 0 : index
    %537 = vector.load %arg7[%c0_164, %c0_165] : memref<8x128xf32, #tpu.memory_space<vmem>>, vector<8x128xf32>
    tpu.vector_store %arg7[%c0_164, %c0_165], %500 {strides = array<i32>} : memref<8x128xf32, #tpu.memory_space<vmem>>, vector<8x128xf32>,
    %c0_166 = arith.constant 0 : index
    %c0_167 = arith.constant 0 : index
    %538 = vector.load %arg8[%c0_166, %c0_167] : memref<8x128xf32, #tpu.memory_space<vmem>>, vector<8x128xf32>
    tpu.vector_store %arg8[%c0_166, %c0_167], %498 {strides = array<i32>} : memref<8x128xf32, #tpu.memory_space<vmem>>, vector<8x128xf32>,
    %c0_168 = arith.constant 0 : index
    %c0_169 = arith.constant 0 : index
    %539 = vector.load %arg9[%c0_168, %c0_169] : memref<8x128xf32, #tpu.memory_space<vmem>>, vector<8x128xf32>
    tpu.vector_store %arg9[%c0_168, %c0_169], %530 {strides = array<i32>} : memref<8x128xf32, #tpu.memory_space<vmem>>, vector<8x128xf32>,
    %c0_170 = arith.constant 0 : index
    %c0_171 = arith.constant 0 : index
    %540 = vector.load %arg10[%c0_170, %c0_171] : memref<8x128xf32, #tpu.memory_space<vmem>>, vector<8x128xf32>
    tpu.vector_store %arg10[%c0_170, %c0_171], %528 {strides = array<i32>} : memref<8x128xf32, #tpu.memory_space<vmem>>, vector<8x128xf32>,
    return
  }
  func.func @transform_0(%arg0: i32) -> (i32, i32, i32) {
    %c0_i32 = arith.constant 0 : i32
    %c0_i32_0 = arith.constant 0 : i32
    %c0_i32_1 = arith.constant 0 : i32
    return %arg0, %c0_i32, %c0_i32_0 : i32, i32, i32
  }
  func.func @transform_1(%arg0: i32) -> (i32, i32, i32) {
    %c0_i32 = arith.constant 0 : i32
    %0 = arith.subi %c0_i32, %arg0 : i32
    %c0_i32_0 = arith.constant 0 : i32
    %c0_i32_1 = arith.constant 0 : i32
    %c0_i32_2 = arith.constant 0 : i32
    return %0, %c0_i32_0, %c0_i32_1 : i32, i32, i32
  }
  func.func @transform_2(%arg0: i32) -> (i32, i32) {
    %c0_i32 = arith.constant 0 : i32
    %c0_i32_0 = arith.constant 0 : i32
    %c0_i32_1 = arith.constant 0 : i32
    return %c0_i32, %c0_i32_0 : i32, i32
  }
  func.func @transform_3(%arg0: i32) -> (i32, i32) {
    %c0_i32 = arith.constant 0 : i32
    %c0_i32_0 = arith.constant 0 : i32
    %c0_i32_1 = arith.constant 0 : i32
    return %c0_i32, %c0_i32_0 : i32, i32
  }
  func.func @transform_4(%arg0: i32) -> (i32, i32, i32) {
    %c0_i32 = arith.constant 0 : i32
    %c0_i32_0 = arith.constant 0 : i32
    %c0_i32_1 = arith.constant 0 : i32
    return %arg0, %c0_i32, %c0_i32_0 : i32, i32, i32
  }
  func.func @transform_5(%arg0: i32) -> (i32, i32, i32) {
    %c0_i32 = arith.constant 0 : i32
    %0 = arith.subi %c0_i32, %arg0 : i32
    %c0_i32_0 = arith.constant 0 : i32
    %c0_i32_1 = arith.constant 0 : i32
    %c0_i32_2 = arith.constant 0 : i32
    return %0, %c0_i32_0, %c0_i32_1 : i32, i32, i32
  }
}

</mosaic_0001>

<bundles_post_ra>
// kernel: _lambda_.8
= control target key start
LH: loop header
LB: loop body
LE: loop exit
PB: predicated region body
PF: predicated region fallthrough
CT: control target
= control target key end

     0   :  { %v287_v1 = vmov 0   ;;  %vm73_vm0 = vcmask 130048   ;;  %v33_v17 = vlaneseq  ;;  %s491_s1 = inlined_call_operand.vmem [shape: bf16[16,512], index: 1, kind: input, shape index: {}]   ;;  %s492_s0 = inlined_call_operand.vmem [shape: f32[64,16], index: 0, kind: input, shape index: {}]   ;;  %s493_s2 = inlined_call_operand.vmem [shape: f32[1,512], index: 2, kind: input, shape index: {}]   ;;  %s494_s3 = inlined_call_operand.vmem [shape: f32[64,512], index: 3, kind: output, shape index: {}]  }
   0x1   :  { %v281_v0 = vld [vmem:[%s491_s1 + $0x4] ss:$16 sps:$4 sm:$0xff]   ;;  %118 = vmatprep.mubr.bf16.mxu0 %v287_v1  ;;  %191 = vmatprep.mubr.bf16.mxu1 %v287_v1  ;;  %v283_v2 = vld [vmem:[%s491_s1 + $0xc] ss:$16 sps:$4 sm:$0xff]   ;;  %v285_v3 = vld [vmem:[%s491_s1] ss:$16 sps:$4 sm:$0xff]  }
   0x2   :  { %86 = vmatprep.subr.bf16.mxu0 %v281_v0  ;;  %v286_v4 = vld [vmem:[%s491_s1 + $0x8] ss:$16 sps:$4 sm:$0xff]   ;;  %v15_v5 = vld [vmem:[%s492_s0] sm:$0xff]  ;;  %159 = vmatprep.subr.bf16.mxu1 %v283_v2  ;;  %v17_v8 = vld [vmem:[%s492_s0 + $0x10] sm:$0xff]  ;;  %v34_v18 = vshrl.u32 %v33_v17, 7 }
   0x3   :  { %v16_v6 = vld [vmem:[%s492_s0 + $0x8] sm:$0xff]  ;;  %87 = vmatpush1.bf16.msra.mxu0 %v285_v3  ;;  %160 = vmatpush1.bf16.msra.mxu1 %v286_v4  ;;  %v18_v9 = vld [vmem:[%s492_s0 + $0x18] sm:$0xff]  ;;  %v19_v11 = vld [vmem:[%s492_s0 + $0x20] sm:$0xff] }
   0x4   :  { %v23_v7 = vpack.c.bf16 %v16_v6, %v15_v5  ;;  %v24_v10 = vpack.c.bf16 %v18_v9, %v17_v8  ;;  %v20_v12 = vld [vmem:[%s492_s0 + $0x28] sm:$0xff]  ;;  %v21_v14 = vld [vmem:[%s492_s0 + $0x30] sm:$0xff]  ;;  %v22_v15 = vld [vmem:[%s492_s0 + $0x38] sm:$0xff]  ;;  %v35_v19 = vsub.s32 0, %v34_v18  ;;  %v43_v20 = vsub.s32 2, %v34_v18 }
   0x5   :  { %v25_v13 = vpack.c.bf16 %v20_v12, %v19_v11  ;;  %v26_v16 = vpack.c.bf16 %v22_v15, %v21_v14  ;;  %v31_v21 = vld [vmem:[%s493_s2] sm:$0xf]  ;;  %v39_v22 = vsub.s32 1, %v34_v18  ;;  %v47_v23 = vsub.s32 3, %v34_v18 }
   0x6   :  { %272 = vmatmul.mubr.msk.bf16.vlgmr.msra.gmra.mrb[0].mxu0 %vm73_vm0, %v23_v7  ;;  %276 = vmatmul.mubr.msk.bf16.vlgmr.msra.gmra.mrb[0].mxu1 %vm73_vm0, %v23_v7  ;;  %v355_v24 = vrot.slane %v31_v21, %v35_v19  ;;  %v357_v25 = vrot.slane %v31_v21, %v43_v20 }
   0x7   :  { %128 = vmatprep.mubr.bf16.mxu0 %v287_v1  ;;  %201 = vmatprep.mubr.bf16.mxu1 %v287_v1  ;;  %v359_v26 = vrot.slane %v31_v21, %v39_v22  ;;  %v361_v27 = vrot.slane %v31_v21, %v47_v23 }
   0xe   :  { %273 = vmatmul.mubr.msk.bf16.gmra.mrb[4].mxu0 %vm73_vm0, %v24_v10  ;;  %277 = vmatmul.mubr.msk.bf16.gmra.mrb[4].mxu1 %vm73_vm0, %v24_v10 }
   0xf   :  { %138 = vmatprep.mubr.bf16.mxu0 %v287_v1  ;;  %211 = vmatprep.mubr.bf16.mxu1 %v287_v1 }
  0x16   :  { %274 = vmatmul.mubr.msk.bf16.gmra.mrb[8].mxu0 %vm73_vm0, %v25_v13  ;;  %278 = vmatmul.mubr.msk.bf16.gmra.mrb[8].mxu1 %vm73_vm0, %v25_v13 }
  0x17   :  { %148 = vmatprep.mubr.bf16.mxu0 %v287_v1  ;;  %221 = vmatprep.mubr.bf16.mxu1 %v287_v1 }
  0x1e   :  { %275 = vmatmul.mubr.msk.bf16.gmra.mrb[12].mxu0 %vm73_vm0, %v26_v16  ;;  %279 = vmatmul.mubr.msk.bf16.gmra.mrb[12].mxu1 %vm73_vm0, %v26_v16 }
  0xd9   :  { %v120_v28 = vpop.f32.mrb[0].mxu0  ;;  %v193_v29 = vpop.f32.mrb[0].mxu1 }
  0xda   :  { %v121_v30 = vadd.f32 %v120_v28, %v355_v24  ;;  %v194_v31 = vadd.f32 %v193_v29, %v357_v25  ;;  %v122_v32 = vpop.f32.mrb[1].mxu0  ;;  %v195_v33 = vpop.f32.mrb[1].mxu1 }
  0xdb   :  { %v123_v34 = vadd.f32 %v122_v32, %v359_v26  ;;  %v196_v35 = vadd.f32 %v195_v33, %v361_v27  ;;  %v124_v36 = vpop.f32.mrb[2].mxu0  ;;  %v197_v37 = vpop.f32.mrb[2].mxu1 }
  0xdc   :  { %232 = vst [vmem:[%s494_s3] sm:$0xff] %v121_v30  ;;  %234 = vst [vmem:[%s494_s3 + $0x10] sm:$0xff] %v194_v31  ;;  %v125_v38 = vadd.f32 %v124_v36, %v355_v24  ;;  %v198_v39 = vadd.f32 %v197_v37, %v357_v25  ;;  %v126_v40 = vpop.f32.mrb[3].mxu0  ;;  %v199_v41 = vpop.f32.mrb[3].mxu1 }
  0xdd   :  { %233 = vst [vmem:[%s494_s3 + $0x8] sm:$0xff] %v123_v34  ;;  %235 = vst [vmem:[%s494_s3 + $0x18] sm:$0xff] %v196_v35  ;;  %v127_v42 = vadd.f32 %v126_v40, %v359_v26  ;;  %v200_v43 = vadd.f32 %v199_v41, %v361_v27 }
  0xde   :  { %236 = vst [vmem:[%s494_s3 + $0x20] sm:$0xff] %v125_v38  ;;  %238 = vst [vmem:[%s494_s3 + $0x30] sm:$0xff] %v198_v39 }
  0xdf   :  { %237 = vst [vmem:[%s494_s3 + $0x28] sm:$0xff] %v127_v42  ;;  %239 = vst [vmem:[%s494_s3 + $0x38] sm:$0xff] %v200_v43 }
  0xe1   :  { %v130_v44 = vpop.f32.mrb[4].mxu0  ;;  %v203_v45 = vpop.f32.mrb[4].mxu1 }
  0xe2   :  { %v131_v46 = vadd.f32 %v130_v44, %v355_v24  ;;  %v204_v47 = vadd.f32 %v203_v45, %v357_v25  ;;  %v132_v48 = vpop.f32.mrb[5].mxu0  ;;  %v205_v49 = vpop.f32.mrb[5].mxu1 }
  0xe3   :  { %v133_v50 = vadd.f32 %v132_v48, %v359_v26  ;;  %v206_v51 = vadd.f32 %v205_v49, %v361_v27  ;;  %v134_v52 = vpop.f32.mrb[6].mxu0  ;;  %v207_v53 = vpop.f32.mrb[6].mxu1 }
  0xe4   :  { %240 = vst [vmem:[%s494_s3 + $0x40] sm:$0xff] %v131_v46  ;;  %242 = vst [vmem:[%s494_s3 + $0x50] sm:$0xff] %v204_v47  ;;  %v135_v54 = vadd.f32 %v134_v52, %v355_v24  ;;  %v208_v55 = vadd.f32 %v207_v53, %v357_v25  ;;  %v136_v56 = vpop.f32.mrb[7].mxu0  ;;  %v209_v57 = vpop.f32.mrb[7].mxu1 }
  0xe5   :  { %241 = vst [vmem:[%s494_s3 + $0x48] sm:$0xff] %v133_v50  ;;  %243 = vst [vmem:[%s494_s3 + $0x58] sm:$0xff] %v206_v51  ;;  %v137_v58 = vadd.f32 %v136_v56, %v359_v26  ;;  %v210_v59 = vadd.f32 %v209_v57, %v361_v27 }
  0xe6   :  { %244 = vst [vmem:[%s494_s3 + $0x60] sm:$0xff] %v135_v54  ;;  %246 = vst [vmem:[%s494_s3 + $0x70] sm:$0xff] %v208_v55 }
  0xe7   :  { %245 = vst [vmem:[%s494_s3 + $0x68] sm:$0xff] %v137_v58  ;;  %247 = vst [vmem:[%s494_s3 + $0x78] sm:$0xff] %v210_v59 }
  0xe9   :  { %v140_v60 = vpop.f32.mrb[8].mxu0  ;;  %v213_v61 = vpop.f32.mrb[8].mxu1 }
  0xea   :  { %v141_v62 = vadd.f32 %v140_v60, %v355_v24  ;;  %v214_v63 = vadd.f32 %v213_v61, %v357_v25  ;;  %v142_v0 = vpop.f32.mrb[9].mxu0  ;;  %v215_v1 = vpop.f32.mrb[9].mxu1 }
  0xeb   :  { %v143_v2 = vadd.f32 %v142_v0, %v359_v26  ;;  %v216_v3 = vadd.f32 %v215_v1, %v361_v27  ;;  %v144_v4 = vpop.f32.mrb[10].mxu0  ;;  %v217_v5 = vpop.f32.mrb[10].mxu1 }
  0xec   :  { %248 = vst [vmem:[%s494_s3 + $0x80] sm:$0xff] %v141_v62  ;;  %250 = vst [vmem:[%s494_s3 + $0x90] sm:$0xff] %v214_v63  ;;  %v145_v6 = vadd.f32 %v144_v4, %v355_v24  ;;  %v218_v7 = vadd.f32 %v217_v5, %v357_v25  ;;  %v146_v8 = vpop.f32.mrb[11].mxu0  ;;  %v219_v9 = vpop.f32.mrb[11].mxu1 }
  0xed   :  { %249 = vst [vmem:[%s494_s3 + $0x88] sm:$0xff] %v143_v2  ;;  %251 = vst [vmem:[%s494_s3 + $0x98] sm:$0xff] %v216_v3  ;;  %v147_v10 = vadd.f32 %v146_v8, %v359_v26  ;;  %v220_v11 = vadd.f32 %v219_v9, %v361_v27 }
  0xee   :  { %252 = vst [vmem:[%s494_s3 + $0xa0] sm:$0xff] %v145_v6  ;;  %254 = vst [vmem:[%s494_s3 + $0xb0] sm:$0xff] %v218_v7 }
  0xef   :  { %253 = vst [vmem:[%s494_s3 + $0xa8] sm:$0xff] %v147_v10  ;;  %255 = vst [vmem:[%s494_s3 + $0xb8] sm:$0xff] %v220_v11 }
  0xf1   :  { %v150_v12 = vpop.f32.mrb[12].mxu0  ;;  %v223_v13 = vpop.f32.mrb[12].mxu1 }
  0xf2   :  { %v151_v14 = vadd.f32 %v150_v12, %v355_v24  ;;  %v224_v15 = vadd.f32 %v223_v13, %v357_v25  ;;  %v152_v16 = vpop.f32.mrb[13].mxu0  ;;  %v225_v17 = vpop.f32.mrb[13].mxu1 }
  0xf3   :  { %v153_v18 = vadd.f32 %v152_v16, %v359_v26  ;;  %v226_v19 = vadd.f32 %v225_v17, %v361_v27  ;;  %v154_v20 = vpop.f32.mrb[14].mxu0  ;;  %v227_v21 = vpop.f32.mrb[14].mxu1 }
  0xf4   :  { %256 = vst [vmem:[%s494_s3 + $0xc0] sm:$0xff] %v151_v14  ;;  %258 = vst [vmem:[%s494_s3 + $0xd0] sm:$0xff] %v224_v15  ;;  %v155_v22 = vadd.f32 %v154_v20, %v355_v24  ;;  %v228_v23 = vadd.f32 %v227_v21, %v357_v25  ;;  %v156_v28 = vpop.f32.mrb[15].mxu0  ;;  %v229_v29 = vpop.f32.mrb[15].mxu1 }
  0xf5   :  { %257 = vst [vmem:[%s494_s3 + $0xc8] sm:$0xff] %v153_v18  ;;  %259 = vst [vmem:[%s494_s3 + $0xd8] sm:$0xff] %v226_v19  ;;  %v157_v30 = vadd.f32 %v156_v28, %v359_v26  ;;  %v230_v31 = vadd.f32 %v229_v29, %v361_v27 }
  0xf6   :  { %260 = vst [vmem:[%s494_s3 + $0xe0] sm:$0xff] %v155_v22  ;;  %262 = vst [vmem:[%s494_s3 + $0xf0] sm:$0xff] %v228_v23 }
  0xf7   :  { %261 = vst [vmem:[%s494_s3 + $0xe8] sm:$0xff] %v157_v30  ;;  %263 = vst [vmem:[%s494_s3 + $0xf8] sm:$0xff] %v230_v31 }

// kernel: _lambda_.13
= control target key start
LH: loop header
LB: loop body
LE: loop exit
PB: predicated region body
PF: predicated region fallthrough
CT: control target
= control target key end

     0   :  { %s596_s3 = inlined_call_operand.vmem [shape: bf16[128,128], index: 3, kind: input, shape index: {}]   ;;  %s597_s2 = inlined_call_operand.vmem [shape: bf16[128,128], index: 2, kind: input, shape index: {}]   ;;  %s598_s1 = inlined_call_operand.vmem [shape: f32[64,128], index: 1, kind: input, shape index: {}]   ;;  %s599_s0 = inlined_call_operand.vmem [shape: f32[64,128], index: 0, kind: input, shape index: {}]   ;;  %s600_s4 = inlined_call_operand.vmem [shape: f32[1,128], index: 4, kind: input, shape index: {}]   ;;  %s601_s5 = inlined_call_operand.vmem [shape: f32[64,128], index: 5, kind: output, shape index: {}]  }
   0x1   :  { %v427_v0 = vld [vmem:[%s596_s3] sm:$0xff]   ;;  %v429_v2 = vld [vmem:[%s596_s3 + $0x8] sm:$0xff]   ;;  %v431_v4 = vld [vmem:[%s596_s3 + $0x10] sm:$0xff]  }
   0x2   :  { %v428_v1 = vld [vmem:[%s597_s2] sm:$0xff]   ;;  %371 = vmatprep.subr.bf16.mxu1 %v427_v0  ;;  %v430_v3 = vld [vmem:[%s597_s2 + $0x8] sm:$0xff]   ;;  %v432_v5 = vld [vmem:[%s597_s2 + $0x10] sm:$0xff]  }
   0x3   :  { %395 = vmatprep.subr.bf16.mxu0 %v428_v1  ;;  %372 = vmatpush3.bf16.msra.mxu1 %v427_v0  ;;  %v433_v6 = vld [vmem:[%s596_s3 + $0x18] sm:$0xff]   ;;  %v435_v8 = vld [vmem:[%s596_s3 + $0x20] sm:$0xff]   ;;  %v437_v10 = vld [vmem:[%s596_s3 + $0x28] sm:$0xff]  }
   0x4   :  { %396 = vmatpush3.bf16.msra.mxu0 %v428_v1  ;;  %373 = vmatprep.subr.bf16.mxu1 %v429_v2  ;;  %v434_v7 = vld [vmem:[%s597_s2 + $0x18] sm:$0xff]   ;;  %v436_v9 = vld [vmem:[%s597_s2 + $0x20] sm:$0xff]   ;;  %v50_v12 = vld [vmem:[%s598_s1 + $0x8] sm:$0xff] }
   0x5   :  { %397 = vmatprep.subr.bf16.mxu0 %v430_v3  ;;  %v49_v11 = vld [vmem:[%s598_s1] sm:$0xff]  ;;  %v438_v14 = vld [vmem:[%s597_s2 + $0x28] sm:$0xff]   ;;  %v439_v18 = vld [vmem:[%s596_s3 + $0x30] sm:$0xff]  }
   0x6   :  { %v21_v13 = vld [vmem:[%s599_s0] sm:$0xff]  ;;  %v57_v15 = vpack.c.bf16 %v50_v12, %v49_v11  ;;  %v22_v16 = vld [vmem:[%s599_s0 + $0x8] sm:$0xff]  ;;  %v440_v19 = vld [vmem:[%s597_s2 + $0x30] sm:$0xff]  }
   0x7   :  { %374 = vmatpush3.bf16.msra.mxu1 %v429_v2  ;;  %v29_v17 = vpack.c.bf16 %v22_v16, %v21_v13  ;;  %v441_v20 = vld [vmem:[%s596_s3 + $0x38] sm:$0xff]   ;;  %v51_v22 = vld [vmem:[%s598_s1 + $0x10] sm:$0xff]  ;;  %v53_v26 = vld [vmem:[%s598_s1 + $0x20] sm:$0xff] }
   0x8   :  { %398 = vmatpush3.bf16.msra.mxu0 %v430_v3  ;;  %375 = vmatprep.subr.bf16.mxu1 %v431_v4  ;;  %v442_v21 = vld [vmem:[%s597_s2 + $0x38] sm:$0xff]   ;;  %v23_v24 = vld [vmem:[%s599_s0 + $0x10] sm:$0xff]  ;;  %v54_v27 = vld [vmem:[%s598_s1 + $0x28] sm:$0xff] }
   0x9   :  { %399 = vmatprep.subr.bf16.mxu0 %v432_v5  ;;  %387 = vmatprep.mubr.bf16.mxu1 %v57_v15  ;;  %v52_v23 = vld [vmem:[%s598_s1 + $0x18] sm:$0xff]  ;;  %v25_v28 = vld [vmem:[%s599_s0 + $0x20] sm:$0xff]  ;;  %v26_v29 = vld [vmem:[%s599_s0 + $0x28] sm:$0xff]  ;;  %v59_v32 = vpack.c.bf16 %v54_v27, %v53_v26 }
   0xa   :  { %411 = vmatprep.mubr.bf16.mxu0 %v29_v17  ;;  %v24_v25 = vld [vmem:[%s599_s0 + $0x18] sm:$0xff]  ;;  %v58_v30 = vpack.c.bf16 %v52_v23, %v51_v22  ;;  %v31_v33 = vpack.c.bf16 %v26_v29, %v25_v28  ;;  %v55_v34 = vld [vmem:[%s598_s1 + $0x30] sm:$0xff]  ;;  %v346_v42 = vld [vmem:[%s600_s4] ss:$0 sm:$0xff] }
   0xb   :  { %376 = vmatpush3.bf16.msra.mxu1 %v431_v4  ;;  %v30_v31 = vpack.c.bf16 %v24_v25, %v23_v24  ;;  %v56_v35 = vld [vmem:[%s598_s1 + $0x38] sm:$0xff]  ;;  %v27_v36 = vld [vmem:[%s599_s0 + $0x30] sm:$0xff] }
   0xc   :  { %400 = vmatpush3.bf16.msra.mxu0 %v432_v5  ;;  %377 = vmatprep.subr.bf16.mxu1 %v433_v6  ;;  %v28_v37 = vld [vmem:[%s599_s0 + $0x38] sm:$0xff]  ;;  %v60_v38 = vpack.c.bf16 %v56_v35, %v55_v34 }
   0xd   :  { %401 = vmatprep.subr.bf16.mxu0 %v434_v7  ;;  %v32_v39 = vpack.c.bf16 %v28_v37, %v27_v36 }
   0xf   :  { %378 = vmatpush3.bf16.msra.mxu1 %v433_v6 }
  0x10   :  { %402 = vmatpush3.bf16.msra.mxu0 %v434_v7  ;;  %379 = vmatprep.subr.bf16.mxu1 %v435_v8 }
  0x11   :  { %403 = vmatprep.subr.bf16.mxu0 %v436_v9 }
  0x13   :  { %380 = vmatpush3.bf16.msra.mxu1 %v435_v8 }
  0x14   :  { %404 = vmatpush3.bf16.msra.mxu0 %v436_v9  ;;  %381 = vmatprep.subr.bf16.mxu1 %v437_v10 }
  0x15   :  { %405 = vmatprep.subr.bf16.mxu0 %v438_v14 }
  0x17   :  { %382 = vmatpush3.bf16.msra.mxu1 %v437_v10 }
  0x18   :  { %406 = vmatpush3.bf16.msra.mxu0 %v438_v14  ;;  %383 = vmatprep.subr.bf16.mxu1 %v439_v18 }
  0x19   :  { %407 = vmatprep.subr.bf16.mxu0 %v440_v19 }
  0x1b   :  { %384 = vmatpush3.bf16.msra.mxu1 %v439_v18 }
  0x1c   :  { %408 = vmatpush3.bf16.msra.mxu0 %v440_v19  ;;  %385 = vmatprep.subr.bf16.mxu1 %v441_v20 }
  0x1d   :  { %409 = vmatprep.subr.bf16.mxu0 %v442_v21 }
  0x1f   :  { %386 = vmatpush3.bf16.msra.mxu1 %v441_v20 }
  0x20   :  { %410 = vmatpush3.bf16.msra.mxu0 %v442_v21 }
  0x22   :  { %388 = vmatmul.mubr.bf16.vlgmr.msra.gmra.mrb[0].mxu1 %v58_v30 }
  0x23   :  { %412 = vmatmul.mubr.bf16.vlgmr.msra.gmra.mrb[0].mxu0 %v30_v31  ;;  %391 = vmatprep.mubr.bf16.mxu1 %v59_v32 }
  0x24   :  { %415 = vmatprep.mubr.bf16.mxu0 %v31_v33 }
  0x2a   :  { %392 = vmatmul.mubr.bf16.gmra.mrb[4].mxu1 %v60_v38 }
  0x2b   :  { %416 = vmatmul.mubr.bf16.gmra.mrb[4].mxu0 %v32_v39 }
  0xf5   :  { %v389_v40 = vpop.f32.mrb[0].mxu1 }
  0xf6   :  { %v413_v41 = vpop.f32.mrb[0].mxu0  ;;  %v159_v43 = vpop.f32.mrb[1].mxu1 }
  0xf7   :  { %v281_v44 = vadd.f32 %v413_v41, %v389_v40  ;;  %v272_v45 = vpop.f32.mrb[1].mxu0  ;;  %v390_v46 = vpop.f32.mrb[2].mxu1 }
  0xf8   :  { %v273_v47 = vadd.f32 %v272_v45, %v159_v43  ;;  %v414_v48 = vpop.f32.mrb[2].mxu0  ;;  %v162_v49 = vpop.f32.mrb[3].mxu1 }
  0xf9   :  { %v312_v50 = vadd.f32 %v346_v42, %v281_v44  ;;  %v284_v51 = vadd.f32 %v414_v48, %v390_v46  ;;  %v275_v52 = vpop.f32.mrb[3].mxu0 }
  0xfa   :  { %v310_v53 = vadd.f32 %v346_v42, %v273_v47  ;;  %v276_v54 = vadd.f32 %v275_v52, %v162_v49 }
  0xfb   :  { %320 = vst [vmem:[%s601_s5 + $0x10] sm:$0xff] %v312_v50  ;;  %v313_v55 = vadd.f32 %v346_v42, %v284_v51 }
  0xfc   :  { %318 = vst [vmem:[%s601_s5] sm:$0xff] %v310_v53  ;;  %v311_v56 = vadd.f32 %v346_v42, %v276_v54 }
  0xfd   :  { %321 = vst [vmem:[%s601_s5 + $0x18] sm:$0xff] %v313_v55  ;;  %v393_v57 = vpop.f32.mrb[4].mxu1 }
  0xfe   :  { %319 = vst [vmem:[%s601_s5 + $0x8] sm:$0xff] %v311_v56  ;;  %v417_v58 = vpop.f32.mrb[4].mxu0  ;;  %v175_v59 = vpop.f32.mrb[5].mxu1 }
  0xff   :  { %v297_v60 = vadd.f32 %v417_v58, %v393_v57  ;;  %v288_v61 = vpop.f32.mrb[5].mxu0  ;;  %v394_v62 = vpop.f32.mrb[6].mxu1 }
 0x100   :  { %v289_v63 = vadd.f32 %v288_v61, %v175_v59  ;;  %v418_v0 = vpop.f32.mrb[6].mxu0  ;;  %v178_v1 = vpop.f32.mrb[7].mxu1 }
 0x101   :  { %v316_v2 = vadd.f32 %v346_v42, %v297_v60  ;;  %v300_v3 = vadd.f32 %v418_v0, %v394_v62  ;;  %v291_v4 = vpop.f32.mrb[7].mxu0 }
 0x102   :  { %v314_v5 = vadd.f32 %v346_v42, %v289_v63  ;;  %v292_v6 = vadd.f32 %v291_v4, %v178_v1 }
 0x103   :  { %324 = vst [vmem:[%s601_s5 + $0x30] sm:$0xff] %v316_v2  ;;  %v317_v7 = vadd.f32 %v346_v42, %v300_v3 }
 0x104   :  { %322 = vst [vmem:[%s601_s5 + $0x20] sm:$0xff] %v314_v5  ;;  %v315_v8 = vadd.f32 %v346_v42, %v292_v6 }
 0x105   :  { %325 = vst [vmem:[%s601_s5 + $0x38] sm:$0xff] %v317_v7 }
 0x106   :  { %323 = vst [vmem:[%s601_s5 + $0x28] sm:$0xff] %v315_v8 }

// kernel: _lambda_.10
= control target key start
LH: loop header
LB: loop body
LE: loop exit
PB: predicated region body
PF: predicated region fallthrough
CT: control target
= control target key end

     0   :  { %v1004_v1 = vmov 0   ;;  %s1430_s3 = inlined_call_operand.vmem [shape: bf16[128,512], index: 3, kind: input, shape index: {}]   ;;  %s1431_s2 = inlined_call_operand.vmem [shape: bf16[128,512], index: 2, kind: input, shape index: {}]   ;;  %s1432_s1 = inlined_call_operand.vmem [shape: f32[64,128], index: 1, kind: input, shape index: {}]   ;;  %s1433_s0 = inlined_call_operand.vmem [shape: f32[64,128], index: 0, kind: input, shape index: {}]   ;;  %s1434_s4 = inlined_call_operand.vmem [shape: f32[1,512], index: 4, kind: input, shape index: {}]   ;;  %s1435_s5 = inlined_call_operand.vmem [shape: f32[64,512], index: 5, kind: output, shape index: {}]  }
   0x1   :  { %v908_v0 = vld [vmem:[%s1430_s3 + $0x4] ss:$16 sps:$4 sm:$0xff]   ;;  %301 = vmatprep.mubr.bf16.mxu0 %v1004_v1  ;;  %374 = vmatprep.mubr.bf16.mxu1 %v1004_v1  ;;  %v910_v2 = vld [vmem:[%s1430_s3 + $0xc] ss:$16 sps:$4 sm:$0xff]   ;;  %v912_v3 = vld [vmem:[%s1430_s3] ss:$16 sps:$4 sm:$0xff]  }
   0x2   :  { %269 = vmatprep.subr.bf16.mxu0 %v908_v0  ;;  %v913_v4 = vld [vmem:[%s1430_s3 + $0x8] ss:$16 sps:$4 sm:$0xff]   ;;  %342 = vmatprep.subr.bf16.mxu1 %v910_v2  ;;  %v914_v5 = vld [vmem:[%s1430_s3 + $0x24] ss:$16 sps:$4 sm:$0xff]   ;;  %v916_v6 = vld [vmem:[%s1430_s3 + $0x2c] ss:$16 sps:$4 sm:$0xff]  }
   0x3   :  { %270 = vmatpush1.bf16.msra.mxu0 %v912_v3  ;;  %343 = vmatpush1.bf16.msra.mxu1 %v913_v4  ;;  %v918_v7 = vld [vmem:[%s1430_s3 + $0x20] ss:$16 sps:$4 sm:$0xff]   ;;  %v919_v8 = vld [vmem:[%s1430_s3 + $0x28] ss:$16 sps:$4 sm:$0xff]   ;;  %v920_v9 = vld [vmem:[%s1430_s3 + $0x44] ss:$16 sps:$4 sm:$0xff]  }
   0x4   :  { %271 = vmatprep.subr.bf16.mxu0 %v914_v5  ;;  %344 = vmatprep.subr.bf16.mxu1 %v916_v6  ;;  %v922_v10 = vld [vmem:[%s1430_s3 + $0x4c] ss:$16 sps:$4 sm:$0xff]   ;;  %v924_v11 = vld [vmem:[%s1430_s3 + $0x40] ss:$16 sps:$4 sm:$0xff]   ;;  %v925_v12 = vld [vmem:[%s1430_s3 + $0x48] ss:$16 sps:$4 sm:$0xff]  }
   0x5   :  { %v926_v13 = vld [vmem:[%s1430_s3 + $0x64] ss:$16 sps:$4 sm:$0xff]   ;;  %v928_v14 = vld [vmem:[%s1430_s3 + $0x6c] ss:$16 sps:$4 sm:$0xff]   ;;  %v930_v15 = vld [vmem:[%s1430_s3 + $0x60] ss:$16 sps:$4 sm:$0xff]  }
   0x6   :  { %v931_v16 = vld [vmem:[%s1430_s3 + $0x68] ss:$16 sps:$4 sm:$0xff]   ;;  %v932_v17 = vld [vmem:[%s1430_s3 + $0x84] ss:$16 sps:$4 sm:$0xff]   ;;  %v934_v18 = vld [vmem:[%s1430_s3 + $0x8c] ss:$16 sps:$4 sm:$0xff]  }
   0x7   :  { %272 = vmatpush1.bf16.msra.mxu0 %v918_v7  ;;  %345 = vmatpush1.bf16.msra.mxu1 %v919_v8  ;;  %v936_v19 = vld [vmem:[%s1430_s3 + $0x80] ss:$16 sps:$4 sm:$0xff]   ;;  %v937_v20 = vld [vmem:[%s1430_s3 + $0x88] ss:$16 sps:$4 sm:$0xff]   ;;  %v938_v21 = vld [vmem:[%s1430_s3 + $0xa4] ss:$16 sps:$4 sm:$0xff]  }
   0x8   :  { %273 = vmatprep.subr.bf16.mxu0 %v920_v9  ;;  %346 = vmatprep.subr.bf16.mxu1 %v922_v10  ;;  %v940_v22 = vld [vmem:[%s1430_s3 + $0xac] ss:$16 sps:$4 sm:$0xff]   ;;  %v942_v23 = vld [vmem:[%s1430_s3 + $0xa0] ss:$16 sps:$4 sm:$0xff]   ;;  %v943_v24 = vld [vmem:[%s1430_s3 + $0xa8] ss:$16 sps:$4 sm:$0xff]  }
   0x9   :  { %v944_v25 = vld [vmem:[%s1430_s3 + $0xc4] ss:$16 sps:$4 sm:$0xff]   ;;  %v946_v26 = vld [vmem:[%s1430_s3 + $0xcc] ss:$16 sps:$4 sm:$0xff]   ;;  %v948_v27 = vld [vmem:[%s1430_s3 + $0xc0] ss:$16 sps:$4 sm:$0xff]  }
   0xa   :  { %v949_v28 = vld [vmem:[%s1430_s3 + $0xc8] ss:$16 sps:$4 sm:$0xff]   ;;  %v950_v29 = vld [vmem:[%s1430_s3 + $0xe4] ss:$16 sps:$4 sm:$0xff]   ;;  %v952_v30 = vld [vmem:[%s1430_s3 + $0xec] ss:$16 sps:$4 sm:$0xff]  }
   0xb   :  { %274 = vmatpush1.bf16.msra.mxu0 %v924_v11  ;;  %347 = vmatpush1.bf16.msra.mxu1 %v925_v12  ;;  %v954_v31 = vld [vmem:[%s1430_s3 + $0xe0] ss:$16 sps:$4 sm:$0xff]   ;;  %v955_v32 = vld [vmem:[%s1430_s3 + $0xe8] ss:$16 sps:$4 sm:$0xff]   ;;  %v958_v35 = vld [vmem:[%s1431_s2 + $0x4] ss:$16 sps:$4 sm:$0xff]  }
   0xc   :  { %275 = vmatprep.subr.bf16.mxu0 %v926_v13  ;;  %348 = vmatprep.subr.bf16.mxu1 %v928_v14  ;;  %v65_v33 = vld [vmem:[%s1432_s1] sm:$0xff]  ;;  %v66_v34 = vld [vmem:[%s1432_s1 + $0x8] sm:$0xff]  ;;  %v67_v44 = vld [vmem:[%s1432_s1 + $0x10] sm:$0xff] }
   0xd   :  { %v961_v36 = vld [vmem:[%s1431_s2 + $0xc] ss:$16 sps:$4 sm:$0xff]   ;;  %v73_v37 = vpack.c.bf16 %v66_v34, %v65_v33  ;;  %v956_v38 = vld [vmem:[%s1431_s2] ss:$16 sps:$4 sm:$0xff]   ;;  %v959_v39 = vld [vmem:[%s1431_s2 + $0x8] ss:$16 sps:$4 sm:$0xff]  }
   0xe   :  { %v964_v40 = vld [vmem:[%s1431_s2 + $0x24] ss:$16 sps:$4 sm:$0xff]   ;;  %v967_v41 = vld [vmem:[%s1431_s2 + $0x2c] ss:$16 sps:$4 sm:$0xff]   ;;  %v962_v42 = vld [vmem:[%s1431_s2 + $0x20] ss:$16 sps:$4 sm:$0xff]  }
   0xf   :  { %276 = vmatpush1.bf16.msra.mxu0 %v930_v15  ;;  %349 = vmatpush1.bf16.msra.mxu1 %v931_v16  ;;  %v965_v43 = vld [vmem:[%s1431_s2 + $0x28] ss:$16 sps:$4 sm:$0xff]   ;;  %v970_v46 = vld [vmem:[%s1431_s2 + $0x44] ss:$16 sps:$4 sm:$0xff]   ;;  %v973_v47 = vld [vmem:[%s1431_s2 + $0x4c] ss:$16 sps:$4 sm:$0xff]  }
  0x10   :  { %277 = vmatprep.subr.bf16.mxu0 %v932_v17  ;;  %350 = vmatprep.subr.bf16.mxu1 %v934_v18  ;;  %v68_v45 = vld [vmem:[%s1432_s1 + $0x18] sm:$0xff]  ;;  %v968_v49 = vld [vmem:[%s1431_s2 + $0x40] ss:$16 sps:$4 sm:$0xff]   ;;  %v976_v51 = vld [vmem:[%s1431_s2 + $0x64] ss:$16 sps:$4 sm:$0xff]  }
  0x11   :  { %v74_v48 = vpack.c.bf16 %v68_v45, %v67_v44  ;;  %v971_v50 = vld [vmem:[%s1431_s2 + $0x48] ss:$16 sps:$4 sm:$0xff]   ;;  %v979_v52 = vld [vmem:[%s1431_s2 + $0x6c] ss:$16 sps:$4 sm:$0xff]   ;;  %v974_v53 = vld [vmem:[%s1431_s2 + $0x60] ss:$16 sps:$4 sm:$0xff]  }
  0x12   :  { %v977_v54 = vld [vmem:[%s1431_s2 + $0x68] ss:$16 sps:$4 sm:$0xff]   ;;  %v69_v55 = vld [vmem:[%s1432_s1 + $0x20] sm:$0xff]  ;;  %v985_v58 = vld [vmem:[%s1431_s2 + $0x8c] ss:$16 sps:$4 sm:$0xff]  }
  0x13   :  { %278 = vmatpush1.bf16.msra.mxu0 %v936_v19  ;;  %351 = vmatpush1.bf16.msra.mxu1 %v937_v20  ;;  %v70_v56 = vld [vmem:[%s1432_s1 + $0x28] sm:$0xff]  ;;  %v982_v57 = vld [vmem:[%s1431_s2 + $0x84] ss:$16 sps:$4 sm:$0xff]   ;;  %v980_v60 = vld [vmem:[%s1431_s2 + $0x80] ss:$16 sps:$4 sm:$0xff]  }
  0x14   :  { %279 = vmatprep.subr.bf16.mxu0 %v938_v21  ;;  %352 = vmatprep.subr.bf16.mxu1 %v940_v22  ;;  %v75_v59 = vpack.c.bf16 %v70_v56, %v69_v55  ;;  %v983_v61 = vld [vmem:[%s1431_s2 + $0x88] ss:$16 sps:$4 sm:$0xff]   ;;  %v988_v62 = vld [vmem:[%s1431_s2 + $0xa4] ss:$16 sps:$4 sm:$0xff]   ;;  %v991_v63 = vld [vmem:[%s1431_s2 + $0xac] ss:$16 sps:$4 sm:$0xff]  }
  0x15   :  { %v986_v0 = vld [vmem:[%s1431_s2 + $0xa0] ss:$16 sps:$4 sm:$0xff]   ;;  %v989_v2 = vld [vmem:[%s1431_s2 + $0xa8] ss:$16 sps:$4 sm:$0xff]   ;;  %v994_v5 = vld [vmem:[%s1431_s2 + $0xc4] ss:$16 sps:$4 sm:$0xff]  }
  0x16   :  { %v71_v3 = vld [vmem:[%s1432_s1 + $0x30] sm:$0xff]  ;;  %v72_v4 = vld [vmem:[%s1432_s1 + $0x38] sm:$0xff]  ;;  %v21_v14 = vld [vmem:[%s1433_s0] sm:$0xff] }
  0x17   :  { %280 = vmatpush1.bf16.msra.mxu0 %v942_v23  ;;  %353 = vmatpush1.bf16.msra.mxu1 %v943_v24  ;;  %v997_v6 = vld [vmem:[%s1431_s2 + $0xcc] ss:$16 sps:$4 sm:$0xff]   ;;  %v76_v7 = vpack.c.bf16 %v72_v4, %v71_v3  ;;  %v992_v8 = vld [vmem:[%s1431_s2 + $0xc0] ss:$16 sps:$4 sm:$0xff]   ;;  %v995_v9 = vld [vmem:[%s1431_s2 + $0xc8] ss:$16 sps:$4 sm:$0xff]  }
  0x18   :  { %281 = vmatprep.subr.bf16.mxu0 %v944_v25  ;;  %354 = vmatprep.subr.bf16.mxu1 %v946_v26  ;;  %v1000_v10 = vld [vmem:[%s1431_s2 + $0xe4] ss:$16 sps:$4 sm:$0xff]   ;;  %v1003_v11 = vld [vmem:[%s1431_s2 + $0xec] ss:$16 sps:$4 sm:$0xff]   ;;  %v998_v12 = vld [vmem:[%s1431_s2 + $0xe0] ss:$16 sps:$4 sm:$0xff]   ;;  %v723_v26 = vlaneseq }
  0x19   :  { %v1001_v13 = vld [vmem:[%s1431_s2 + $0xe8] ss:$16 sps:$4 sm:$0xff]   ;;  %v23_v17 = vld [vmem:[%s1433_s0 + $0x10] sm:$0xff]  ;;  %v25_v20 = vld [vmem:[%s1433_s0 + $0x20] sm:$0xff] }
  0x1a   :  { %v22_v15 = vld [vmem:[%s1433_s0 + $0x8] sm:$0xff]  ;;  %v24_v18 = vld [vmem:[%s1433_s0 + $0x18] sm:$0xff]  ;;  %v27_v23 = vld [vmem:[%s1433_s0 + $0x30] sm:$0xff] }
  0x1b   :  { %282 = vmatpush1.bf16.msra.mxu0 %v948_v27  ;;  %355 = vmatpush1.bf16.msra.mxu1 %v949_v28  ;;  %v29_v16 = vpack.c.bf16 %v22_v15, %v21_v14  ;;  %v30_v19 = vpack.c.bf16 %v24_v18, %v23_v17  ;;  %v26_v21 = vld [vmem:[%s1433_s0 + $0x28] sm:$0xff]  ;;  %v28_v24 = vld [vmem:[%s1433_s0 + $0x38] sm:$0xff]  ;;  %v724_v27 = vshrl.u32 %v723_v26, 7 }
  0x1c   :  { %283 = vmatprep.subr.bf16.mxu0 %v950_v29  ;;  %356 = vmatprep.subr.bf16.mxu1 %v952_v30  ;;  %v31_v22 = vpack.c.bf16 %v26_v21, %v25_v20  ;;  %v32_v25 = vpack.c.bf16 %v28_v24, %v27_v23  ;;  %v721_v30 = vld [vmem:[%s1434_s4] sm:$0xf] }
  0x1d   :  { %v725_v28 = vsub.s32 0, %v724_v27  ;;  %v733_v29 = vsub.s32 2, %v724_v27 }
  0x1f   :  { %284 = vmatpush1.bf16.msra.mxu0 %v954_v31  ;;  %357 = vmatpush1.bf16.msra.mxu1 %v955_v32  ;;  %v737_v31 = vsub.s32 3, %v724_v27  ;;  %v1294_v32 = vrot.slane %v721_v30, %v725_v28  ;;  %v1296_v33 = vrot.slane %v721_v30, %v733_v29 }
  0x20   :  { %575 = vmatprep.subr.bf16.mxu0 %v958_v35  ;;  %648 = vmatprep.subr.bf16.mxu1 %v961_v36 }
  0x21   :  { %v1300_v35 = vrot.slane %v721_v30, %v737_v31 }
  0x22   :  { %302 = vmatmul.mubr.bf16.vlgmr.msra.gmra.mrb[0].mxu0 %v73_v37  ;;  %375 = vmatmul.mubr.bf16.vlgmr.msra.gmra.mrb[0].mxu1 %v73_v37 }
  0x23   :  { %576 = vmatpush1.bf16.msra.mxu0 %v956_v38  ;;  %649 = vmatpush1.bf16.msra.mxu1 %v959_v39 }
  0x24   :  { %577 = vmatprep.subr.bf16.mxu0 %v964_v40  ;;  %650 = vmatprep.subr.bf16.mxu1 %v967_v41 }
  0x25   :  { %311 = vmatprep.mubr.bf16.mxu0 %v1004_v1  ;;  %384 = vmatprep.mubr.bf16.mxu1 %v1004_v1 }
  0x27   :  { %578 = vmatpush1.bf16.msra.mxu0 %v962_v42  ;;  %651 = vmatpush1.bf16.msra.mxu1 %v965_v43 }
  0x28   :  { %579 = vmatprep.subr.bf16.mxu0 %v970_v46  ;;  %652 = vmatprep.subr.bf16.mxu1 %v973_v47 }
  0x2a   :  { %312 = vmatmul.mubr.bf16.gmra.mrb[4].mxu0 %v74_v48  ;;  %385 = vmatmul.mubr.bf16.gmra.mrb[4].mxu1 %v74_v48 }
  0x2b   :  { %580 = vmatpush1.bf16.msra.mxu0 %v968_v49  ;;  %653 = vmatpush1.bf16.msra.mxu1 %v971_v50 }
  0x2c   :  { %581 = vmatprep.subr.bf16.mxu0 %v976_v51  ;;  %654 = vmatprep.subr.bf16.mxu1 %v979_v52 }
  0x2d   :  { %321 = vmatprep.mubr.bf16.mxu0 %v1004_v1  ;;  %394 = vmatprep.mubr.bf16.mxu1 %v1004_v1 }
  0x2f   :  { %582 = vmatpush1.bf16.msra.mxu0 %v974_v53  ;;  %655 = vmatpush1.bf16.msra.mxu1 %v977_v54 }
  0x30   :  { %583 = vmatprep.subr.bf16.mxu0 %v982_v57  ;;  %656 = vmatprep.subr.bf16.mxu1 %v985_v58 }
  0x32   :  { %322 = vmatmul.mubr.bf16.gmra.mrb[8].mxu0 %v75_v59  ;;  %395 = vmatmul.mubr.bf16.gmra.mrb[8].mxu1 %v75_v59 }
  0x33   :  { %584 = vmatpush1.bf16.msra.mxu0 %v980_v60  ;;  %657 = vmatpush1.bf16.msra.mxu1 %v983_v61 }
  0x34   :  { %585 = vmatprep.subr.bf16.mxu0 %v988_v62  ;;  %658 = vmatprep.subr.bf16.mxu1 %v991_v63 }
  0x35   :  { %331 = vmatprep.mubr.bf16.mxu0 %v1004_v1  ;;  %404 = vmatprep.mubr.bf16.mxu1 %v1004_v1 }
  0x37   :  { %586 = vmatpush1.bf16.msra.mxu0 %v986_v0  ;;  %659 = vmatpush1.bf16.msra.mxu1 %v989_v2 }
  0x38   :  { %587 = vmatprep.subr.bf16.mxu0 %v994_v5  ;;  %660 = vmatprep.subr.bf16.mxu1 %v997_v6 }
  0x3a   :  { %332 = vmatmul.mubr.bf16.gmra.mrb[12].mxu0 %v76_v7  ;;  %405 = vmatmul.mubr.bf16.gmra.mrb[12].mxu1 %v76_v7 }
  0x3b   :  { %588 = vmatpush1.bf16.msra.mxu0 %v992_v8  ;;  %661 = vmatpush1.bf16.msra.mxu1 %v995_v9 }
  0x3c   :  { %589 = vmatprep.subr.bf16.mxu0 %v1000_v10  ;;  %662 = vmatprep.subr.bf16.mxu1 %v1003_v11 }
  0x3d   :  { %607 = vmatprep.mubr.bf16.mxu0 %v1004_v1  ;;  %680 = vmatprep.mubr.bf16.mxu1 %v1004_v1 }
  0x3f   :  { %590 = vmatpush1.bf16.msra.mxu0 %v998_v12  ;;  %663 = vmatpush1.bf16.msra.mxu1 %v1001_v13 }
  0x42   :  { %608 = vmatmul.mubr.bf16.vlgmr.msra.gmra.mrb[0].mxu0 %v29_v16  ;;  %681 = vmatmul.mubr.bf16.vlgmr.msra.gmra.mrb[0].mxu1 %v29_v16 }
  0x43   :  { %617 = vmatprep.mubr.bf16.mxu0 %v1004_v1  ;;  %690 = vmatprep.mubr.bf16.mxu1 %v1004_v1 }
  0x4a   :  { %618 = vmatmul.mubr.bf16.gmra.mrb[4].mxu0 %v30_v19  ;;  %691 = vmatmul.mubr.bf16.gmra.mrb[4].mxu1 %v30_v19 }
  0x4b   :  { %627 = vmatprep.mubr.bf16.mxu0 %v1004_v1  ;;  %700 = vmatprep.mubr.bf16.mxu1 %v1004_v1 }
  0x52   :  { %628 = vmatmul.mubr.bf16.gmra.mrb[8].mxu0 %v31_v22  ;;  %701 = vmatmul.mubr.bf16.gmra.mrb[8].mxu1 %v31_v22 }
  0x53   :  { %637 = vmatprep.mubr.bf16.mxu0 %v1004_v1  ;;  %710 = vmatprep.mubr.bf16.mxu1 %v1004_v1  ;;  %v729_v1 = vsub.s32 1, %v724_v27 }
  0x55   :  { %v1298_v34 = vrot.slane %v721_v30, %v729_v1 }
  0x5a   :  { %638 = vmatmul.mubr.bf16.gmra.mrb[12].mxu0 %v32_v25  ;;  %711 = vmatmul.mubr.bf16.gmra.mrb[12].mxu1 %v32_v25 }
 0x115   :  { %v609_v36 = vpop.f32.mrb[0].mxu0  ;;  %v682_v37 = vpop.f32.mrb[0].mxu1 }
 0x116   :  { %v743_v38 = vadd.f32 %v1294_v32, %v609_v36  ;;  %v745_v39 = vadd.f32 %v1296_v33, %v682_v37  ;;  %v611_v40 = vpop.f32.mrb[1].mxu0  ;;  %v684_v41 = vpop.f32.mrb[1].mxu1 }
 0x117   :  { %v744_v42 = vadd.f32 %v1298_v34, %v611_v40  ;;  %v746_v43 = vadd.f32 %v1300_v35, %v684_v41  ;;  %v613_v44 = vpop.f32.mrb[2].mxu0  ;;  %v686_v45 = vpop.f32.mrb[2].mxu1 }
 0x118   :  { %775 = vst [vmem:[%s1435_s5] sm:$0xff] %v743_v38  ;;  %777 = vst [vmem:[%s1435_s5 + $0x10] sm:$0xff] %v745_v39  ;;  %v747_v46 = vadd.f32 %v1294_v32, %v613_v44  ;;  %v749_v47 = vadd.f32 %v1296_v33, %v686_v45  ;;  %v615_v48 = vpop.f32.mrb[3].mxu0  ;;  %v688_v49 = vpop.f32.mrb[3].mxu1 }
 0x119   :  { %776 = vst [vmem:[%s1435_s5 + $0x8] sm:$0xff] %v744_v42  ;;  %778 = vst [vmem:[%s1435_s5 + $0x18] sm:$0xff] %v746_v43  ;;  %v748_v50 = vadd.f32 %v1298_v34, %v615_v48  ;;  %v750_v51 = vadd.f32 %v1300_v35, %v688_v49 }
 0x11a   :  { %779 = vst [vmem:[%s1435_s5 + $0x20] sm:$0xff] %v747_v46  ;;  %781 = vst [vmem:[%s1435_s5 + $0x30] sm:$0xff] %v749_v47 }
 0x11b   :  { %780 = vst [vmem:[%s1435_s5 + $0x28] sm:$0xff] %v748_v50  ;;  %782 = vst [vmem:[%s1435_s5 + $0x38] sm:$0xff] %v750_v51 }
 0x11d   :  { %v619_v52 = vpop.f32.mrb[4].mxu0  ;;  %v692_v53 = vpop.f32.mrb[4].mxu1 }
 0x11e   :  { %v751_v54 = vadd.f32 %v1294_v32, %v619_v52  ;;  %v753_v55 = vadd.f32 %v1296_v33, %v692_v53  ;;  %v621_v56 = vpop.f32.mrb[5].mxu0  ;;  %v694_v57 = vpop.f32.mrb[5].mxu1 }
 0x11f   :  { %v752_v58 = vadd.f32 %v1298_v34, %v621_v56  ;;  %v754_v59 = vadd.f32 %v1300_v35, %v694_v57  ;;  %v623_v60 = vpop.f32.mrb[6].mxu0  ;;  %v696_v61 = vpop.f32.mrb[6].mxu1 }
 0x120   :  { %783 = vst [vmem:[%s1435_s5 + $0x40] sm:$0xff] %v751_v54  ;;  %785 = vst [vmem:[%s1435_s5 + $0x50] sm:$0xff] %v753_v55  ;;  %v755_v62 = vadd.f32 %v1294_v32, %v623_v60  ;;  %v757_v63 = vadd.f32 %v1296_v33, %v696_v61  ;;  %v625_v0 = vpop.f32.mrb[7].mxu0  ;;  %v698_v2 = vpop.f32.mrb[7].mxu1 }
 0x121   :  { %784 = vst [vmem:[%s1435_s5 + $0x48] sm:$0xff] %v752_v58  ;;  %786 = vst [vmem:[%s1435_s5 + $0x58] sm:$0xff] %v754_v59  ;;  %v756_v3 = vadd.f32 %v1298_v34, %v625_v0  ;;  %v758_v4 = vadd.f32 %v1300_v35, %v698_v2 }
 0x122   :  { %787 = vst [vmem:[%s1435_s5 + $0x60] sm:$0xff] %v755_v62  ;;  %789 = vst [vmem:[%s1435_s5 + $0x70] sm:$0xff] %v757_v63 }
 0x123   :  { %788 = vst [vmem:[%s1435_s5 + $0x68] sm:$0xff] %v756_v3  ;;  %790 = vst [vmem:[%s1435_s5 + $0x78] sm:$0xff] %v758_v4 }
 0x125   :  { %v629_v5 = vpop.f32.mrb[8].mxu0  ;;  %v702_v6 = vpop.f32.mrb[8].mxu1 }
 0x126   :  { %v759_v7 = vadd.f32 %v1294_v32, %v629_v5  ;;  %v761_v8 = vadd.f32 %v1296_v33, %v702_v6  ;;  %v631_v9 = vpop.f32.mrb[9].mxu0  ;;  %v704_v10 = vpop.f32.mrb[9].mxu1 }
 0x127   :  { %v760_v11 = vadd.f32 %v1298_v34, %v631_v9  ;;  %v762_v12 = vadd.f32 %v1300_v35, %v704_v10  ;;  %v633_v13 = vpop.f32.mrb[10].mxu0  ;;  %v706_v14 = vpop.f32.mrb[10].mxu1 }
 0x128   :  { %791 = vst [vmem:[%s1435_s5 + $0x80] sm:$0xff] %v759_v7  ;;  %793 = vst [vmem:[%s1435_s5 + $0x90] sm:$0xff] %v761_v8  ;;  %v763_v15 = vadd.f32 %v1294_v32, %v633_v13  ;;  %v765_v16 = vadd.f32 %v1296_v33, %v706_v14  ;;  %v635_v17 = vpop.f32.mrb[11].mxu0  ;;  %v708_v18 = vpop.f32.mrb[11].mxu1 }
 0x129   :  { %792 = vst [vmem:[%s1435_s5 + $0x88] sm:$0xff] %v760_v11  ;;  %794 = vst [vmem:[%s1435_s5 + $0x98] sm:$0xff] %v762_v12  ;;  %v764_v19 = vadd.f32 %v1298_v34, %v635_v17  ;;  %v766_v20 = vadd.f32 %v1300_v35, %v708_v18 }
 0x12a   :  { %795 = vst [vmem:[%s1435_s5 + $0xa0] sm:$0xff] %v763_v15  ;;  %797 = vst [vmem:[%s1435_s5 + $0xb0] sm:$0xff] %v765_v16 }
 0x12b   :  { %796 = vst [vmem:[%s1435_s5 + $0xa8] sm:$0xff] %v764_v19  ;;  %798 = vst [vmem:[%s1435_s5 + $0xb8] sm:$0xff] %v766_v20 }
 0x12d   :  { %v639_v21 = vpop.f32.mrb[12].mxu0  ;;  %v712_v22 = vpop.f32.mrb[12].mxu1 }
 0x12e   :  { %v767_v23 = vadd.f32 %v1294_v32, %v639_v21  ;;  %v769_v24 = vadd.f32 %v1296_v33, %v712_v22  ;;  %v641_v25 = vpop.f32.mrb[13].mxu0  ;;  %v714_v26 = vpop.f32.mrb[13].mxu1 }
 0x12f   :  { %v768_v27 = vadd.f32 %v1298_v34, %v641_v25  ;;  %v770_v28 = vadd.f32 %v1300_v35, %v714_v26  ;;  %v643_v29 = vpop.f32.mrb[14].mxu0  ;;  %v716_v30 = vpop.f32.mrb[14].mxu1 }
 0x130   :  { %799 = vst [vmem:[%s1435_s5 + $0xc0] sm:$0xff] %v767_v23  ;;  %801 = vst [vmem:[%s1435_s5 + $0xd0] sm:$0xff] %v769_v24  ;;  %v771_v1 = vadd.f32 %v1294_v32, %v643_v29  ;;  %v773_v31 = vadd.f32 %v1296_v33, %v716_v30  ;;  %v645_v36 = vpop.f32.mrb[15].mxu0  ;;  %v718_v37 = vpop.f32.mrb[15].mxu1 }
 0x131   :  { %800 = vst [vmem:[%s1435_s5 + $0xc8] sm:$0xff] %v768_v27  ;;  %802 = vst [vmem:[%s1435_s5 + $0xd8] sm:$0xff] %v770_v28  ;;  %v772_v38 = vadd.f32 %v1298_v34, %v645_v36  ;;  %v774_v39 = vadd.f32 %v1300_v35, %v718_v37 }
 0x132   :  { %803 = vst [vmem:[%s1435_s5 + $0xe0] sm:$0xff] %v771_v1  ;;  %805 = vst [vmem:[%s1435_s5 + $0xf0] sm:$0xff] %v773_v31 }
 0x133   :  { %804 = vst [vmem:[%s1435_s5 + $0xe8] sm:$0xff] %v772_v38  ;;  %806 = vst [vmem:[%s1435_s5 + $0xf8] sm:$0xff] %v774_v39 }

// kernel: _lambda_.9
= control target key start
LH: loop header
LB: loop body
LE: loop exit
PB: predicated region body
PF: predicated region fallthrough
CT: control target
= control target key end

     0   :  { %v4531_v1 = vmov 0   ;;  %v4533_v37 = vmov 0.0|0.0   ;;  %s4525_s2 = inlined_call_operand.vmem [shape: bf16[128,512], index: 2, kind: input, shape index: {}]   ;;  %s4526_s3 = inlined_call_operand.vmem [shape: bf16[128,512], index: 3, kind: input, shape index: {}]   ;;  %s4527_s0 = inlined_call_operand.vmem [shape: f32[8,8,512], index: 0, kind: input, shape index: {}]   ;;  %s4528_s1 = inlined_call_operand.vmem [shape: f32[8,8,512], index: 1, kind: input, shape index: {}]   ;;  %s4529_s4 = inlined_call_operand.vmem [shape: f32[8,8,128], index: 4, kind: output, shape index: {0}]   ;;  %s4530_s5 = inlined_call_operand.vmem [shape: f32[8,8,128], index: 5, kind: output, shape index: {1}]  }
   0x1   :  { %v3024_v0 = vld [vmem:[%s4525_s2 + $0x4] ss:$16 sps:$4 sm:$0xff]   ;;  %332 = vmatprep.mubr.bf16.mxu0 %v4531_v1  ;;  %373 = vmatprep.mubr.bf16.mxu1 %v4531_v1  ;;  %v3031_v2 = vld [vmem:[%s4525_s2] ss:$16 sps:$4 sm:$0xff]   ;;  %v3054_v6 = vld [vmem:[%s4525_s2 + $0xc] ss:$16 sps:$4 sm:$0xff]  }
   0x2   :  { %300 = vmatprep.subr.bf16.mxu0 %v3024_v0  ;;  %v3037_v3 = vld [vmem:[%s4525_s2 + $0x24] ss:$16 sps:$4 sm:$0xff]   ;;  %v3043_v4 = vld [vmem:[%s4525_s2 + $0x20] ss:$16 sps:$4 sm:$0xff]   ;;  %v3059_v7 = vld [vmem:[%s4525_s2 + $0x8] ss:$16 sps:$4 sm:$0xff]   ;;  %341 = vmatprep.subr.bf16.mxu1 %v3054_v6 }
   0x3   :  { %301 = vmatpush1.bf16.msra.mxu0 %v3031_v2  ;;  %v3049_v5 = vld [vmem:[%s4525_s2 + $0x44] ss:$16 sps:$4 sm:$0xff]   ;;  %v3065_v8 = vld [vmem:[%s4525_s2 + $0x40] ss:$16 sps:$4 sm:$0xff]   ;;  %342 = vmatpush1.bf16.msra.mxu1 %v3059_v7  ;;  %v3078_v10 = vld [vmem:[%s4525_s2 + $0x2c] ss:$16 sps:$4 sm:$0xff]  }
   0x4   :  { %302 = vmatprep.subr.bf16.mxu0 %v3037_v3  ;;  %v3072_v9 = vld [vmem:[%s4525_s2 + $0x64] ss:$16 sps:$4 sm:$0xff]   ;;  %v3083_v11 = vld [vmem:[%s4525_s2 + $0x28] ss:$16 sps:$4 sm:$0xff]   ;;  %343 = vmatprep.subr.bf16.mxu1 %v3078_v10  ;;  %v3090_v12 = vld [vmem:[%s4525_s2 + $0x60] ss:$16 sps:$4 sm:$0xff]  }
   0x5   :  { %v3095_v13 = vld [vmem:[%s4525_s2 + $0x84] ss:$16 sps:$4 sm:$0xff]   ;;  %v3100_v14 = vld [vmem:[%s4525_s2 + $0x4c] ss:$16 sps:$4 sm:$0xff]   ;;  %v3107_v15 = vld [vmem:[%s4525_s2 + $0x48] ss:$16 sps:$4 sm:$0xff]  }
   0x6   :  { %v3113_v16 = vld [vmem:[%s4525_s2 + $0x6c] ss:$16 sps:$4 sm:$0xff]   ;;  %v3119_v17 = vld [vmem:[%s4525_s2 + $0x80] ss:$16 sps:$4 sm:$0xff]   ;;  %v3125_v18 = vld [vmem:[%s4525_s2 + $0xa4] ss:$16 sps:$4 sm:$0xff]  }
   0x7   :  { %303 = vmatpush1.bf16.msra.mxu0 %v3043_v4  ;;  %344 = vmatpush1.bf16.msra.mxu1 %v3083_v11  ;;  %4612 = vst [vmem:[#allocation6_spill] sm:$0xff] %v3119_v17  ;;  %4613 = vst [vmem:[#allocation7_spill] sm:$0xff] %v3125_v18  ;;  %v3131_v19 = vld [vmem:[%s4525_s2 + $0x68] ss:$16 sps:$4 sm:$0xff]   ;;  %v3137_v20 = vld [vmem:[%s4525_s2 + $0x8c] ss:$16 sps:$4 sm:$0xff]  }
   0x8   :  { %304 = vmatprep.subr.bf16.mxu0 %v3049_v5  ;;  %345 = vmatprep.subr.bf16.mxu1 %v3100_v14  ;;  %v3143_v21 = vld [vmem:[%s4525_s2 + $0xa0] ss:$16 sps:$4 sm:$0xff]   ;;  %v3148_v22 = vld [vmem:[%s4525_s2 + $0xc4] ss:$16 sps:$4 sm:$0xff]   ;;  %v3155_v23 = vld [vmem:[%s4525_s2 + $0x88] ss:$16 sps:$4 sm:$0xff]  }
   0x9   :  { %4614 = vst [vmem:[#allocation8_spill] sm:$0xff] %v3143_v21  ;;  %4615 = vst [vmem:[#allocation9_spill] sm:$0xff] %v3148_v22  ;;  %v3161_v24 = vld [vmem:[%s4525_s2 + $0xac] ss:$16 sps:$4 sm:$0xff]   ;;  %v3167_v25 = vld [vmem:[%s4525_s2 + $0xc0] ss:$16 sps:$4 sm:$0xff]  }
   0xa   :  { %4616 = vst [vmem:[#allocation10_spill] sm:$0xff] %v3155_v23  ;;  %4617 = vst [vmem:[#allocation11_spill] sm:$0xff] %v3161_v24  ;;  %v3173_v26 = vld [vmem:[%s4525_s2 + $0xe4] ss:$16 sps:$4 sm:$0xff]   ;;  %v3179_v27 = vld [vmem:[%s4525_s2 + $0xa8] ss:$16 sps:$4 sm:$0xff]  }
   0xb   :  { %305 = vmatpush1.bf16.msra.mxu0 %v3065_v8  ;;  %346 = vmatpush1.bf16.msra.mxu1 %v3107_v15  ;;  %4618 = vst [vmem:[#allocation12_spill] sm:$0xff] %v3167_v25  ;;  %4619 = vst [vmem:[#allocation13_spill] sm:$0xff] %v3173_v26  ;;  %v3185_v28 = vld [vmem:[%s4525_s2 + $0xcc] ss:$16 sps:$4 sm:$0xff]   ;;  %v3191_v29 = vld [vmem:[%s4525_s2 + $0xe0] ss:$16 sps:$4 sm:$0xff]  }
   0xc   :  { %306 = vmatprep.subr.bf16.mxu0 %v3072_v9  ;;  %347 = vmatprep.subr.bf16.mxu1 %v3113_v16  ;;  %4620 = vst [vmem:[#allocation14_spill] sm:$0xff] %v3179_v27  ;;  %4621 = vst [vmem:[#allocation15_spill] sm:$0xff] %v3185_v28  ;;  %v3196_v30 = vld [vmem:[%s4526_s3 + $0x4] ss:$16 sps:$4 sm:$0xff]   ;;  %v3203_v31 = vld [vmem:[%s4525_s2 + $0xc8] ss:$16 sps:$4 sm:$0xff]  }
   0xd   :  { %4622 = vst [vmem:[#allocation16_spill] sm:$0xff] %v3191_v29  ;;  %4623 = vst [vmem:[#allocation17_spill] sm:$0xff] %v3196_v30  ;;  %v3209_v32 = vld [vmem:[%s4525_s2 + $0xec] ss:$16 sps:$4 sm:$0xff]   ;;  %v3215_v33 = vld [vmem:[%s4526_s3] ss:$16 sps:$4 sm:$0xff]  }
   0xe   :  { %4624 = vst [vmem:[#allocation18_spill] sm:$0xff] %v3203_v31  ;;  %4625 = vst [vmem:[#allocation19_spill] sm:$0xff] %v3209_v32  ;;  %v3221_v34 = vld [vmem:[%s4526_s3 + $0x24] ss:$16 sps:$4 sm:$0xff]   ;;  %v3227_v35 = vld [vmem:[%s4525_s2 + $0xe8] ss:$16 sps:$4 sm:$0xff]  }
   0xf   :  { %307 = vmatpush1.bf16.msra.mxu0 %v3090_v12  ;;  %348 = vmatpush1.bf16.msra.mxu1 %v3131_v19  ;;  %4626 = vst [vmem:[#allocation20_spill] sm:$0xff] %v3227_v35  ;;  %v3233_v36 = vld [vmem:[%s4526_s3 + $0xc] ss:$16 sps:$4 sm:$0xff]   ;;  %v3240_v38 = vld [vmem:[%s4526_s3 + $0x20] ss:$16 sps:$4 sm:$0xff]  }
  0x10   :  { %308 = vmatprep.subr.bf16.mxu0 %v3095_v13  ;;  %349 = vmatprep.subr.bf16.mxu1 %v3137_v20  ;;  %4627 = vst [vmem:[#allocation21_spill] sm:$0xff] %v3233_v36  ;;  %v3245_v39 = vld [vmem:[%s4526_s3 + $0x44] ss:$16 sps:$4 sm:$0xff]   ;;  %v3253_v40 = vld [vmem:[%s4526_s3 + $0x8] ss:$16 sps:$4 sm:$0xff]  }
  0x11   :  { %v3259_v41 = vld [vmem:[%s4526_s3 + $0x2c] ss:$16 sps:$4 sm:$0xff]   ;;  %v3265_v42 = vld [vmem:[%s4526_s3 + $0x40] ss:$16 sps:$4 sm:$0xff]   ;;  %v3270_v43 = vld [vmem:[%s4526_s3 + $0x64] ss:$16 sps:$4 sm:$0xff]  }
  0x12   :  { %v3278_v44 = vld [vmem:[%s4526_s3 + $0x28] ss:$16 sps:$4 sm:$0xff]   ;;  %v3284_v45 = vld [vmem:[%s4526_s3 + $0x4c] ss:$16 sps:$4 sm:$0xff]   ;;  %v3291_v46 = vld [vmem:[%s4526_s3 + $0x60] ss:$16 sps:$4 sm:$0xff]  }
  0x13   :  { %309 = vmatpush1.bf16.msra.mxu0 %v3119_v17  ;;  %350 = vmatpush1.bf16.msra.mxu1 %v3155_v23  ;;  %v3297_v47 = vld [vmem:[%s4526_s3 + $0x84] ss:$16 sps:$4 sm:$0xff]   ;;  %v3303_v48 = vld [vmem:[%s4526_s3 + $0x48] ss:$16 sps:$4 sm:$0xff]   ;;  %v3309_v49 = vld [vmem:[%s4526_s3 + $0x6c] ss:$16 sps:$4 sm:$0xff]  }
  0x14   :  { %310 = vmatprep.subr.bf16.mxu0 %v3125_v18  ;;  %351 = vmatprep.subr.bf16.mxu1 %v3161_v24  ;;  %v3315_v50 = vld [vmem:[%s4526_s3 + $0x80] ss:$16 sps:$4 sm:$0xff]   ;;  %v3321_v51 = vld [vmem:[%s4526_s3 + $0xa4] ss:$16 sps:$4 sm:$0xff]   ;;  %v3327_v52 = vld [vmem:[%s4526_s3 + $0x68] ss:$16 sps:$4 sm:$0xff]  }
  0x15   :  { %v3333_v53 = vld [vmem:[%s4526_s3 + $0x8c] ss:$16 sps:$4 sm:$0xff]   ;;  %v3339_v54 = vld [vmem:[%s4526_s3 + $0xa0] ss:$16 sps:$4 sm:$0xff]   ;;  %v3345_v55 = vld [vmem:[%s4526_s3 + $0xc4] ss:$16 sps:$4 sm:$0xff]  }
  0x16   :  { %v3351_v56 = vld [vmem:[%s4526_s3 + $0x88] ss:$16 sps:$4 sm:$0xff]   ;;  %v3357_v57 = vld [vmem:[%s4526_s3 + $0xac] ss:$16 sps:$4 sm:$0xff]   ;;  %v3363_v58 = vld [vmem:[%s4526_s3 + $0xc0] ss:$16 sps:$4 sm:$0xff]  }
  0x17   :  { %311 = vmatpush1.bf16.msra.mxu0 %v3143_v21  ;;  %352 = vmatpush1.bf16.msra.mxu1 %v3179_v27  ;;  %4628 = vst [vmem:[#allocation22_spill] sm:$0xff] %v3363_v58  ;;  %v3369_v59 = vld [vmem:[%s4526_s3 + $0xe4] ss:$16 sps:$4 sm:$0xff]   ;;  %v3375_v60 = vld [vmem:[%s4526_s3 + $0xa8] ss:$16 sps:$4 sm:$0xff]  }
  0x18   :  { %312 = vmatprep.subr.bf16.mxu0 %v3148_v22  ;;  %353 = vmatprep.subr.bf16.mxu1 %v3185_v28  ;;  %4629 = vst [vmem:[#allocation23_spill] sm:$0xff] %v3369_v59  ;;  %v3381_v61 = vld [vmem:[%s4526_s3 + $0xcc] ss:$16 sps:$4 sm:$0xff]   ;;  %v3387_v62 = vld [vmem:[%s4526_s3 + $0xe0] ss:$16 sps:$4 sm:$0xff]  }
  0x19   :  { %v3394_v63 = vld [vmem:[%s4526_s3 + $0xc8] ss:$16 sps:$4 sm:$0xff]  }
  0x1b   :  { %313 = vmatpush1.bf16.msra.mxu0 %v3167_v25  ;;  %354 = vmatpush1.bf16.msra.mxu1 %v3203_v31 }
  0x1c   :  { %314 = vmatprep.subr.bf16.mxu0 %v3173_v26  ;;  %355 = vmatprep.subr.bf16.mxu1 %v3209_v32 }
  0x1f   :  { %315 = vmatpush1.bf16.msra.mxu0 %v3191_v29  ;;  %356 = vmatpush1.bf16.msra.mxu1 %v3227_v35 }
  0x20   :  { %576 = vmatprep.subr.bf16.mxu0 %v3196_v30  ;;  %617 = vmatprep.subr.bf16.mxu1 %v3233_v36 }
  0x22   :  { %333 = vmatmul.mubr.bf16.vlgmr.msra.gmra.mrb[0].mxu0 %v4533_v37  ;;  %374 = vmatmul.mubr.bf16.vlgmr.msra.gmra.mrb[0].mxu1 %v4533_v37  ;;  %v3407_v37 = vld [vmem:[%s4526_s3 + $0xe8] ss:$16 sps:$4 sm:$0xff]  }
  0x23   :  { %577 = vmatpush1.bf16.msra.mxu0 %v3215_v33  ;;  %608 = vmatprep.mubr.bf16.mxu0 %v4531_v1 }
  0x24   :  { %578 = vmatprep.subr.bf16.mxu0 %v3221_v34  ;;  %618 = vmatpush1.bf16.msra.mxu1 %v3253_v40 }
  0x25   :  { %619 = vmatprep.subr.bf16.mxu1 %v3259_v41  ;;  %649 = vmatprep.mubr.bf16.mxu1 %v4531_v1  ;;  %v3400_v1 = vld [vmem:[%s4526_s3 + $0xec] ss:$16 sps:$4 sm:$0xff]  }
  0x27   :  { %579 = vmatpush1.bf16.msra.mxu0 %v3240_v38 }
  0x28   :  { %580 = vmatprep.subr.bf16.mxu0 %v3245_v39  ;;  %620 = vmatpush1.bf16.msra.mxu1 %v3278_v44 }
  0x29   :  { %621 = vmatprep.subr.bf16.mxu1 %v3284_v45 }
  0x2b   :  { %581 = vmatpush1.bf16.msra.mxu0 %v3265_v42 }
  0x2c   :  { %582 = vmatprep.subr.bf16.mxu0 %v3270_v43  ;;  %622 = vmatpush1.bf16.msra.mxu1 %v3303_v48 }
  0x2d   :  { %623 = vmatprep.subr.bf16.mxu1 %v3309_v49 }
  0x2f   :  { %583 = vmatpush1.bf16.msra.mxu0 %v3291_v46 }
  0x30   :  { %584 = vmatprep.subr.bf16.mxu0 %v3297_v47  ;;  %624 = vmatpush1.bf16.msra.mxu1 %v3327_v52 }
  0x31   :  { %625 = vmatprep.subr.bf16.mxu1 %v3333_v53 }
  0x33   :  { %585 = vmatpush1.bf16.msra.mxu0 %v3315_v50 }
  0x34   :  { %586 = vmatprep.subr.bf16.mxu0 %v3321_v51  ;;  %626 = vmatpush1.bf16.msra.mxu1 %v3351_v56 }
  0x35   :  { %627 = vmatprep.subr.bf16.mxu1 %v3357_v57 }
  0x37   :  { %587 = vmatpush1.bf16.msra.mxu0 %v3339_v54 }
  0x38   :  { %588 = vmatprep.subr.bf16.mxu0 %v3345_v55  ;;  %628 = vmatpush1.bf16.msra.mxu1 %v3375_v60 }
  0x39   :  { %629 = vmatprep.subr.bf16.mxu1 %v3381_v61 }
  0x3b   :  { %589 = vmatpush1.bf16.msra.mxu0 %v3363_v58  ;;  %v4631_v58 = vmov 0  }
  0x3c   :  { %590 = vmatprep.subr.bf16.mxu0 %v3369_v59  ;;  %630 = vmatpush1.bf16.msra.mxu1 %v3394_v63  ;;  %v4630_v59 = vmov 0.0|0.0  }
  0x3d   :  { %631 = vmatprep.subr.bf16.mxu1 %v3400_v1 }
  0x3f   :  { %591 = vmatpush1.bf16.msra.mxu0 %v3387_v62 }
  0x40   :  { %695 = vmatprep.subr.bf16.mxu0 %v3024_v0  ;;  %632 = vmatpush1.bf16.msra.mxu1 %v3407_v37 }
  0x41   :  { %736 = vmatprep.subr.bf16.mxu1 %v3054_v6 }
  0x42   :  { %609 = vmatmul.mubr.bf16.vlgmr.msra.gmra.mrb[4].mxu0 %v4630_v59 }
  0x43   :  { %696 = vmatpush1.bf16.msra.mxu0 %v3031_v2  ;;  %727 = vmatprep.mubr.bf16.mxu0 %v4631_v58 }
  0x44   :  { %697 = vmatprep.subr.bf16.mxu0 %v3037_v3  ;;  %650 = vmatmul.mubr.bf16.vlgmr.msra.gmra.mrb[4].mxu1 %v4630_v59  ;;  %v135_v59 = vld [vmem:[%s4527_s0] sm:$0xff] }
  0x45   :  { %737 = vmatpush1.bf16.msra.mxu1 %v3059_v7  ;;  %768 = vmatprep.mubr.bf16.mxu1 %v4631_v58 }
  0x46   :  { %738 = vmatprep.subr.bf16.mxu1 %v3078_v10 }
  0x47   :  { %698 = vmatpush1.bf16.msra.mxu0 %v3043_v4 }
  0x48   :  { %699 = vmatprep.subr.bf16.mxu0 %v3049_v5 }
  0x49   :  { %739 = vmatpush1.bf16.msra.mxu1 %v3083_v11 }
  0x4a   :  { %740 = vmatprep.subr.bf16.mxu1 %v3100_v14 }
  0x4b   :  { %700 = vmatpush1.bf16.msra.mxu0 %v3065_v8 }
  0x4c   :  { %701 = vmatprep.subr.bf16.mxu0 %v3072_v9 }
  0x4d   :  { %741 = vmatpush1.bf16.msra.mxu1 %v3107_v15 }
  0x4e   :  { %742 = vmatprep.subr.bf16.mxu1 %v3113_v16 }
  0x4f   :  { %702 = vmatpush1.bf16.msra.mxu0 %v3090_v12 }
  0x50   :  { %703 = vmatprep.subr.bf16.mxu0 %v3095_v13 }
  0x51   :  { %743 = vmatpush1.bf16.msra.mxu1 %v3131_v19 }
  0x52   :  { %744 = vmatprep.subr.bf16.mxu1 %v3137_v20 }
  0x53   :  { %704 = vmatpush1.bf16.msra.mxu0 %v3119_v17 }
  0x54   :  { %705 = vmatprep.subr.bf16.mxu0 %v3125_v18 }
  0x55   :  { %745 = vmatpush1.bf16.msra.mxu1 %v3155_v23 }
  0x56   :  { %746 = vmatprep.subr.bf16.mxu1 %v3161_v24 }
  0x57   :  { %706 = vmatpush1.bf16.msra.mxu0 %v3143_v21 }
  0x58   :  { %707 = vmatprep.subr.bf16.mxu0 %v3148_v22 }
  0x59   :  { %747 = vmatpush1.bf16.msra.mxu1 %v3179_v27 }
  0x5a   :  { %748 = vmatprep.subr.bf16.mxu1 %v3185_v28 }
  0x5b   :  { %708 = vmatpush1.bf16.msra.mxu0 %v3167_v25 }
  0x5c   :  { %709 = vmatprep.subr.bf16.mxu0 %v3173_v26  ;;  %v136_v26 = vld [vmem:[%s4527_s0 + $0x8] sm:$0xff] }
  0x5d   :  { %749 = vmatpush1.bf16.msra.mxu1 %v3203_v31 }
  0x5e   :  { %750 = vmatprep.subr.bf16.mxu1 %v3209_v32 }
  0x5f   :  { %710 = vmatpush1.bf16.msra.mxu0 %v3191_v29 }
  0x60   :  { %811 = vmatprep.subr.bf16.mxu0 %v3196_v30 }
  0x61   :  { %751 = vmatpush1.bf16.msra.mxu1 %v3227_v35 }
  0x62   :  { %852 = vmatprep.subr.bf16.mxu1 %v3233_v36  ;;  %v138_v36 = vld [vmem:[%s4527_s0 + $0x18] sm:$0xff] }
  0xf5   :  { %v334_v25 = vpop.f32.mrb[0].mxu0  ;;  %v375_v35 = vpop.f32.mrb[0].mxu1 }
  0xf6   :  { %v382_v29 = vadd.f32 %v334_v25, %v135_v59  ;;  %v336_v28 = vpop.f32.mrb[1].mxu0  ;;  %v377_v21 = vpop.f32.mrb[1].mxu1  ;;  %v137_v25 = vld [vmem:[%s4527_s0 + $0x10] sm:$0xff] }
  0xf7   :  { %v383_v31 = vadd.f32 %v336_v28, %v136_v26  ;;  %v338_v22 = vpop.f32.mrb[2].mxu0  ;;  %v385_v24 = vadd.f32 %v377_v21, %v138_v36  ;;  %v379_v18 = vpop.f32.mrb[2].mxu1 }
  0xf8   :  { %v2411_v30 = vmul.f32 -1.442695, %v382_v29  ;;  %v339_v27 = vpop.f32.mrb[3].mxu0  ;;  %v380_v23 = vpop.f32.mrb[3].mxu1  ;;  %v384_v22 = vadd.f32 %v375_v35, %v137_v25  ;;  %v2415_v35 = vld [vmem:[%s4528_s1 + $0xe8] sm:$0xff] }
  0xf9   :  { %v2412_v32 = vmul.f32 -1.442695, %v383_v31  ;;  %v2413_v26 = vmul.f32 -1.442695, %v385_v24  ;;  %v2414_v24 = vld [vmem:[%s4528_s1 + $0xe0] sm:$0xff] }
  0xfa   :  { %2659 = vpow2.f32 %v2411_v30 }
  0xfb   :  { %2661 = vpow2.f32 %v2412_v32 }
  0xfc   :  { %2663 = vpow2.f32 %v2413_v26 }
  0xfd   :  { %2665 = vtanh.f32 %v384_v22 }
 0x104   :  { %v2660_v28 = vpop.eup %2659 }
 0x105   :  { %v2662_v27 = vpop.eup %2661  ;;  %v389_v29 = vadd.f32 1.0, %v2660_v28 }
 0x106   :  { %v395_v31 = vadd.f32 1.0, %v2662_v27  ;;  %v2664_v30 = vpop.eup %2663 }
 0x107   :  { %2667 = vrcp.f32 %v389_v29  ;;  %v2666_v32 = vpop.eup %2665  ;;  %v402_v21 = vadd.f32 1.0, %v2664_v30 }
 0x108   :  { %2669 = vrcp.f32 %v395_v31 }
 0x109   :  { %2671 = vrcp.f32 %v402_v21 }
 0x111   :  { %v2668_v59 = vpop.eup %2667 }
 0x112   :  { %v2670_v18 = vpop.eup %2669  ;;  %v406_v23 = vmul.f32 %v2668_v59, %v2666_v32  ;;  %v2417_v59 = vld [vmem:[%s4528_s1 + $0xf8] sm:$0xff] }
 0x113   :  { %v405_v36 = vmul.f32 0.0, %v2670_v18 }
 0x115   :  { %v3467_v25 = vadd.f32 %v406_v23, %v405_v36  ;;  %v610_v26 = vpop.f32.mrb[4].mxu0 }
 0x116   :  { %v658_v22 = vadd.f32 %v2414_v24, %v610_v26  ;;  %v612_v28 = vpop.f32.mrb[5].mxu0  ;;  %v2416_v24 = vld [vmem:[%s4528_s1 + $0xf0] sm:$0xff] }
 0x117   :  { %2673 = vtanh.f32 %v3467_v25  ;;  %v659_v27 = vadd.f32 %v2415_v35, %v612_v28  ;;  %v614_v29 = vpop.f32.mrb[6].mxu0  ;;  %v651_v18 = vpop.f32.mrb[4].mxu1 }
 0x118   :  { %v2450_v31 = vmul.f32 -1.442695, %v658_v22  ;;  %v615_v30 = vpop.f32.mrb[7].mxu0  ;;  %v653_v23 = vpop.f32.mrb[5].mxu1  ;;  %v660_v28 = vadd.f32 %v2416_v24, %v651_v18 }
 0x119   :  { %v2451_v32 = vmul.f32 -1.442695, %v659_v27  ;;  %v661_v36 = vadd.f32 %v2417_v59, %v653_v23  ;;  %v655_v21 = vpop.f32.mrb[6].mxu1  ;;  %v2672_v35 = vpop.eup %2671 }
 0x11a   :  { %2675 = vpow2.f32 %v2450_v31  ;;  %v656_v17 = vpop.f32.mrb[7].mxu1 }
 0x11b   :  { %2677 = vpow2.f32 %v2451_v32  ;;  %v2452_v26 = vmul.f32 -1.442695, %v661_v36 }
 0x11d   :  { %2679 = vpow2.f32 %v2452_v26 }
 0x11e   :  { %2681 = vtanh.f32 %v660_v28  ;;  %v4632_v28 = vld [vmem:[#allocation22_spill] sm:$0xff] }
 0x121   :  { %v2674_v22 = vpop.eup %2673 }
 0x122   :  { %v409_v27 = vmul.f32 %v2674_v22, %v2672_v35 }
 0x124   :  { %v2676_v29 = vpop.eup %2675  ;;  %686 = vst [vmem:[%s4529_s4] sm:$0xff] %v409_v27  ;;  %v694_v31 = vpack.c.bf16 %v409_v27, %v409_v27  ;;  %v4633_v27 = vld [vmem:[#allocation23_spill] sm:$0xff] }
 0x125   :  { %v2678_v30 = vpop.eup %2677  ;;  %v665_v32 = vadd.f32 1.0, %v2676_v29 }
 0x126   :  { %v671_v17 = vadd.f32 1.0, %v2678_v30  ;;  %728 = vmatmul.mubr.bf16.vlgmr.msra.gmra.mrb[8].mxu0 %v694_v31  ;;  %769 = vmatmul.mubr.bf16.vlgmr.msra.gmra.mrb[8].mxu1 %v694_v31 }
 0x127   :  { %2683 = vrcp.f32 %v665_v32  ;;  %812 = vmatpush1.bf16.msra.mxu0 %v3215_v33  ;;  %853 = vmatpush1.bf16.msra.mxu1 %v3253_v40  ;;  %v2680_v59 = vpop.eup %2679  ;;  %v4640_v32 = vld [vmem:[#allocation9_spill] sm:$0xff] }
 0x128   :  { %2685 = vrcp.f32 %v671_v17  ;;  %813 = vmatprep.subr.bf16.mxu0 %v3221_v34  ;;  %854 = vmatprep.subr.bf16.mxu1 %v3259_v41  ;;  %v2682_v18 = vpop.eup %2681  ;;  %v678_v36 = vadd.f32 1.0, %v2680_v59  ;;  %v4641_v17 = vld [vmem:[#allocation15_spill] sm:$0xff]  ;;  %v4642_v59 = vld [vmem:[#allocation12_spill] sm:$0xff] }
 0x129   :  { %843 = vmatprep.mubr.bf16.mxu0 %v4631_v58  ;;  %884 = vmatprep.mubr.bf16.mxu1 %v4631_v58 }
 0x12a   :  { %2687 = vrcp.f32 %v678_v36  ;;  %v4645_v36 = vld [vmem:[#allocation19_spill] sm:$0xff] }
 0x12b   :  { %814 = vmatpush1.bf16.msra.mxu0 %v3240_v38  ;;  %855 = vmatpush1.bf16.msra.mxu1 %v3278_v44 }
 0x12c   :  { %815 = vmatprep.subr.bf16.mxu0 %v3245_v39  ;;  %856 = vmatprep.subr.bf16.mxu1 %v3284_v45 }
 0x12f   :  { %816 = vmatpush1.bf16.msra.mxu0 %v3265_v42  ;;  %857 = vmatpush1.bf16.msra.mxu1 %v3303_v48 }
 0x130   :  { %817 = vmatprep.subr.bf16.mxu0 %v3270_v43  ;;  %858 = vmatprep.subr.bf16.mxu1 %v3309_v49 }
 0x131   :  { %v2684_v23 = vpop.eup %2683 }
 0x132   :  { %v2686_v21 = vpop.eup %2685  ;;  %v682_v24 = vmul.f32 %v2684_v23, %v2682_v18  ;;  %v4643_v18 = vld [vmem:[#allocation18_spill] sm:$0xff]  ;;  %v4644_v23 = vld [vmem:[#allocation13_spill] sm:$0xff] }
 0x133   :  { %v681_v35 = vmul.f32 0.0, %v2686_v21  ;;  %818 = vmatpush1.bf16.msra.mxu0 %v3291_v46  ;;  %859 = vmatpush1.bf16.msra.mxu1 %v3327_v52  ;;  %v4646_v21 = vld [vmem:[#allocation16_spill] sm:$0xff] }
 0x134   :  { %819 = vmatprep.subr.bf16.mxu0 %v3297_v47  ;;  %860 = vmatprep.subr.bf16.mxu1 %v3333_v53  ;;  %v2688_v22 = vpop.eup %2687 }
 0x135   :  { %v3497_v26 = vadd.f32 %v682_v24, %v681_v35  ;;  %v4647_v24 = vld [vmem:[#allocation20_spill] sm:$0xff]  ;;  %v4648_v35 = vld [vmem:[#allocation17_spill] sm:$0xff] }
 0x137   :  { %2689 = vtanh.f32 %v3497_v26  ;;  %820 = vmatpush1.bf16.msra.mxu0 %v3315_v50  ;;  %861 = vmatpush1.bf16.msra.mxu1 %v3351_v56 }
 0x138   :  { %821 = vmatprep.subr.bf16.mxu0 %v3321_v51  ;;  %862 = vmatprep.subr.bf16.mxu1 %v3357_v57 }
 0x13b   :  { %822 = vmatpush1.bf16.msra.mxu0 %v3339_v54  ;;  %863 = vmatpush1.bf16.msra.mxu1 %v3375_v60 }
 0x13c   :  { %823 = vmatprep.subr.bf16.mxu0 %v3345_v55  ;;  %864 = vmatprep.subr.bf16.mxu1 %v3381_v61 }
 0x13f   :  { %824 = vmatpush1.bf16.msra.mxu0 %v4632_v28  ;;  %865 = vmatpush1.bf16.msra.mxu1 %v3394_v63 }
 0x140   :  { %825 = vmatprep.subr.bf16.mxu0 %v4633_v27  ;;  %866 = vmatprep.subr.bf16.mxu1 %v3400_v1 }
 0x141   :  { %v2690_v29 = vpop.eup %2689 }
 0x142   :  { %v685_v31 = vmul.f32 %v2690_v29, %v2688_v22  ;;  %v4649_v22 = vld [vmem:[#allocation21_spill] sm:$0xff]  ;;  %v2454_v29 = vld [vmem:[%s4527_s0 + $0x20] sm:$0xff] }
 0x143   :  { %826 = vmatpush1.bf16.msra.mxu0 %v3387_v62  ;;  %867 = vmatpush1.bf16.msra.mxu1 %v3407_v37 }
 0x144   :  { %2453 = vst [vmem:[%s4530_s5 + $0x38] sm:$0xff] %v685_v31  ;;  %v810_v30 = vpack.c.bf16 %v685_v31, %v685_v31  ;;  %931 = vmatprep.subr.bf16.mxu0 %v3024_v0  ;;  %972 = vmatprep.subr.bf16.mxu1 %v3054_v6  ;;  %v4634_v0 = vld [vmem:[#allocation6_spill] sm:$0xff]  ;;  %v2455_v31 = vld [vmem:[%s4527_s0 + $0x28] sm:$0xff] }
 0x146   :  { %844 = vmatmul.mubr.bf16.vlgmr.msra.gmra.mrb[12].mxu0 %v810_v30  ;;  %885 = vmatmul.mubr.bf16.vlgmr.msra.gmra.mrb[12].mxu1 %v810_v30 }
 0x147   :  { %932 = vmatpush1.bf16.msra.mxu0 %v3031_v2  ;;  %973 = vmatpush1.bf16.msra.mxu1 %v3059_v7  ;;  %v4635_v2 = vld [vmem:[#allocation10_spill] sm:$0xff] }
 0x148   :  { %933 = vmatprep.subr.bf16.mxu0 %v3037_v3  ;;  %974 = vmatprep.subr.bf16.mxu1 %v3078_v10  ;;  %v4636_v3 = vld [vmem:[#allocation7_spill] sm:$0xff] }
 0x149   :  { %963 = vmatprep.mubr.bf16.mxu0 %v4631_v58  ;;  %1004 = vmatprep.mubr.bf16.mxu1 %v4631_v58 }
 0x14b   :  { %934 = vmatpush1.bf16.msra.mxu0 %v3043_v4  ;;  %975 = vmatpush1.bf16.msra.mxu1 %v3083_v11  ;;  %v4637_v4 = vld [vmem:[#allocation11_spill] sm:$0xff] }
 0x14c   :  { %935 = vmatprep.subr.bf16.mxu0 %v3049_v5  ;;  %976 = vmatprep.subr.bf16.mxu1 %v3100_v14  ;;  %v4638_v5 = vld [vmem:[#allocation8_spill] sm:$0xff] }
 0x14f   :  { %936 = vmatpush1.bf16.msra.mxu0 %v3065_v8  ;;  %977 = vmatpush1.bf16.msra.mxu1 %v3107_v15  ;;  %v4639_v8 = vld [vmem:[#allocation14_spill] sm:$0xff] }
 0x150   :  { %937 = vmatprep.subr.bf16.mxu0 %v3072_v9  ;;  %978 = vmatprep.subr.bf16.mxu1 %v3113_v16 }
 0x153   :  { %938 = vmatpush1.bf16.msra.mxu0 %v3090_v12  ;;  %979 = vmatpush1.bf16.msra.mxu1 %v3131_v19 }
 0x154   :  { %939 = vmatprep.subr.bf16.mxu0 %v3095_v13  ;;  %980 = vmatprep.subr.bf16.mxu1 %v3137_v20 }
 0x157   :  { %940 = vmatpush1.bf16.msra.mxu0 %v4634_v0  ;;  %981 = vmatpush1.bf16.msra.mxu1 %v4635_v2 }
 0x158   :  { %941 = vmatprep.subr.bf16.mxu0 %v4636_v3  ;;  %982 = vmatprep.subr.bf16.mxu1 %v4637_v4 }
 0x15b   :  { %942 = vmatpush1.bf16.msra.mxu0 %v4638_v5  ;;  %983 = vmatpush1.bf16.msra.mxu1 %v4639_v8  ;;  %v2457_v5 = vld [vmem:[%s4527_s0 + $0x38] sm:$0xff] }
 0x15c   :  { %943 = vmatprep.subr.bf16.mxu0 %v4640_v32  ;;  %984 = vmatprep.subr.bf16.mxu1 %v4641_v17 }
 0x15f   :  { %944 = vmatpush1.bf16.msra.mxu0 %v4642_v59  ;;  %985 = vmatpush1.bf16.msra.mxu1 %v4643_v18 }
 0x160   :  { %945 = vmatprep.subr.bf16.mxu0 %v4644_v23  ;;  %986 = vmatprep.subr.bf16.mxu1 %v4645_v36 }
 0x163   :  { %946 = vmatpush1.bf16.msra.mxu0 %v4646_v21  ;;  %987 = vmatpush1.bf16.msra.mxu1 %v4647_v24 }
 0x164   :  { %1047 = vmatprep.subr.bf16.mxu0 %v4648_v35  ;;  %1088 = vmatprep.subr.bf16.mxu1 %v4649_v22 }
 0x1f9   :  { %v729_v30 = vpop.f32.mrb[8].mxu0  ;;  %v770_v23 = vpop.f32.mrb[8].mxu1 }
 0x1fa   :  { %v777_v18 = vadd.f32 %v2454_v29, %v729_v30  ;;  %v731_v36 = vpop.f32.mrb[9].mxu0  ;;  %v772_v59 = vpop.f32.mrb[9].mxu1  ;;  %v2456_v29 = vld [vmem:[%s4527_s0 + $0x30] sm:$0xff] }
 0x1fb   :  { %v778_v21 = vadd.f32 %v2455_v31, %v731_v36  ;;  %v733_v17 = vpop.f32.mrb[10].mxu0  ;;  %v774_v24 = vpop.f32.mrb[10].mxu1  ;;  %v780_v4 = vadd.f32 %v2457_v5, %v772_v59  ;;  %v779_v3 = vadd.f32 %v2456_v29, %v770_v23  ;;  %v2462_v23 = vld [vmem:[%s4528_s1 + $0xc8] sm:$0xff] }
 0x1fc   :  { %v2458_v32 = vmul.f32 -1.442695, %v777_v18  ;;  %v734_v35 = vpop.f32.mrb[11].mxu0  ;;  %v775_v8 = vpop.f32.mrb[11].mxu1 }
 0x1fd   :  { %v2459_v22 = vmul.f32 -1.442695, %v778_v21  ;;  %v2460_v30 = vmul.f32 -1.442695, %v780_v4  ;;  %v2461_v4 = vld [vmem:[%s4528_s1 + $0xc0] sm:$0xff] }
 0x1fe   :  { %2691 = vpow2.f32 %v2458_v32 }
 0x1ff   :  { %2693 = vpow2.f32 %v2459_v22 }
 0x200   :  { %2695 = vpow2.f32 %v2460_v30 }
 0x201   :  { %2697 = vtanh.f32 %v779_v3 }
 0x208   :  { %v2692_v36 = vpop.eup %2691 }
 0x209   :  { %v2694_v17 = vpop.eup %2693  ;;  %v784_v24 = vadd.f32 1.0, %v2692_v36 }
 0x20a   :  { %v790_v8 = vadd.f32 1.0, %v2694_v17  ;;  %v2696_v32 = vpop.eup %2695 }
 0x20b   :  { %2699 = vrcp.f32 %v784_v24  ;;  %v2698_v18 = vpop.eup %2697  ;;  %v797_v5 = vadd.f32 1.0, %v2696_v32 }
 0x20c   :  { %2701 = vrcp.f32 %v790_v8 }
 0x20d   :  { %2703 = vrcp.f32 %v797_v5  ;;  %v2463_v5 = vld [vmem:[%s4528_s1 + $0xd0] sm:$0xff] }
 0x215   :  { %v2700_v21 = vpop.eup %2699 }
 0x216   :  { %v2702_v35 = vpop.eup %2701  ;;  %v801_v22 = vmul.f32 %v2700_v21, %v2698_v18 }
 0x217   :  { %v800_v59 = vmul.f32 %v2702_v35, %v3467_v25 }
 0x219   :  { %v3572_v3 = vadd.f32 %v801_v22, %v800_v59  ;;  %v845_v31 = vpop.f32.mrb[12].mxu0  ;;  %v886_v29 = vpop.f32.mrb[12].mxu1  ;;  %v2464_v22 = vld [vmem:[%s4528_s1 + $0xd8] sm:$0xff] }
 0x21a   :  { %v893_v30 = vadd.f32 %v2461_v4, %v845_v31  ;;  %v847_v36 = vpop.f32.mrb[13].mxu0  ;;  %v888_v17 = vpop.f32.mrb[13].mxu1 }
 0x21b   :  { %2705 = vtanh.f32 %v3572_v3  ;;  %v894_v24 = vadd.f32 %v2462_v23, %v847_v36  ;;  %v849_v25 = vpop.f32.mrb[14].mxu0  ;;  %v890_v8 = vpop.f32.mrb[14].mxu1  ;;  %v896_v59 = vadd.f32 %v2464_v22, %v888_v17  ;;  %v895_v36 = vadd.f32 %v2463_v5, %v886_v29 }
 0x21c   :  { %v2465_v32 = vmul.f32 -1.442695, %v893_v30  ;;  %v850_v18 = vpop.f32.mrb[15].mxu0  ;;  %v891_v21 = vpop.f32.mrb[15].mxu1 }
 0x21d   :  { %v2466_v35 = vmul.f32 -1.442695, %v894_v24  ;;  %v2704_v4 = vpop.eup %2703  ;;  %v2467_v23 = vmul.f32 -1.442695, %v896_v59 }
 0x21e   :  { %2707 = vpow2.f32 %v2465_v32 }
 0x21f   :  { %2709 = vpow2.f32 %v2466_v35 }
 0x220   :  { %2711 = vpow2.f32 %v2467_v23  ;;  %v3640_v23 = vld [vmem:[%s4525_s2 + $0x24] ss:$16 sps:$4 sm:$0xff]  }
 0x221   :  { %2713 = vtanh.f32 %v895_v36  ;;  %v4661_v36 = vld [vmem:[#allocation20_spill] sm:$0xff] }
 0x225   :  { %v2706_v31 = vpop.eup %2705 }
 0x226   :  { %v804_v25 = vmul.f32 %v2706_v31, %v2704_v4  ;;  %v3626_v4 = vld [vmem:[%s4525_s2 + $0x4] ss:$16 sps:$4 sm:$0xff]   ;;  %v3633_v31 = vld [vmem:[%s4525_s2] ss:$16 sps:$4 sm:$0xff]  }
 0x228   :  { %v2708_v30 = vpop.eup %2707  ;;  %2468 = vst [vmem:[%s4529_s4 + $0x8] sm:$0xff] %v804_v25  ;;  %v930_v24 = vpack.c.bf16 %v804_v25, %v804_v25  ;;  %v4662_v25 = vld [vmem:[#allocation17_spill] sm:$0xff] }
 0x229   :  { %v2710_v8 = vpop.eup %2709  ;;  %v900_v32 = vadd.f32 1.0, %v2708_v30  ;;  %v4663_v30 = vld [vmem:[#allocation21_spill] sm:$0xff] }
 0x22a   :  { %v906_v17 = vadd.f32 1.0, %v2710_v8  ;;  %964 = vmatmul.mubr.bf16.vlgmr.msra.gmra.mrb[16].mxu0 %v930_v24  ;;  %1005 = vmatmul.mubr.bf16.vlgmr.msra.gmra.mrb[16].mxu1 %v930_v24  ;;  %v2470_v24 = vld [vmem:[%s4527_s0 + $0x40] sm:$0xff]  ;;  %v2471_v8 = vld [vmem:[%s4527_s0 + $0x48] sm:$0xff] }
 0x22b   :  { %2715 = vrcp.f32 %v900_v32  ;;  %1048 = vmatpush1.bf16.msra.mxu0 %v3215_v33  ;;  %1089 = vmatpush1.bf16.msra.mxu1 %v3253_v40  ;;  %v2712_v33 = vpop.eup %2711 }
 0x22c   :  { %2717 = vrcp.f32 %v906_v17  ;;  %1049 = vmatprep.subr.bf16.mxu0 %v3221_v34  ;;  %1090 = vmatprep.subr.bf16.mxu1 %v3259_v41  ;;  %v2714_v34 = vpop.eup %2713 }
 0x22d   :  { %1079 = vmatprep.mubr.bf16.mxu0 %v4631_v58  ;;  %1120 = vmatprep.mubr.bf16.mxu1 %v4631_v58 }
 0x22f   :  { %1050 = vmatpush1.bf16.msra.mxu0 %v3240_v38  ;;  %1091 = vmatpush1.bf16.msra.mxu1 %v3278_v44  ;;  %v913_v38 = vadd.f32 1.0, %v2712_v33 }
 0x230   :  { %1051 = vmatprep.subr.bf16.mxu0 %v3245_v39  ;;  %1092 = vmatprep.subr.bf16.mxu1 %v3284_v45 }
 0x231   :  { %2719 = vrcp.f32 %v913_v38 }
 0x233   :  { %1052 = vmatpush1.bf16.msra.mxu0 %v3265_v42  ;;  %1093 = vmatpush1.bf16.msra.mxu1 %v3303_v48 }
 0x234   :  { %1053 = vmatprep.subr.bf16.mxu0 %v3270_v43  ;;  %1094 = vmatprep.subr.bf16.mxu1 %v3309_v49 }
 0x235   :  { %v2716_v29 = vpop.eup %2715 }
 0x236   :  { %v2718_v18 = vpop.eup %2717  ;;  %v917_v21 = vmul.f32 %v2716_v29, %v2714_v34 }
 0x237   :  { %v916_v35 = vmul.f32 %v2718_v18, %v3497_v26  ;;  %1054 = vmatpush1.bf16.msra.mxu0 %v3291_v46  ;;  %1095 = vmatpush1.bf16.msra.mxu1 %v3327_v52 }
 0x238   :  { %1055 = vmatprep.subr.bf16.mxu0 %v3297_v47  ;;  %1096 = vmatprep.subr.bf16.mxu1 %v3333_v53 }
 0x239   :  { %v3603_v39 = vadd.f32 %v917_v21, %v916_v35 }
 0x23b   :  { %2721 = vtanh.f32 %v3603_v39  ;;  %1056 = vmatpush1.bf16.msra.mxu0 %v3315_v50  ;;  %1097 = vmatpush1.bf16.msra.mxu1 %v3351_v56  ;;  %v2720_v26 = vpop.eup %2719 }
 0x23c   :  { %1057 = vmatprep.subr.bf16.mxu0 %v3321_v51  ;;  %1098 = vmatprep.subr.bf16.mxu1 %v3357_v57 }
 0x23f   :  { %1058 = vmatpush1.bf16.msra.mxu0 %v3339_v54  ;;  %1099 = vmatpush1.bf16.msra.mxu1 %v3375_v60 }
 0x240   :  { %1059 = vmatprep.subr.bf16.mxu0 %v3345_v55  ;;  %1100 = vmatprep.subr.bf16.mxu1 %v3381_v61 }
 0x243   :  { %1060 = vmatpush1.bf16.msra.mxu0 %v4632_v28  ;;  %1101 = vmatpush1.bf16.msra.mxu1 %v3394_v63 }
 0x244   :  { %1061 = vmatprep.subr.bf16.mxu0 %v4633_v27  ;;  %1102 = vmatprep.subr.bf16.mxu1 %v3400_v1 }
 0x245   :  { %v2722_v22 = vpop.eup %2721 }
 0x246   :  { %v920_v59 = vmul.f32 %v2722_v22, %v2720_v26 }
 0x247   :  { %1062 = vmatpush1.bf16.msra.mxu0 %v3387_v62  ;;  %1103 = vmatpush1.bf16.msra.mxu1 %v3407_v37 }
 0x248   :  { %2469 = vst [vmem:[%s4530_s5 + $0x30] sm:$0xff] %v920_v59  ;;  %v1046_v5 = vpack.c.bf16 %v920_v59, %v920_v59  ;;  %1167 = vmatprep.subr.bf16.mxu0 %v3626_v4  ;;  %1208 = vmatprep.subr.bf16.mxu1 %v3054_v6  ;;  %v3649_v6 = vld [vmem:[%s4525_s2 + $0x20] ss:$16 sps:$4 sm:$0xff]  }
 0x24a   :  { %1080 = vmatmul.mubr.bf16.vlgmr.msra.gmra.mrb[20].mxu0 %v1046_v5  ;;  %1121 = vmatmul.mubr.bf16.vlgmr.msra.gmra.mrb[20].mxu1 %v1046_v5  ;;  %v2473_v5 = vld [vmem:[%s4527_s0 + $0x58] sm:$0xff] }
 0x24b   :  { %1168 = vmatpush1.bf16.msra.mxu0 %v3633_v31  ;;  %1209 = vmatpush1.bf16.msra.mxu1 %v3059_v7  ;;  %v3656_v7 = vld [vmem:[%s4525_s2 + $0x44] ss:$16 sps:$4 sm:$0xff]  }
 0x24c   :  { %1169 = vmatprep.subr.bf16.mxu0 %v3640_v23  ;;  %1210 = vmatprep.subr.bf16.mxu1 %v3078_v10  ;;  %v3663_v10 = vld [vmem:[%s4525_s2 + $0x40] ss:$16 sps:$4 sm:$0xff]  }
 0x24d   :  { %1199 = vmatprep.mubr.bf16.mxu0 %v4631_v58  ;;  %1240 = vmatprep.mubr.bf16.mxu1 %v4631_v58 }
 0x24f   :  { %1170 = vmatpush1.bf16.msra.mxu0 %v3649_v6  ;;  %1211 = vmatpush1.bf16.msra.mxu1 %v3083_v11  ;;  %v4650_v11 = vld [vmem:[#allocation7_spill] sm:$0xff] }
 0x250   :  { %1171 = vmatprep.subr.bf16.mxu0 %v3656_v7  ;;  %1212 = vmatprep.subr.bf16.mxu1 %v3100_v14  ;;  %v4651_v14 = vld [vmem:[#allocation11_spill] sm:$0xff] }
 0x253   :  { %1172 = vmatpush1.bf16.msra.mxu0 %v3663_v10  ;;  %1213 = vmatpush1.bf16.msra.mxu1 %v3107_v15  ;;  %v4652_v15 = vld [vmem:[#allocation8_spill] sm:$0xff] }
 0x254   :  { %1173 = vmatprep.subr.bf16.mxu0 %v3072_v9  ;;  %1214 = vmatprep.subr.bf16.mxu1 %v3113_v16  ;;  %v4653_v9 = vld [vmem:[#allocation14_spill] sm:$0xff]  ;;  %v4654_v16 = vld [vmem:[#allocation9_spill] sm:$0xff] }
 0x257   :  { %1174 = vmatpush1.bf16.msra.mxu0 %v3090_v12  ;;  %1215 = vmatpush1.bf16.msra.mxu1 %v3131_v19  ;;  %v4655_v12 = vld [vmem:[#allocation15_spill] sm:$0xff]  ;;  %v4656_v19 = vld [vmem:[#allocation12_spill] sm:$0xff] }
 0x258   :  { %1175 = vmatprep.subr.bf16.mxu0 %v3095_v13  ;;  %1216 = vmatprep.subr.bf16.mxu1 %v3137_v20  ;;  %v4657_v13 = vld [vmem:[#allocation18_spill] sm:$0xff]  ;;  %v4658_v20 = vld [vmem:[#allocation13_spill] sm:$0xff] }
 0x25b   :  { %1176 = vmatpush1.bf16.msra.mxu0 %v4634_v0  ;;  %1217 = vmatpush1.bf16.msra.mxu1 %v4635_v2  ;;  %v4659_v0 = vld [vmem:[#allocation19_spill] sm:$0xff]  ;;  %v4660_v2 = vld [vmem:[#allocation16_spill] sm:$0xff] }
 0x25c   :  { %1177 = vmatprep.subr.bf16.mxu0 %v4650_v11  ;;  %1218 = vmatprep.subr.bf16.mxu1 %v4651_v14  ;;  %v2472_v14 = vld [vmem:[%s4527_s0 + $0x50] sm:$0xff] }
 0x25f   :  { %1178 = vmatpush1.bf16.msra.mxu0 %v4652_v15  ;;  %1219 = vmatpush1.bf16.msra.mxu1 %v4653_v9 }
 0x260   :  { %1179 = vmatprep.subr.bf16.mxu0 %v4654_v16  ;;  %1220 = vmatprep.subr.bf16.mxu1 %v4655_v12 }
 0x263   :  { %1180 = vmatpush1.bf16.msra.mxu0 %v4656_v19  ;;  %1221 = vmatpush1.bf16.msra.mxu1 %v4657_v13 }
 0x264   :  { %1181 = vmatprep.subr.bf16.mxu0 %v4658_v20  ;;  %1222 = vmatprep.subr.bf16.mxu1 %v4659_v0 }
 0x267   :  { %1182 = vmatpush1.bf16.msra.mxu0 %v4660_v2  ;;  %1223 = vmatpush1.bf16.msra.mxu1 %v4661_v36 }
 0x268   :  { %1283 = vmatprep.subr.bf16.mxu0 %v4662_v25  ;;  %1324 = vmatprep.subr.bf16.mxu1 %v4663_v30 }
 0x2fd   :  { %v965_v32 = vpop.f32.mrb[16].mxu0  ;;  %v1006_v17 = vpop.f32.mrb[16].mxu1 }
 0x2fe   :  { %v1013_v33 = vadd.f32 %v2470_v24, %v965_v32  ;;  %v967_v34 = vpop.f32.mrb[17].mxu0  ;;  %v1008_v29 = vpop.f32.mrb[17].mxu1  ;;  %v1015_v9 = vadd.f32 %v2472_v14, %v1006_v17  ;;  %v2478_v32 = vld [vmem:[%s4528_s1 + $0xa8] sm:$0xff] }
 0x2ff   :  { %v1014_v18 = vadd.f32 %v2471_v8, %v967_v34  ;;  %v969_v21 = vpop.f32.mrb[18].mxu0  ;;  %v1010_v38 = vpop.f32.mrb[18].mxu1  ;;  %v1016_v11 = vadd.f32 %v2473_v5, %v1008_v29  ;;  %v2477_v8 = vld [vmem:[%s4528_s1 + $0xa0] sm:$0xff] }
 0x300   :  { %v2474_v35 = vmul.f32 -1.442695, %v1013_v33  ;;  %v970_v26 = vpop.f32.mrb[19].mxu0  ;;  %v1011_v22 = vpop.f32.mrb[19].mxu1 }
 0x301   :  { %v2475_v59 = vmul.f32 -1.442695, %v1014_v18  ;;  %v2476_v15 = vmul.f32 -1.442695, %v1016_v11  ;;  %v2480_v11 = vld [vmem:[%s4528_s1 + $0xb8] sm:$0xff] }
 0x302   :  { %2723 = vpow2.f32 %v2474_v35 }
 0x303   :  { %2725 = vpow2.f32 %v2475_v59 }
 0x304   :  { %2727 = vpow2.f32 %v2476_v15  ;;  %v2479_v15 = vld [vmem:[%s4528_s1 + $0xb0] sm:$0xff] }
 0x305   :  { %2729 = vtanh.f32 %v1015_v9 }
 0x30c   :  { %v2724_v16 = vpop.eup %2723 }
 0x30d   :  { %v2726_v12 = vpop.eup %2725  ;;  %v1020_v19 = vadd.f32 1.0, %v2724_v16 }
 0x30e   :  { %v1026_v13 = vadd.f32 1.0, %v2726_v12  ;;  %v2728_v20 = vpop.eup %2727 }
 0x30f   :  { %2731 = vrcp.f32 %v1020_v19  ;;  %v2730_v0 = vpop.eup %2729  ;;  %v1033_v30 = vadd.f32 1.0, %v2728_v20 }
 0x310   :  { %2733 = vrcp.f32 %v1026_v13 }
 0x311   :  { %2735 = vrcp.f32 %v1033_v30  ;;  %v3723_v30 = vld [vmem:[%s4526_s3] ss:$16 sps:$4 sm:$0xff]  }
 0x319   :  { %v2732_v2 = vpop.eup %2731 }
 0x31a   :  { %v2734_v36 = vpop.eup %2733  ;;  %v1037_v25 = vmul.f32 %v2732_v2, %v2730_v0 }
 0x31b   :  { %v1036_v24 = vmul.f32 %v2734_v36, %v3572_v3  ;;  %v2736_v9 = vpop.eup %2735 }
 0x31d   :  { %v3708_v17 = vadd.f32 %v1037_v25, %v1036_v24  ;;  %v1081_v33 = vpop.f32.mrb[20].mxu0  ;;  %v1122_v34 = vpop.f32.mrb[20].mxu1  ;;  %v3730_v24 = vld [vmem:[%s4526_s3 + $0x24] ss:$16 sps:$4 sm:$0xff]  }
 0x31e   :  { %v1129_v29 = vadd.f32 %v2477_v8, %v1081_v33  ;;  %v1083_v18 = vpop.f32.mrb[21].mxu0  ;;  %v1124_v21 = vpop.f32.mrb[21].mxu1  ;;  %v1131_v19 = vadd.f32 %v2479_v15, %v1122_v34  ;;  %v3739_v8 = vld [vmem:[%s4526_s3 + $0x20] ss:$16 sps:$4 sm:$0xff]   ;;  %v2487_v15 = vld [vmem:[%s4527_s0 + $0x68] sm:$0xff] }
 0x31f   :  { %2737 = vtanh.f32 %v3708_v17  ;;  %v1130_v38 = vadd.f32 %v2478_v32, %v1083_v18  ;;  %v1085_v3 = vpop.f32.mrb[22].mxu0  ;;  %v1126_v35 = vpop.f32.mrb[22].mxu1  ;;  %v1132_v14 = vadd.f32 %v2480_v11, %v1124_v21  ;;  %v3904_v21 = vld [vmem:[%s4525_s2 + $0xcc] ss:$16 sps:$4 sm:$0xff]  }
 0x320   :  { %v2481_v26 = vmul.f32 -1.442695, %v1129_v29  ;;  %v1086_v22 = vpop.f32.mrb[23].mxu0  ;;  %v1127_v59 = vpop.f32.mrb[23].mxu1  ;;  %4669 = vst [vmem:[#allocation11_spill] sm:$0xff] %v3904_v21 }
 0x321   :  { %v2482_v5 = vmul.f32 -1.442695, %v1130_v38  ;;  %v2483_v12 = vmul.f32 -1.442695, %v1132_v14  ;;  %v3910_v38 = vld [vmem:[%s4525_s2 + $0xc0] ss:$16 sps:$4 sm:$0xff]  }
 0x322   :  { %2739 = vpow2.f32 %v2481_v26  ;;  %4670 = vst [vmem:[#allocation8_spill] sm:$0xff] %v3910_v38  ;;  %v3916_v3 = vld [vmem:[%s4525_s2 + $0xc8] ss:$16 sps:$4 sm:$0xff]   ;;  %v3922_v35 = vld [vmem:[%s4525_s2 + $0xe4] ss:$16 sps:$4 sm:$0xff]  }
 0x323   :  { %2741 = vpow2.f32 %v2482_v5  ;;  %4671 = vst [vmem:[#allocation14_spill] sm:$0xff] %v3916_v3  ;;  %4672 = vst [vmem:[#allocation9_spill] sm:$0xff] %v3922_v35  ;;  %v3928_v26 = vld [vmem:[%s4525_s2 + $0xec] ss:$16 sps:$4 sm:$0xff]   ;;  %v3934_v22 = vld [vmem:[%s4525_s2 + $0xe0] ss:$16 sps:$4 sm:$0xff]  }
 0x324   :  { %2743 = vpow2.f32 %v2483_v12  ;;  %4673 = vst [vmem:[#allocation15_spill] sm:$0xff] %v3928_v26  ;;  %4674 = vst [vmem:[#allocation12_spill] sm:$0xff] %v3934_v22  ;;  %v3940_v59 = vld [vmem:[%s4525_s2 + $0xe8] ss:$16 sps:$4 sm:$0xff]   ;;  %v3946_v5 = vld [vmem:[%s4526_s3 + $0x4] ss:$16 sps:$4 sm:$0xff]  }
 0x325   :  { %2745 = vtanh.f32 %v1131_v19  ;;  %4675 = vst [vmem:[#allocation18_spill] sm:$0xff] %v3940_v59  ;;  %4676 = vst [vmem:[#allocation13_spill] sm:$0xff] %v3946_v5  ;;  %v3952_v11 = vld [vmem:[%s4526_s3 + $0xc] ss:$16 sps:$4 sm:$0xff]   ;;  %v2486_v14 = vld [vmem:[%s4527_s0 + $0x60] sm:$0xff] }
 0x326   :  { %4677 = vst [vmem:[#allocation19_spill] sm:$0xff] %v3952_v11 }
 0x329   :  { %v2738_v16 = vpop.eup %2737 }
 0x32a   :  { %v1040_v13 = vmul.f32 %v2738_v16, %v2736_v9 }
 0x32c   :  { %v2740_v20 = vpop.eup %2739  ;;  %2484 = vst [vmem:[%s4529_s4 + $0x10] sm:$0xff] %v1040_v13  ;;  %v1166_v0 = vpack.c.bf16 %v1040_v13, %v1040_v13 }
 0x32d   :  { %v2742_v2 = vpop.eup %2741  ;;  %v1136_v36 = vadd.f32 1.0, %v2740_v20 }
 0x32e   :  { %v1142_v25 = vadd.f32 1.0, %v2742_v2  ;;  %1200 = vmatmul.mubr.bf16.vlgmr.msra.gmra.mrb[24].mxu0 %v1166_v0  ;;  %1241 = vmatmul.mubr.bf16.vlgmr.msra.gmra.mrb[24].mxu1 %v1166_v0 }
 0x32f   :  { %2747 = vrcp.f32 %v1136_v36  ;;  %1284 = vmatpush1.bf16.msra.mxu0 %v3723_v30  ;;  %1325 = vmatpush1.bf16.msra.mxu1 %v3253_v40  ;;  %v3746_v40 = vld [vmem:[%s4526_s3 + $0x44] ss:$16 sps:$4 sm:$0xff]  }
 0x330   :  { %2749 = vrcp.f32 %v1142_v25  ;;  %1285 = vmatprep.subr.bf16.mxu0 %v3730_v24  ;;  %1326 = vmatprep.subr.bf16.mxu1 %v3259_v41  ;;  %v2744_v41 = vpop.eup %2743 }
 0x331   :  { %1315 = vmatprep.mubr.bf16.mxu0 %v4631_v58  ;;  %1356 = vmatprep.mubr.bf16.mxu1 %v4631_v58  ;;  %v2746_v32 = vpop.eup %2745  ;;  %v1149_v29 = vadd.f32 1.0, %v2744_v41 }
 0x333   :  { %1286 = vmatpush1.bf16.msra.mxu0 %v3739_v8  ;;  %1327 = vmatpush1.bf16.msra.mxu1 %v3278_v44  ;;  %2751 = vrcp.f32 %v1149_v29 }
 0x334   :  { %1287 = vmatprep.subr.bf16.mxu0 %v3746_v40  ;;  %1328 = vmatprep.subr.bf16.mxu1 %v3284_v45 }
 0x337   :  { %1288 = vmatpush1.bf16.msra.mxu0 %v3265_v42  ;;  %1329 = vmatpush1.bf16.msra.mxu1 %v3303_v48  ;;  %v3783_v48 = vld [vmem:[%s4525_s2 + $0xc] ss:$16 sps:$4 sm:$0xff]  }
 0x338   :  { %1289 = vmatprep.subr.bf16.mxu0 %v3270_v43  ;;  %1330 = vmatprep.subr.bf16.mxu1 %v3309_v49  ;;  %v3806_v49 = vld [vmem:[%s4525_s2 + $0x28] ss:$16 sps:$4 sm:$0xff]  }
 0x339   :  { %v2748_v44 = vpop.eup %2747 }
 0x33a   :  { %v2750_v33 = vpop.eup %2749  ;;  %v1153_v34 = vmul.f32 %v2748_v44, %v2746_v32  ;;  %v2489_v44 = vld [vmem:[%s4527_s0 + $0x78] sm:$0xff] }
 0x33b   :  { %v1152_v18 = vmul.f32 %v2750_v33, %v3603_v39  ;;  %1290 = vmatpush1.bf16.msra.mxu0 %v3291_v46  ;;  %1331 = vmatpush1.bf16.msra.mxu1 %v3327_v52  ;;  %v3826_v52 = vld [vmem:[%s4525_s2 + $0x64] ss:$16 sps:$4 sm:$0xff]  }
 0x33c   :  { %1291 = vmatprep.subr.bf16.mxu0 %v3297_v47  ;;  %1332 = vmatprep.subr.bf16.mxu1 %v3333_v53  ;;  %v3832_v53 = vld [vmem:[%s4525_s2 + $0x6c] ss:$16 sps:$4 sm:$0xff]   ;;  %v3898_v39 = vld [vmem:[%s4525_s2 + $0xc4] ss:$16 sps:$4 sm:$0xff]  }
 0x33d   :  { %v3759_v42 = vadd.f32 %v1153_v34, %v1152_v18  ;;  %v2752_v43 = vpop.eup %2751  ;;  %4668 = vst [vmem:[#allocation7_spill] sm:$0xff] %v3898_v39  ;;  %v2488_v34 = vld [vmem:[%s4527_s0 + $0x70] sm:$0xff] }
 0x33f   :  { %2753 = vtanh.f32 %v3759_v42  ;;  %1292 = vmatpush1.bf16.msra.mxu0 %v3315_v50  ;;  %1333 = vmatpush1.bf16.msra.mxu1 %v3351_v56  ;;  %v3813_v50 = vld [vmem:[%s4525_s2 + $0x4c] ss:$16 sps:$4 sm:$0xff]   ;;  %v3850_v56 = vld [vmem:[%s4525_s2 + $0x84] ss:$16 sps:$4 sm:$0xff]  }
 0x340   :  { %1293 = vmatprep.subr.bf16.mxu0 %v3321_v51  ;;  %1334 = vmatprep.subr.bf16.mxu1 %v3357_v57  ;;  %v3820_v51 = vld [vmem:[%s4525_s2 + $0x48] ss:$16 sps:$4 sm:$0xff]   ;;  %v3856_v57 = vld [vmem:[%s4525_s2 + $0x8c] ss:$16 sps:$4 sm:$0xff]  }
 0x343   :  { %1294 = vmatpush1.bf16.msra.mxu0 %v3339_v54  ;;  %1335 = vmatpush1.bf16.msra.mxu1 %v3375_v60  ;;  %v3838_v54 = vld [vmem:[%s4525_s2 + $0x60] ss:$16 sps:$4 sm:$0xff]  }
 0x344   :  { %1295 = vmatprep.subr.bf16.mxu0 %v3345_v55  ;;  %1336 = vmatprep.subr.bf16.mxu1 %v3381_v61  ;;  %v3844_v55 = vld [vmem:[%s4525_s2 + $0x68] ss:$16 sps:$4 sm:$0xff]   ;;  %v3862_v60 = vld [vmem:[%s4525_s2 + $0x80] ss:$16 sps:$4 sm:$0xff]  }
 0x345   :  { %v3868_v61 = vld [vmem:[%s4525_s2 + $0x88] ss:$16 sps:$4 sm:$0xff]  }
 0x347   :  { %1296 = vmatpush1.bf16.msra.mxu0 %v4632_v28  ;;  %1337 = vmatpush1.bf16.msra.mxu1 %v3394_v63  ;;  %v3880_v63 = vld [vmem:[%s4525_s2 + $0xac] ss:$16 sps:$4 sm:$0xff]   ;;  %v3886_v28 = vld [vmem:[%s4525_s2 + $0xa0] ss:$16 sps:$4 sm:$0xff]  }
 0x348   :  { %1297 = vmatprep.subr.bf16.mxu0 %v4633_v27  ;;  %1338 = vmatprep.subr.bf16.mxu1 %v3400_v1  ;;  %v3790_v1 = vld [vmem:[%s4525_s2 + $0x8] ss:$16 sps:$4 sm:$0xff]   ;;  %4665 = vst [vmem:[#allocation23_spill] sm:$0xff] %v3880_v63  ;;  %4666 = vst [vmem:[#allocation6_spill] sm:$0xff] %v3886_v28 }
 0x349   :  { %v2754_v45 = vpop.eup %2753  ;;  %v3892_v27 = vld [vmem:[%s4525_s2 + $0xa8] ss:$16 sps:$4 sm:$0xff]  }
 0x34a   :  { %v1156_v46 = vmul.f32 %v2754_v45, %v2752_v43  ;;  %4667 = vst [vmem:[#allocation10_spill] sm:$0xff] %v3892_v27 }
 0x34b   :  { %1298 = vmatpush1.bf16.msra.mxu0 %v3387_v62  ;;  %1339 = vmatpush1.bf16.msra.mxu1 %v3407_v37  ;;  %v3797_v37 = vld [vmem:[%s4525_s2 + $0x2c] ss:$16 sps:$4 sm:$0xff]   ;;  %v3874_v62 = vld [vmem:[%s4525_s2 + $0xa4] ss:$16 sps:$4 sm:$0xff]  }
 0x34c   :  { %2485 = vst [vmem:[%s4530_s5 + $0x28] sm:$0xff] %v1156_v46  ;;  %v1282_v47 = vpack.c.bf16 %v1156_v46, %v1156_v46  ;;  %1403 = vmatprep.subr.bf16.mxu0 %v3626_v4  ;;  %1444 = vmatprep.subr.bf16.mxu1 %v3783_v48  ;;  %4664 = vst [vmem:[#allocation22_spill] sm:$0xff] %v3874_v62 }
 0x34e   :  { %1316 = vmatmul.mubr.bf16.vlgmr.msra.gmra.mrb[28].mxu0 %v1282_v47  ;;  %1357 = vmatmul.mubr.bf16.vlgmr.msra.gmra.mrb[28].mxu1 %v1282_v47 }
 0x34f   :  { %1404 = vmatpush1.bf16.msra.mxu0 %v3633_v31  ;;  %1445 = vmatpush1.bf16.msra.mxu1 %v3790_v1 }
 0x350   :  { %1405 = vmatprep.subr.bf16.mxu0 %v3640_v23  ;;  %1446 = vmatprep.subr.bf16.mxu1 %v3797_v37 }
 0x351   :  { %1435 = vmatprep.mubr.bf16.mxu0 %v4631_v58  ;;  %1476 = vmatprep.mubr.bf16.mxu1 %v4631_v58 }
 0x353   :  { %1406 = vmatpush1.bf16.msra.mxu0 %v3649_v6  ;;  %1447 = vmatpush1.bf16.msra.mxu1 %v3806_v49 }
 0x354   :  { %1407 = vmatprep.subr.bf16.mxu0 %v3656_v7  ;;  %1448 = vmatprep.subr.bf16.mxu1 %v3813_v50 }
 0x357   :  { %1408 = vmatpush1.bf16.msra.mxu0 %v3663_v10  ;;  %1449 = vmatpush1.bf16.msra.mxu1 %v3820_v51 }
 0x358   :  { %1409 = vmatprep.subr.bf16.mxu0 %v3826_v52  ;;  %1450 = vmatprep.subr.bf16.mxu1 %v3832_v53 }
 0x35b   :  { %1410 = vmatpush1.bf16.msra.mxu0 %v3838_v54  ;;  %1451 = vmatpush1.bf16.msra.mxu1 %v3844_v55 }
 0x35c   :  { %1411 = vmatprep.subr.bf16.mxu0 %v3850_v56  ;;  %1452 = vmatprep.subr.bf16.mxu1 %v3856_v57 }
 0x35f   :  { %1412 = vmatpush1.bf16.msra.mxu0 %v3862_v60  ;;  %1453 = vmatpush1.bf16.msra.mxu1 %v3868_v61 }
 0x360   :  { %1413 = vmatprep.subr.bf16.mxu0 %v3874_v62  ;;  %1454 = vmatprep.subr.bf16.mxu1 %v3880_v63 }
 0x363   :  { %1414 = vmatpush1.bf16.msra.mxu0 %v3886_v28  ;;  %1455 = vmatpush1.bf16.msra.mxu1 %v3892_v27 }
 0x364   :  { %1415 = vmatprep.subr.bf16.mxu0 %v3898_v39  ;;  %1456 = vmatprep.subr.bf16.mxu1 %v3904_v21 }
 0x367   :  { %1416 = vmatpush1.bf16.msra.mxu0 %v3910_v38  ;;  %1457 = vmatpush1.bf16.msra.mxu1 %v3916_v3 }
 0x368   :  { %1417 = vmatprep.subr.bf16.mxu0 %v3922_v35  ;;  %1458 = vmatprep.subr.bf16.mxu1 %v3928_v26 }
 0x36b   :  { %1418 = vmatpush1.bf16.msra.mxu0 %v3934_v22  ;;  %1459 = vmatpush1.bf16.msra.mxu1 %v3940_v59 }
 0x36c   :  { %1519 = vmatprep.subr.bf16.mxu0 %v3946_v5  ;;  %1560 = vmatprep.subr.bf16.mxu1 %v3952_v11 }
 0x401   :  { %v1201_v9 = vpop.f32.mrb[24].mxu0  ;;  %v1242_v16 = vpop.f32.mrb[24].mxu1 }
 0x402   :  { %v1249_v12 = vadd.f32 %v2486_v14, %v1201_v9  ;;  %v1203_v19 = vpop.f32.mrb[25].mxu0  ;;  %v1244_v13 = vpop.f32.mrb[25].mxu1  ;;  %v1251_v18 = vadd.f32 %v2488_v34, %v1242_v16  ;;  %v2493_v16 = vld [vmem:[%s4528_s1 + $0x80] sm:$0xff] }
 0x403   :  { %v1250_v20 = vadd.f32 %v2487_v15, %v1203_v19  ;;  %v1205_v0 = vpop.f32.mrb[26].mxu0  ;;  %v1246_v2 = vpop.f32.mrb[26].mxu1  ;;  %v1252_v33 = vadd.f32 %v2489_v44, %v1244_v13 }
 0x404   :  { %v2490_v36 = vmul.f32 -1.442695, %v1249_v12  ;;  %v1206_v25 = vpop.f32.mrb[27].mxu0  ;;  %v1247_v41 = vpop.f32.mrb[27].mxu1  ;;  %v2494_v0 = vld [vmem:[%s4528_s1 + $0x88] sm:$0xff] }
 0x405   :  { %v2491_v32 = vmul.f32 -1.442695, %v1250_v20  ;;  %v2492_v29 = vmul.f32 -1.442695, %v1252_v33 }
 0x406   :  { %2755 = vpow2.f32 %v2490_v36 }
 0x407   :  { %2757 = vpow2.f32 %v2491_v32 }
 0x408   :  { %2759 = vpow2.f32 %v2492_v29 }
 0x409   :  { %2761 = vtanh.f32 %v1251_v18 }
 0x410   :  { %v2756_v43 = vpop.eup %2755 }
 0x411   :  { %v2758_v45 = vpop.eup %2757  ;;  %v1256_v46 = vadd.f32 1.0, %v2756_v43 }
 0x412   :  { %v1262_v47 = vadd.f32 1.0, %v2758_v45  ;;  %v2760_v14 = vpop.eup %2759 }
 0x413   :  { %2763 = vrcp.f32 %v1256_v46  ;;  %v2762_v15 = vpop.eup %2761  ;;  %v1269_v13 = vadd.f32 1.0, %v2760_v14  ;;  %v2496_v46 = vld [vmem:[%s4528_s1 + $0x98] sm:$0xff]  ;;  %v2495_v14 = vld [vmem:[%s4528_s1 + $0x90] sm:$0xff] }
 0x414   :  { %2765 = vrcp.f32 %v1262_v47 }
 0x415   :  { %2767 = vrcp.f32 %v1269_v13 }
 0x41d   :  { %v2764_v9 = vpop.eup %2763 }
 0x41e   :  { %v2766_v12 = vpop.eup %2765  ;;  %v1273_v19 = vmul.f32 %v2764_v9, %v2762_v15 }
 0x41f   :  { %v1272_v20 = vmul.f32 %v2766_v12, %v3708_v17  ;;  %v2768_v15 = vpop.eup %2767 }
 0x421   :  { %v3974_v2 = vadd.f32 %v1273_v19, %v1272_v20  ;;  %v1317_v36 = vpop.f32.mrb[28].mxu0  ;;  %v1358_v25 = vpop.f32.mrb[28].mxu1 }
 0x422   :  { %v1365_v41 = vadd.f32 %v2493_v16, %v1317_v36  ;;  %v1319_v32 = vpop.f32.mrb[29].mxu0  ;;  %v1360_v44 = vpop.f32.mrb[29].mxu1  ;;  %v1367_v19 = vadd.f32 %v2495_v14, %v1358_v25  ;;  %v3990_v25 = vld [vmem:[%s4526_s3 + $0x8] ss:$16 sps:$4 sm:$0xff]  }
 0x423   :  { %2769 = vtanh.f32 %v3974_v2  ;;  %v1366_v33 = vadd.f32 %v2494_v0, %v1319_v32  ;;  %v1321_v17 = vpop.f32.mrb[30].mxu0  ;;  %v1362_v34 = vpop.f32.mrb[30].mxu1  ;;  %v1368_v47 = vadd.f32 %v2496_v46, %v1360_v44  ;;  %v3997_v32 = vld [vmem:[%s4526_s3 + $0x2c] ss:$16 sps:$4 sm:$0xff]   ;;  %v4006_v44 = vld [vmem:[%s4526_s3 + $0x28] ss:$16 sps:$4 sm:$0xff]  }
 0x424   :  { %v2497_v29 = vmul.f32 -1.442695, %v1365_v41  ;;  %v1322_v18 = vpop.f32.mrb[31].mxu0  ;;  %v1363_v43 = vpop.f32.mrb[31].mxu1  ;;  %v4019_v34 = vld [vmem:[%s4526_s3 + $0x40] ss:$16 sps:$4 sm:$0xff]  }
 0x425   :  { %v2498_v45 = vmul.f32 -1.442695, %v1366_v33  ;;  %v2499_v12 = vmul.f32 -1.442695, %v1368_v47  ;;  %v4013_v33 = vld [vmem:[%s4526_s3 + $0x4c] ss:$16 sps:$4 sm:$0xff]  }
 0x426   :  { %2771 = vpow2.f32 %v2497_v29  ;;  %v4025_v29 = vld [vmem:[%s4526_s3 + $0x48] ss:$16 sps:$4 sm:$0xff]   ;;  %v4031_v43 = vld [vmem:[%s4526_s3 + $0x64] ss:$16 sps:$4 sm:$0xff]  }
 0x427   :  { %2773 = vpow2.f32 %v2498_v45  ;;  %v4037_v45 = vld [vmem:[%s4526_s3 + $0x6c] ss:$16 sps:$4 sm:$0xff]  }
 0x428   :  { %2775 = vpow2.f32 %v2499_v12  ;;  %v4044_v12 = vld [vmem:[%s4526_s3 + $0x60] ss:$16 sps:$4 sm:$0xff]  }
 0x429   :  { %2777 = vtanh.f32 %v1367_v19  ;;  %v4050_v19 = vld [vmem:[%s4526_s3 + $0x68] ss:$16 sps:$4 sm:$0xff]  }
 0x42d   :  { %v2770_v9 = vpop.eup %2769 }
 0x42e   :  { %v1276_v13 = vmul.f32 %v2770_v9, %v2768_v15 }
 0x430   :  { %v2772_v20 = vpop.eup %2771  ;;  %2500 = vst [vmem:[%s4529_s4 + $0x18] sm:$0xff] %v1276_v13  ;;  %v1402_v16 = vpack.c.bf16 %v1276_v13, %v1276_v13  ;;  %v4056_v13 = vld [vmem:[%s4526_s3 + $0x84] ss:$16 sps:$4 sm:$0xff]  }
 0x431   :  { %v2774_v0 = vpop.eup %2773  ;;  %v1372_v36 = vadd.f32 1.0, %v2772_v20 }
 0x432   :  { %v1378_v41 = vadd.f32 1.0, %v2774_v0  ;;  %1436 = vmatmul.mubr.bf16.vlgmr.msra.gmra.mrb[32].mxu0 %v1402_v16  ;;  %1477 = vmatmul.mubr.bf16.vlgmr.msra.gmra.mrb[32].mxu1 %v1402_v16  ;;  %v2776_v17 = vpop.eup %2775  ;;  %v4071_v16 = vld [vmem:[%s4526_s3 + $0x80] ss:$16 sps:$4 sm:$0xff]   ;;  %v4077_v0 = vld [vmem:[%s4526_s3 + $0x88] ss:$16 sps:$4 sm:$0xff]  }
 0x433   :  { %2779 = vrcp.f32 %v1372_v36  ;;  %1520 = vmatpush1.bf16.msra.mxu0 %v3723_v30  ;;  %1561 = vmatpush1.bf16.msra.mxu1 %v3990_v25  ;;  %v2778_v18 = vpop.eup %2777  ;;  %v1385_v15 = vadd.f32 1.0, %v2776_v17  ;;  %v4083_v36 = vld [vmem:[%s4526_s3 + $0xa4] ss:$16 sps:$4 sm:$0xff]   ;;  %v4095_v17 = vld [vmem:[%s4526_s3 + $0xa0] ss:$16 sps:$4 sm:$0xff]  }
 0x434   :  { %2781 = vrcp.f32 %v1378_v41  ;;  %1521 = vmatprep.subr.bf16.mxu0 %v3730_v24  ;;  %1562 = vmatprep.subr.bf16.mxu1 %v3997_v32  ;;  %v4089_v41 = vld [vmem:[%s4526_s3 + $0xac] ss:$16 sps:$4 sm:$0xff]  }
 0x435   :  { %1551 = vmatprep.mubr.bf16.mxu0 %v4631_v58  ;;  %1592 = vmatprep.mubr.bf16.mxu1 %v4631_v58  ;;  %2783 = vrcp.f32 %v1385_v15  ;;  %v4125_v15 = vld [vmem:[%s4526_s3 + $0xc8] ss:$16 sps:$4 sm:$0xff]  }
 0x436   :  { %4682 = vst [vmem:[#allocation24_spill] sm:$0xff] %v4125_v15 }
 0x437   :  { %1522 = vmatpush1.bf16.msra.mxu0 %v3739_v8  ;;  %1563 = vmatpush1.bf16.msra.mxu1 %v4006_v44 }
 0x438   :  { %1523 = vmatprep.subr.bf16.mxu0 %v3746_v40  ;;  %1564 = vmatprep.subr.bf16.mxu1 %v4013_v33 }
 0x43b   :  { %1524 = vmatpush1.bf16.msra.mxu0 %v4019_v34  ;;  %1565 = vmatpush1.bf16.msra.mxu1 %v4025_v29 }
 0x43c   :  { %1525 = vmatprep.subr.bf16.mxu0 %v4031_v43  ;;  %1566 = vmatprep.subr.bf16.mxu1 %v4037_v45 }
 0x43d   :  { %v2780_v46 = vpop.eup %2779 }
 0x43e   :  { %v2782_v47 = vpop.eup %2781  ;;  %v1389_v14 = vmul.f32 %v2780_v46, %v2778_v18  ;;  %v4101_v18 = vld [vmem:[%s4526_s3 + $0xa8] ss:$16 sps:$4 sm:$0xff]   ;;  %v4107_v46 = vld [vmem:[%s4526_s3 + $0xc4] ss:$16 sps:$4 sm:$0xff]  }
 0x43f   :  { %v1388_v9 = vmul.f32 %v2782_v47, %v3759_v42  ;;  %1526 = vmatpush1.bf16.msra.mxu0 %v4044_v12  ;;  %1567 = vmatpush1.bf16.msra.mxu1 %v4050_v19  ;;  %v4062_v42 = vld [vmem:[%s4526_s3 + $0x8c] ss:$16 sps:$4 sm:$0xff]   ;;  %4678 = vst [vmem:[#allocation16_spill] sm:$0xff] %v4101_v18  ;;  %4679 = vst [vmem:[#allocation20_spill] sm:$0xff] %v4107_v46 }
 0x440   :  { %1527 = vmatprep.subr.bf16.mxu0 %v4056_v13  ;;  %1568 = vmatprep.subr.bf16.mxu1 %v4062_v42  ;;  %v4113_v47 = vld [vmem:[%s4526_s3 + $0xcc] ss:$16 sps:$4 sm:$0xff]  }
 0x441   :  { %v4065_v20 = vadd.f32 %v1389_v14, %v1388_v9  ;;  %4680 = vst [vmem:[#allocation17_spill] sm:$0xff] %v4113_v47  ;;  %v4119_v14 = vld [vmem:[%s4526_s3 + $0xc0] ss:$16 sps:$4 sm:$0xff]   ;;  %v2784_v9 = vpop.eup %2783 }
 0x442   :  { %4681 = vst [vmem:[#allocation21_spill] sm:$0xff] %v4119_v14 }
 0x443   :  { %2785 = vtanh.f32 %v4065_v20  ;;  %1528 = vmatpush1.bf16.msra.mxu0 %v4071_v16  ;;  %1569 = vmatpush1.bf16.msra.mxu1 %v4077_v0 }
 0x444   :  { %1529 = vmatprep.subr.bf16.mxu0 %v4083_v36  ;;  %1570 = vmatprep.subr.bf16.mxu1 %v4089_v41 }
 0x447   :  { %1530 = vmatpush1.bf16.msra.mxu0 %v4095_v17  ;;  %1571 = vmatpush1.bf16.msra.mxu1 %v4101_v18 }
 0x448   :  { %1531 = vmatprep.subr.bf16.mxu0 %v4107_v46  ;;  %1572 = vmatprep.subr.bf16.mxu1 %v4113_v47  ;;  %v4131_v46 = vld [vmem:[%s4526_s3 + $0xe4] ss:$16 sps:$4 sm:$0xff]   ;;  %v4137_v47 = vld [vmem:[%s4526_s3 + $0xec] ss:$16 sps:$4 sm:$0xff]  }
 0x449   :  { %4683 = vst [vmem:[#allocation25_spill] sm:$0xff] %v4131_v46  ;;  %4684 = vst [vmem:[#allocation26_spill] sm:$0xff] %v4137_v47 }
 0x44b   :  { %1532 = vmatpush1.bf16.msra.mxu0 %v4119_v14  ;;  %1573 = vmatpush1.bf16.msra.mxu1 %v4125_v15  ;;  %v4143_v15 = vld [vmem:[%s4526_s3 + $0xe0] ss:$16 sps:$4 sm:$0xff]  }
 0x44c   :  { %1533 = vmatprep.subr.bf16.mxu0 %v4131_v46  ;;  %1574 = vmatprep.subr.bf16.mxu1 %v4137_v47  ;;  %v4149_v46 = vld [vmem:[%s4526_s3 + $0xe8] ss:$16 sps:$4 sm:$0xff]  }
 0x44d   :  { %v2786_v14 = vpop.eup %2785 }
 0x44e   :  { %v1392_v18 = vmul.f32 %v2786_v14, %v2784_v9 }
 0x44f   :  { %1534 = vmatpush1.bf16.msra.mxu0 %v4143_v15  ;;  %1575 = vmatpush1.bf16.msra.mxu1 %v4149_v46 }
 0x450   :  { %2501 = vst [vmem:[%s4530_s5 + $0x20] sm:$0xff] %v1392_v18  ;;  %v1518_v47 = vpack.c.bf16 %v1392_v18, %v1392_v18  ;;  %1639 = vmatprep.subr.bf16.mxu0 %v3626_v4  ;;  %1680 = vmatprep.subr.bf16.mxu1 %v3783_v48  ;;  %v2502_v18 = vld [vmem:[%s4527_s0 + $0x80] sm:$0xff] }
 0x452   :  { %1552 = vmatmul.mubr.bf16.vlgmr.msra.gmra.mrb[36].mxu0 %v1518_v47  ;;  %1593 = vmatmul.mubr.bf16.vlgmr.msra.gmra.mrb[36].mxu1 %v1518_v47  ;;  %v2503_v47 = vld [vmem:[%s4527_s0 + $0x88] sm:$0xff] }
 0x453   :  { %1640 = vmatpush1.bf16.msra.mxu0 %v3633_v31  ;;  %1681 = vmatpush1.bf16.msra.mxu1 %v3790_v1 }
 0x454   :  { %1641 = vmatprep.subr.bf16.mxu0 %v3640_v23  ;;  %1682 = vmatprep.subr.bf16.mxu1 %v3797_v37 }
 0x455   :  { %1671 = vmatprep.mubr.bf16.mxu0 %v4631_v58  ;;  %1712 = vmatprep.mubr.bf16.mxu1 %v4631_v58 }
 0x457   :  { %1642 = vmatpush1.bf16.msra.mxu0 %v3649_v6  ;;  %1683 = vmatpush1.bf16.msra.mxu1 %v3806_v49 }
 0x458   :  { %1643 = vmatprep.subr.bf16.mxu0 %v3656_v7  ;;  %1684 = vmatprep.subr.bf16.mxu1 %v3813_v50 }
 0x45b   :  { %1644 = vmatpush1.bf16.msra.mxu0 %v3663_v10  ;;  %1685 = vmatpush1.bf16.msra.mxu1 %v3820_v51 }
 0x45c   :  { %1645 = vmatprep.subr.bf16.mxu0 %v3826_v52  ;;  %1686 = vmatprep.subr.bf16.mxu1 %v3832_v53 }
 0x45f   :  { %1646 = vmatpush1.bf16.msra.mxu0 %v3838_v54  ;;  %1687 = vmatpush1.bf16.msra.mxu1 %v3844_v55 }
 0x460   :  { %1647 = vmatprep.subr.bf16.mxu0 %v3850_v56  ;;  %1688 = vmatprep.subr.bf16.mxu1 %v3856_v57 }
 0x463   :  { %1648 = vmatpush1.bf16.msra.mxu0 %v3862_v60  ;;  %1689 = vmatpush1.bf16.msra.mxu1 %v3868_v61 }
 0x464   :  { %1649 = vmatprep.subr.bf16.mxu0 %v3874_v62  ;;  %1690 = vmatprep.subr.bf16.mxu1 %v3880_v63 }
 0x467   :  { %1650 = vmatpush1.bf16.msra.mxu0 %v3886_v28  ;;  %1691 = vmatpush1.bf16.msra.mxu1 %v3892_v27  ;;  %v2505_v27 = vld [vmem:[%s4527_s0 + $0x98] sm:$0xff] }
 0x468   :  { %1651 = vmatprep.subr.bf16.mxu0 %v3898_v39  ;;  %1692 = vmatprep.subr.bf16.mxu1 %v3904_v21 }
 0x46b   :  { %1652 = vmatpush1.bf16.msra.mxu0 %v3910_v38  ;;  %1693 = vmatpush1.bf16.msra.mxu1 %v3916_v3 }
 0x46c   :  { %1653 = vmatprep.subr.bf16.mxu0 %v3922_v35  ;;  %1694 = vmatprep.subr.bf16.mxu1 %v3928_v26 }
 0x46f   :  { %1654 = vmatpush1.bf16.msra.mxu0 %v3934_v22  ;;  %1695 = vmatpush1.bf16.msra.mxu1 %v3940_v59 }
 0x470   :  { %1755 = vmatprep.subr.bf16.mxu0 %v3946_v5  ;;  %1796 = vmatprep.subr.bf16.mxu1 %v3952_v11 }
 0x505   :  { %v1437_v14 = vpop.f32.mrb[32].mxu0  ;;  %v1478_v9 = vpop.f32.mrb[32].mxu1 }
 0x506   :  { %v1485_v35 = vadd.f32 %v2502_v18, %v1437_v14  ;;  %v1439_v26 = vpop.f32.mrb[33].mxu0  ;;  %v1480_v3 = vpop.f32.mrb[33].mxu1  ;;  %v2504_v18 = vld [vmem:[%s4527_s0 + $0x90] sm:$0xff] }
 0x507   :  { %v1486_v22 = vadd.f32 %v2503_v47, %v1439_v26  ;;  %v1441_v38 = vpop.f32.mrb[34].mxu0  ;;  %v1482_v59 = vpop.f32.mrb[34].mxu1  ;;  %v1488_v28 = vadd.f32 %v2505_v27, %v1480_v3  ;;  %v1487_v63 = vadd.f32 %v2504_v18, %v1478_v9  ;;  %v2510_v47 = vld [vmem:[%s4528_s1 + $0x68] sm:$0xff] }
 0x508   :  { %v2506_v21 = vmul.f32 -1.442695, %v1485_v35  ;;  %v1442_v5 = vpop.f32.mrb[35].mxu0  ;;  %v1483_v39 = vpop.f32.mrb[35].mxu1 }
 0x509   :  { %v2507_v11 = vmul.f32 -1.442695, %v1486_v22  ;;  %v2508_v14 = vmul.f32 -1.442695, %v1488_v28  ;;  %v2509_v28 = vld [vmem:[%s4528_s1 + $0x60] sm:$0xff] }
 0x50a   :  { %2787 = vpow2.f32 %v2506_v21 }
 0x50b   :  { %2789 = vpow2.f32 %v2507_v11 }
 0x50c   :  { %2791 = vpow2.f32 %v2508_v14 }
 0x50d   :  { %2793 = vtanh.f32 %v1487_v63 }
 0x514   :  { %v2788_v26 = vpop.eup %2787 }
 0x515   :  { %v2790_v38 = vpop.eup %2789  ;;  %v1492_v59 = vadd.f32 1.0, %v2788_v26 }
 0x516   :  { %v1498_v39 = vadd.f32 1.0, %v2790_v38  ;;  %v2792_v21 = vpop.eup %2791 }
 0x517   :  { %2795 = vrcp.f32 %v1492_v59  ;;  %v2794_v35 = vpop.eup %2793  ;;  %v1505_v27 = vadd.f32 1.0, %v2792_v21 }
 0x518   :  { %2797 = vrcp.f32 %v1498_v39 }
 0x519   :  { %2799 = vrcp.f32 %v1505_v27  ;;  %v2511_v27 = vld [vmem:[%s4528_s1 + $0x70] sm:$0xff] }
 0x521   :  { %v2796_v22 = vpop.eup %2795 }
 0x522   :  { %v2798_v5 = vpop.eup %2797  ;;  %v1509_v11 = vmul.f32 %v2796_v22, %v2794_v35 }
 0x523   :  { %v1508_v3 = vmul.f32 %v2798_v5, %v3974_v2 }
 0x525   :  { %v4210_v63 = vadd.f32 %v1509_v11, %v1508_v3  ;;  %v1553_v9 = vpop.f32.mrb[36].mxu0  ;;  %v1594_v18 = vpop.f32.mrb[36].mxu1  ;;  %v2512_v11 = vld [vmem:[%s4528_s1 + $0x78] sm:$0xff] }
 0x526   :  { %v1601_v14 = vadd.f32 %v2509_v28, %v1553_v9  ;;  %v1555_v26 = vpop.f32.mrb[37].mxu0  ;;  %v1596_v38 = vpop.f32.mrb[37].mxu1 }
 0x527   :  { %2801 = vtanh.f32 %v4210_v63  ;;  %v1602_v59 = vadd.f32 %v2510_v47, %v1555_v26  ;;  %v1557_v2 = vpop.f32.mrb[38].mxu0  ;;  %v1598_v39 = vpop.f32.mrb[38].mxu1  ;;  %v1604_v3 = vadd.f32 %v2512_v11, %v1596_v38  ;;  %v1603_v26 = vadd.f32 %v2511_v27, %v1594_v18 }
 0x528   :  { %v2513_v21 = vmul.f32 -1.442695, %v1601_v14  ;;  %v1558_v35 = vpop.f32.mrb[39].mxu0  ;;  %v1599_v22 = vpop.f32.mrb[39].mxu1 }
 0x529   :  { %v2514_v5 = vmul.f32 -1.442695, %v1602_v59  ;;  %v2800_v28 = vpop.eup %2799  ;;  %v2515_v47 = vmul.f32 -1.442695, %v1604_v3 }
 0x52a   :  { %2803 = vpow2.f32 %v2513_v21 }
 0x52b   :  { %2805 = vpow2.f32 %v2514_v5 }
 0x52c   :  { %2807 = vpow2.f32 %v2515_v47  ;;  %v4687_v47 = vld [vmem:[#allocation17_spill] sm:$0xff] }
 0x52d   :  { %2809 = vtanh.f32 %v1603_v26  ;;  %v4688_v26 = vld [vmem:[#allocation21_spill] sm:$0xff] }
 0x531   :  { %v2802_v9 = vpop.eup %2801 }
 0x532   :  { %v1512_v2 = vmul.f32 %v2802_v9, %v2800_v28  ;;  %v4686_v9 = vld [vmem:[#allocation20_spill] sm:$0xff] }
 0x534   :  { %v2804_v14 = vpop.eup %2803  ;;  %2516 = vst [vmem:[%s4529_s4 + $0x20] sm:$0xff] %v1512_v2  ;;  %v1638_v59 = vpack.c.bf16 %v1512_v2, %v1512_v2  ;;  %v4689_v2 = vld [vmem:[#allocation24_spill] sm:$0xff] }
 0x535   :  { %v2806_v39 = vpop.eup %2805  ;;  %v1608_v21 = vadd.f32 1.0, %v2804_v14 }
 0x536   :  { %v1614_v38 = vadd.f32 1.0, %v2806_v39  ;;  %1672 = vmatmul.mubr.bf16.vlgmr.msra.gmra.mrb[40].mxu0 %v1638_v59  ;;  %1713 = vmatmul.mubr.bf16.vlgmr.msra.gmra.mrb[40].mxu1 %v1638_v59  ;;  %v2808_v18 = vpop.eup %2807  ;;  %v4690_v59 = vld [vmem:[#allocation25_spill] sm:$0xff]  ;;  %v4691_v39 = vld [vmem:[#allocation26_spill] sm:$0xff] }
 0x537   :  { %2811 = vrcp.f32 %v1608_v21  ;;  %1756 = vmatpush1.bf16.msra.mxu0 %v3723_v30  ;;  %1797 = vmatpush1.bf16.msra.mxu1 %v3990_v25  ;;  %v2810_v35 = vpop.eup %2809  ;;  %v1621_v3 = vadd.f32 1.0, %v2808_v18 }
 0x538   :  { %2813 = vrcp.f32 %v1614_v38  ;;  %1757 = vmatprep.subr.bf16.mxu0 %v3730_v24  ;;  %1798 = vmatprep.subr.bf16.mxu1 %v3997_v32 }
 0x539   :  { %1787 = vmatprep.mubr.bf16.mxu0 %v4631_v58  ;;  %1828 = vmatprep.mubr.bf16.mxu1 %v4631_v58  ;;  %2815 = vrcp.f32 %v1621_v3  ;;  %v4702_v3 = vld [vmem:[#allocation18_spill] sm:$0xff] }
 0x53b   :  { %1758 = vmatpush1.bf16.msra.mxu0 %v3739_v8  ;;  %1799 = vmatpush1.bf16.msra.mxu1 %v4006_v44 }
 0x53c   :  { %1759 = vmatprep.subr.bf16.mxu0 %v3746_v40  ;;  %1800 = vmatprep.subr.bf16.mxu1 %v4013_v33 }
 0x53f   :  { %1760 = vmatpush1.bf16.msra.mxu0 %v4019_v34  ;;  %1801 = vmatpush1.bf16.msra.mxu1 %v4025_v29 }
 0x540   :  { %1761 = vmatprep.subr.bf16.mxu0 %v4031_v43  ;;  %1802 = vmatprep.subr.bf16.mxu1 %v4037_v45 }
 0x541   :  { %v2812_v22 = vpop.eup %2811 }
 0x542   :  { %v2814_v5 = vpop.eup %2813  ;;  %v1625_v11 = vmul.f32 %v2812_v22, %v2810_v35  ;;  %v4698_v35 = vld [vmem:[#allocation14_spill] sm:$0xff]  ;;  %v4699_v22 = vld [vmem:[#allocation9_spill] sm:$0xff] }
 0x543   :  { %v1624_v27 = vmul.f32 %v2814_v5, %v4065_v20  ;;  %1762 = vmatpush1.bf16.msra.mxu0 %v4044_v12  ;;  %1803 = vmatpush1.bf16.msra.mxu1 %v4050_v19  ;;  %v4685_v20 = vld [vmem:[#allocation16_spill] sm:$0xff]  ;;  %v2816_v14 = vpop.eup %2815  ;;  %v4700_v5 = vld [vmem:[#allocation15_spill] sm:$0xff] }
 0x544   :  { %1763 = vmatprep.subr.bf16.mxu0 %v4056_v13  ;;  %1804 = vmatprep.subr.bf16.mxu1 %v4062_v42 }
 0x545   :  { %v4241_v28 = vadd.f32 %v1625_v11, %v1624_v27  ;;  %v4701_v11 = vld [vmem:[#allocation12_spill] sm:$0xff]  ;;  %v4703_v27 = vld [vmem:[#allocation13_spill] sm:$0xff] }
 0x547   :  { %2817 = vtanh.f32 %v4241_v28  ;;  %1764 = vmatpush1.bf16.msra.mxu0 %v4071_v16  ;;  %1805 = vmatpush1.bf16.msra.mxu1 %v4077_v0 }
 0x548   :  { %1765 = vmatprep.subr.bf16.mxu0 %v4083_v36  ;;  %1806 = vmatprep.subr.bf16.mxu1 %v4089_v41 }
 0x54b   :  { %1766 = vmatpush1.bf16.msra.mxu0 %v4095_v17  ;;  %1807 = vmatpush1.bf16.msra.mxu1 %v4685_v20 }
 0x54c   :  { %1767 = vmatprep.subr.bf16.mxu0 %v4686_v9  ;;  %1808 = vmatprep.subr.bf16.mxu1 %v4687_v47 }
 0x54f   :  { %1768 = vmatpush1.bf16.msra.mxu0 %v4688_v26  ;;  %1809 = vmatpush1.bf16.msra.mxu1 %v4689_v2 }
 0x550   :  { %1769 = vmatprep.subr.bf16.mxu0 %v4690_v59  ;;  %1810 = vmatprep.subr.bf16.mxu1 %v4691_v39 }
 0x551   :  { %v2818_v21 = vpop.eup %2817 }
 0x552   :  { %v1628_v38 = vmul.f32 %v2818_v21, %v2816_v14  ;;  %v4704_v14 = vld [vmem:[#allocation19_spill] sm:$0xff]  ;;  %v2518_v21 = vld [vmem:[%s4527_s0 + $0xa0] sm:$0xff] }
 0x553   :  { %1770 = vmatpush1.bf16.msra.mxu0 %v4143_v15  ;;  %1811 = vmatpush1.bf16.msra.mxu1 %v4149_v46 }
 0x554   :  { %2517 = vst [vmem:[%s4530_s5 + $0x18] sm:$0xff] %v1628_v38  ;;  %v1754_v18 = vpack.c.bf16 %v1628_v38, %v1628_v38  ;;  %1875 = vmatprep.subr.bf16.mxu0 %v3626_v4  ;;  %1916 = vmatprep.subr.bf16.mxu1 %v3783_v48  ;;  %v4692_v4 = vld [vmem:[#allocation23_spill] sm:$0xff] }
 0x555   :  { %v2519_v38 = vld [vmem:[%s4527_s0 + $0xa8] sm:$0xff] }
 0x556   :  { %1788 = vmatmul.mubr.bf16.vlgmr.msra.gmra.mrb[44].mxu0 %v1754_v18  ;;  %1829 = vmatmul.mubr.bf16.vlgmr.msra.gmra.mrb[44].mxu1 %v1754_v18 }
 0x557   :  { %1876 = vmatpush1.bf16.msra.mxu0 %v3633_v31  ;;  %1917 = vmatpush1.bf16.msra.mxu1 %v3790_v1  ;;  %v4693_v31 = vld [vmem:[#allocation6_spill] sm:$0xff] }
 0x558   :  { %1877 = vmatprep.subr.bf16.mxu0 %v3640_v23  ;;  %1918 = vmatprep.subr.bf16.mxu1 %v3797_v37  ;;  %v4694_v23 = vld [vmem:[#allocation10_spill] sm:$0xff] }
 0x559   :  { %1907 = vmatprep.mubr.bf16.mxu0 %v4631_v58  ;;  %1948 = vmatprep.mubr.bf16.mxu1 %v4631_v58 }
 0x55b   :  { %1878 = vmatpush1.bf16.msra.mxu0 %v3649_v6  ;;  %1919 = vmatpush1.bf16.msra.mxu1 %v3806_v49  ;;  %v4695_v6 = vld [vmem:[#allocation7_spill] sm:$0xff] }
 0x55c   :  { %1879 = vmatprep.subr.bf16.mxu0 %v3656_v7  ;;  %1920 = vmatprep.subr.bf16.mxu1 %v3813_v50  ;;  %v4696_v7 = vld [vmem:[#allocation11_spill] sm:$0xff] }
 0x55f   :  { %1880 = vmatpush1.bf16.msra.mxu0 %v3663_v10  ;;  %1921 = vmatpush1.bf16.msra.mxu1 %v3820_v51  ;;  %v4697_v10 = vld [vmem:[#allocation8_spill] sm:$0xff] }
 0x560   :  { %1881 = vmatprep.subr.bf16.mxu0 %v3826_v52  ;;  %1922 = vmatprep.subr.bf16.mxu1 %v3832_v53 }
 0x563   :  { %1882 = vmatpush1.bf16.msra.mxu0 %v3838_v54  ;;  %1923 = vmatpush1.bf16.msra.mxu1 %v3844_v55 }
 0x564   :  { %1883 = vmatprep.subr.bf16.mxu0 %v3850_v56  ;;  %1924 = vmatprep.subr.bf16.mxu1 %v3856_v57 }
 0x567   :  { %1884 = vmatpush1.bf16.msra.mxu0 %v3862_v60  ;;  %1925 = vmatpush1.bf16.msra.mxu1 %v3868_v61 }
 0x568   :  { %1885 = vmatprep.subr.bf16.mxu0 %v3874_v62  ;;  %1926 = vmatprep.subr.bf16.mxu1 %v4692_v4 }
 0x56b   :  { %1886 = vmatpush1.bf16.msra.mxu0 %v4693_v31  ;;  %1927 = vmatpush1.bf16.msra.mxu1 %v4694_v23  ;;  %v2521_v31 = vld [vmem:[%s4527_s0 + $0xb8] sm:$0xff] }
 0x56c   :  { %1887 = vmatprep.subr.bf16.mxu0 %v4695_v6  ;;  %1928 = vmatprep.subr.bf16.mxu1 %v4696_v7 }
 0x56f   :  { %1888 = vmatpush1.bf16.msra.mxu0 %v4697_v10  ;;  %1929 = vmatpush1.bf16.msra.mxu1 %v4698_v35 }
 0x570   :  { %1889 = vmatprep.subr.bf16.mxu0 %v4699_v22  ;;  %1930 = vmatprep.subr.bf16.mxu1 %v4700_v5 }
 0x573   :  { %1890 = vmatpush1.bf16.msra.mxu0 %v4701_v11  ;;  %1931 = vmatpush1.bf16.msra.mxu1 %v4702_v3 }
 0x574   :  { %1991 = vmatprep.subr.bf16.mxu0 %v4703_v27  ;;  %2032 = vmatprep.subr.bf16.mxu1 %v4704_v14 }
 0x609   :  { %v1673_v18 = vpop.f32.mrb[40].mxu0  ;;  %v1714_v22 = vpop.f32.mrb[40].mxu1 }
 0x60a   :  { %v1721_v35 = vadd.f32 %v2518_v21, %v1673_v18  ;;  %v1675_v5 = vpop.f32.mrb[41].mxu0  ;;  %v1716_v10 = vpop.f32.mrb[41].mxu1  ;;  %v2520_v21 = vld [vmem:[%s4527_s0 + $0xb0] sm:$0xff] }
 0x60b   :  { %v1722_v11 = vadd.f32 %v2519_v38, %v1675_v5  ;;  %v1677_v7 = vpop.f32.mrb[42].mxu0  ;;  %v1718_v3 = vpop.f32.mrb[42].mxu1  ;;  %v1724_v4 = vadd.f32 %v2521_v31, %v1716_v10  ;;  %v1723_v62 = vadd.f32 %v2520_v21, %v1714_v22  ;;  %v2526_v22 = vld [vmem:[%s4528_s1 + $0x48] sm:$0xff] }
 0x60c   :  { %v2522_v6 = vmul.f32 -1.442695, %v1721_v35  ;;  %v1678_v27 = vpop.f32.mrb[43].mxu0  ;;  %v1719_v23 = vpop.f32.mrb[43].mxu1 }
 0x60d   :  { %v2523_v14 = vmul.f32 -1.442695, %v1722_v11  ;;  %v2524_v18 = vmul.f32 -1.442695, %v1724_v4  ;;  %v2525_v4 = vld [vmem:[%s4528_s1 + $0x40] sm:$0xff] }
 0x60e   :  { %2819 = vpow2.f32 %v2522_v6 }
 0x60f   :  { %2821 = vpow2.f32 %v2523_v14 }
 0x610   :  { %2823 = vpow2.f32 %v2524_v18 }
 0x611   :  { %2825 = vtanh.f32 %v1723_v62 }
 0x618   :  { %v2820_v5 = vpop.eup %2819 }
 0x619   :  { %v2822_v7 = vpop.eup %2821  ;;  %v1728_v3 = vadd.f32 1.0, %v2820_v5 }
 0x61a   :  { %v1734_v23 = vadd.f32 1.0, %v2822_v7  ;;  %v2824_v6 = vpop.eup %2823 }
 0x61b   :  { %2827 = vrcp.f32 %v1728_v3  ;;  %v2826_v35 = vpop.eup %2825  ;;  %v1741_v31 = vadd.f32 1.0, %v2824_v6 }
 0x61c   :  { %2829 = vrcp.f32 %v1734_v23 }
 0x61d   :  { %2831 = vrcp.f32 %v1741_v31  ;;  %v2527_v31 = vld [vmem:[%s4528_s1 + $0x50] sm:$0xff] }
 0x625   :  { %v2828_v11 = vpop.eup %2827 }
 0x626   :  { %v2830_v27 = vpop.eup %2829  ;;  %v1745_v14 = vmul.f32 %v2828_v11, %v2826_v35 }
 0x627   :  { %v1744_v10 = vmul.f32 %v2830_v27, %v4210_v63 }
 0x629   :  { %v4316_v62 = vadd.f32 %v1745_v14, %v1744_v10  ;;  %v1789_v38 = vpop.f32.mrb[44].mxu0  ;;  %v1830_v21 = vpop.f32.mrb[44].mxu1  ;;  %v2528_v14 = vld [vmem:[%s4528_s1 + $0x58] sm:$0xff] }
 0x62a   :  { %v1837_v18 = vadd.f32 %v2525_v4, %v1789_v38  ;;  %v1791_v5 = vpop.f32.mrb[45].mxu0  ;;  %v1832_v7 = vpop.f32.mrb[45].mxu1 }
 0x62b   :  { %2833 = vtanh.f32 %v4316_v62  ;;  %v1838_v3 = vadd.f32 %v2526_v22, %v1791_v5  ;;  %v1793_v63 = vpop.f32.mrb[46].mxu0  ;;  %v1834_v23 = vpop.f32.mrb[46].mxu1  ;;  %v1840_v10 = vadd.f32 %v2528_v14, %v1832_v7  ;;  %v1839_v5 = vadd.f32 %v2527_v31, %v1830_v21 }
 0x62c   :  { %v2529_v6 = vmul.f32 -1.442695, %v1837_v18  ;;  %v1794_v35 = vpop.f32.mrb[47].mxu0  ;;  %v1835_v11 = vpop.f32.mrb[47].mxu1 }
 0x62d   :  { %v2530_v27 = vmul.f32 -1.442695, %v1838_v3  ;;  %v2832_v4 = vpop.eup %2831  ;;  %v2531_v22 = vmul.f32 -1.442695, %v1840_v10 }
 0x62e   :  { %2835 = vpow2.f32 %v2529_v6 }
 0x62f   :  { %2837 = vpow2.f32 %v2530_v27 }
 0x630   :  { %2839 = vpow2.f32 %v2531_v22  ;;  %v2981_v22 = vld [vmem:[%s4525_s2 + $0x24] ss:$16 sps:$4 sm:$0xff]  }
 0x631   :  { %2841 = vtanh.f32 %v1839_v5  ;;  %v4716_v5 = vld [vmem:[#allocation18_spill] sm:$0xff] }
 0x635   :  { %v2834_v38 = vpop.eup %2833 }
 0x636   :  { %v1748_v63 = vmul.f32 %v2834_v38, %v2832_v4  ;;  %v2979_v4 = vld [vmem:[%s4525_s2 + $0x4] ss:$16 sps:$4 sm:$0xff]   ;;  %v2980_v38 = vld [vmem:[%s4525_s2] ss:$16 sps:$4 sm:$0xff]  }
 0x638   :  { %v2836_v18 = vpop.eup %2835  ;;  %2532 = vst [vmem:[%s4529_s4 + $0x28] sm:$0xff] %v1748_v63  ;;  %v1874_v3 = vpack.c.bf16 %v1748_v63, %v1748_v63  ;;  %v4717_v63 = vld [vmem:[#allocation13_spill] sm:$0xff] }
 0x639   :  { %v2838_v23 = vpop.eup %2837  ;;  %v1844_v6 = vadd.f32 1.0, %v2836_v18  ;;  %v4718_v18 = vld [vmem:[#allocation19_spill] sm:$0xff] }
 0x63a   :  { %v1850_v7 = vadd.f32 1.0, %v2838_v23  ;;  %1908 = vmatmul.mubr.bf16.vlgmr.msra.gmra.mrb[48].mxu0 %v1874_v3  ;;  %1949 = vmatmul.mubr.bf16.vlgmr.msra.gmra.mrb[48].mxu1 %v1874_v3  ;;  %v2534_v3 = vld [vmem:[%s4527_s0 + $0xc0] sm:$0xff]  ;;  %v2535_v23 = vld [vmem:[%s4527_s0 + $0xc8] sm:$0xff] }
 0x63b   :  { %2843 = vrcp.f32 %v1844_v6  ;;  %1992 = vmatpush1.bf16.msra.mxu0 %v3723_v30  ;;  %2033 = vmatpush1.bf16.msra.mxu1 %v3990_v25  ;;  %v2840_v30 = vpop.eup %2839 }
 0x63c   :  { %2845 = vrcp.f32 %v1850_v7  ;;  %1993 = vmatprep.subr.bf16.mxu0 %v3730_v24  ;;  %2034 = vmatprep.subr.bf16.mxu1 %v3997_v32  ;;  %v2842_v24 = vpop.eup %2841 }
 0x63d   :  { %2023 = vmatprep.mubr.bf16.mxu0 %v4631_v58  ;;  %2064 = vmatprep.mubr.bf16.mxu1 %v4631_v58 }
 0x63f   :  { %1994 = vmatpush1.bf16.msra.mxu0 %v3739_v8  ;;  %2035 = vmatpush1.bf16.msra.mxu1 %v4006_v44  ;;  %v1857_v8 = vadd.f32 1.0, %v2840_v30 }
 0x640   :  { %1995 = vmatprep.subr.bf16.mxu0 %v3746_v40  ;;  %2036 = vmatprep.subr.bf16.mxu1 %v4013_v33 }
 0x641   :  { %2847 = vrcp.f32 %v1857_v8 }
 0x643   :  { %1996 = vmatpush1.bf16.msra.mxu0 %v4019_v34  ;;  %2037 = vmatpush1.bf16.msra.mxu1 %v4025_v29 }
 0x644   :  { %1997 = vmatprep.subr.bf16.mxu0 %v4031_v43  ;;  %2038 = vmatprep.subr.bf16.mxu1 %v4037_v45 }
 0x645   :  { %v2844_v21 = vpop.eup %2843 }
 0x646   :  { %v2846_v35 = vpop.eup %2845  ;;  %v1861_v11 = vmul.f32 %v2844_v21, %v2842_v24 }
 0x647   :  { %v1860_v27 = vmul.f32 %v2846_v35, %v4241_v28  ;;  %1998 = vmatpush1.bf16.msra.mxu0 %v4044_v12  ;;  %2039 = vmatpush1.bf16.msra.mxu1 %v4050_v19 }
 0x648   :  { %1999 = vmatprep.subr.bf16.mxu0 %v4056_v13  ;;  %2040 = vmatprep.subr.bf16.mxu1 %v4062_v42 }
 0x649   :  { %v4347_v40 = vadd.f32 %v1861_v11, %v1860_v27 }
 0x64b   :  { %2849 = vtanh.f32 %v4347_v40  ;;  %2000 = vmatpush1.bf16.msra.mxu0 %v4071_v16  ;;  %2041 = vmatpush1.bf16.msra.mxu1 %v4077_v0  ;;  %v2848_v28 = vpop.eup %2847 }
 0x64c   :  { %2001 = vmatprep.subr.bf16.mxu0 %v4083_v36  ;;  %2042 = vmatprep.subr.bf16.mxu1 %v4089_v41 }
 0x64f   :  { %2002 = vmatpush1.bf16.msra.mxu0 %v4095_v17  ;;  %2043 = vmatpush1.bf16.msra.mxu1 %v4685_v20 }
 0x650   :  { %2003 = vmatprep.subr.bf16.mxu0 %v4686_v9  ;;  %2044 = vmatprep.subr.bf16.mxu1 %v4687_v47 }
 0x653   :  { %2004 = vmatpush1.bf16.msra.mxu0 %v4688_v26  ;;  %2045 = vmatpush1.bf16.msra.mxu1 %v4689_v2 }
 0x654   :  { %2005 = vmatprep.subr.bf16.mxu0 %v4690_v59  ;;  %2046 = vmatprep.subr.bf16.mxu1 %v4691_v39 }
 0x655   :  { %v2850_v14 = vpop.eup %2849 }
 0x656   :  { %v1864_v10 = vmul.f32 %v2850_v14, %v2848_v28 }
 0x657   :  { %2006 = vmatpush1.bf16.msra.mxu0 %v4143_v15  ;;  %2047 = vmatpush1.bf16.msra.mxu1 %v4149_v46 }
 0x658   :  { %2533 = vst [vmem:[%s4530_s5 + $0x10] sm:$0xff] %v1864_v10  ;;  %v1990_v31 = vpack.c.bf16 %v1864_v10, %v1864_v10  ;;  %2111 = vmatprep.subr.bf16.mxu0 %v2979_v4  ;;  %2152 = vmatprep.subr.bf16.mxu1 %v3783_v48  ;;  %v2982_v48 = vld [vmem:[%s4525_s2 + $0x20] ss:$16 sps:$4 sm:$0xff]  }
 0x65a   :  { %2024 = vmatmul.mubr.bf16.vlgmr.msra.gmra.mrb[52].mxu0 %v1990_v31  ;;  %2065 = vmatmul.mubr.bf16.vlgmr.msra.gmra.mrb[52].mxu1 %v1990_v31  ;;  %v2537_v31 = vld [vmem:[%s4527_s0 + $0xd8] sm:$0xff] }
 0x65b   :  { %2112 = vmatpush1.bf16.msra.mxu0 %v2980_v38  ;;  %2153 = vmatpush1.bf16.msra.mxu1 %v3790_v1  ;;  %v2983_v1 = vld [vmem:[%s4525_s2 + $0x44] ss:$16 sps:$4 sm:$0xff]  }
 0x65c   :  { %2113 = vmatprep.subr.bf16.mxu0 %v2981_v22  ;;  %2154 = vmatprep.subr.bf16.mxu1 %v3797_v37  ;;  %v2984_v37 = vld [vmem:[%s4525_s2 + $0x40] ss:$16 sps:$4 sm:$0xff]  }
 0x65d   :  { %2143 = vmatprep.mubr.bf16.mxu0 %v4631_v58  ;;  %2184 = vmatprep.mubr.bf16.mxu1 %v4631_v58  ;;  %v2536_v38 = vld [vmem:[%s4527_s0 + $0xd0] sm:$0xff] }
 0x65f   :  { %2114 = vmatpush1.bf16.msra.mxu0 %v2982_v48  ;;  %2155 = vmatpush1.bf16.msra.mxu1 %v3806_v49  ;;  %v4705_v49 = vld [vmem:[#allocation22_spill] sm:$0xff] }
 0x660   :  { %2115 = vmatprep.subr.bf16.mxu0 %v2983_v1  ;;  %2156 = vmatprep.subr.bf16.mxu1 %v3813_v50  ;;  %v4706_v50 = vld [vmem:[#allocation23_spill] sm:$0xff] }
 0x663   :  { %2116 = vmatpush1.bf16.msra.mxu0 %v2984_v37  ;;  %2157 = vmatpush1.bf16.msra.mxu1 %v3820_v51  ;;  %v4707_v51 = vld [vmem:[#allocation6_spill] sm:$0xff] }
 0x664   :  { %2117 = vmatprep.subr.bf16.mxu0 %v3826_v52  ;;  %2158 = vmatprep.subr.bf16.mxu1 %v3832_v53  ;;  %v4708_v52 = vld [vmem:[#allocation10_spill] sm:$0xff]  ;;  %v4709_v53 = vld [vmem:[#allocation7_spill] sm:$0xff] }
 0x667   :  { %2118 = vmatpush1.bf16.msra.mxu0 %v3838_v54  ;;  %2159 = vmatpush1.bf16.msra.mxu1 %v3844_v55  ;;  %v4710_v54 = vld [vmem:[#allocation11_spill] sm:$0xff]  ;;  %v4711_v55 = vld [vmem:[#allocation8_spill] sm:$0xff] }
 0x668   :  { %2119 = vmatprep.subr.bf16.mxu0 %v3850_v56  ;;  %2160 = vmatprep.subr.bf16.mxu1 %v3856_v57  ;;  %v4712_v56 = vld [vmem:[#allocation14_spill] sm:$0xff]  ;;  %v4713_v57 = vld [vmem:[#allocation9_spill] sm:$0xff] }
 0x66b   :  { %2120 = vmatpush1.bf16.msra.mxu0 %v3862_v60  ;;  %2161 = vmatpush1.bf16.msra.mxu1 %v3868_v61  ;;  %v4714_v60 = vld [vmem:[#allocation15_spill] sm:$0xff]  ;;  %v4715_v61 = vld [vmem:[#allocation12_spill] sm:$0xff] }
 0x66c   :  { %2121 = vmatprep.subr.bf16.mxu0 %v4705_v49  ;;  %2162 = vmatprep.subr.bf16.mxu1 %v4706_v50 }
 0x66f   :  { %2122 = vmatpush1.bf16.msra.mxu0 %v4707_v51  ;;  %2163 = vmatpush1.bf16.msra.mxu1 %v4708_v52 }
 0x670   :  { %2123 = vmatprep.subr.bf16.mxu0 %v4709_v53  ;;  %2164 = vmatprep.subr.bf16.mxu1 %v4710_v54 }
 0x673   :  { %2124 = vmatpush1.bf16.msra.mxu0 %v4711_v55  ;;  %2165 = vmatpush1.bf16.msra.mxu1 %v4712_v56 }
 0x674   :  { %2125 = vmatprep.subr.bf16.mxu0 %v4713_v57  ;;  %2166 = vmatprep.subr.bf16.mxu1 %v4714_v60  ;;  %v2541_v60 = vld [vmem:[%s4528_s1 + $0x20] sm:$0xff] }
 0x677   :  { %2126 = vmatpush1.bf16.msra.mxu0 %v4715_v61  ;;  %2167 = vmatpush1.bf16.msra.mxu1 %v4716_v5  ;;  %v2542_v61 = vld [vmem:[%s4528_s1 + $0x28] sm:$0xff] }
 0x678   :  { %2226 = vmatprep.subr.bf16.mxu0 %v4717_v63  ;;  %2267 = vmatprep.subr.bf16.mxu1 %v4718_v18 }
 0x70d   :  { %v1909_v6 = vpop.f32.mrb[48].mxu0  ;;  %v1950_v7 = vpop.f32.mrb[48].mxu1 }
 0x70e   :  { %v1957_v30 = vadd.f32 %v2534_v3, %v1909_v6  ;;  %v1911_v24 = vpop.f32.mrb[49].mxu0  ;;  %v1952_v21 = vpop.f32.mrb[49].mxu1  ;;  %v1959_v48 = vadd.f32 %v2536_v38, %v1950_v7 }
 0x70f   :  { %v1958_v35 = vadd.f32 %v2535_v23, %v1911_v24  ;;  %v1913_v11 = vpop.f32.mrb[50].mxu0  ;;  %v1954_v8 = vpop.f32.mrb[50].mxu1  ;;  %v1960_v4 = vadd.f32 %v2537_v31, %v1952_v21 }
 0x710   :  { %v2538_v27 = vmul.f32 -1.442695, %v1957_v30  ;;  %v1914_v28 = vpop.f32.mrb[51].mxu0  ;;  %v1955_v14 = vpop.f32.mrb[51].mxu1  ;;  %v2544_v8 = vld [vmem:[%s4528_s1 + $0x38] sm:$0xff] }
 0x711   :  { %v2539_v10 = vmul.f32 -1.442695, %v1958_v35  ;;  %v2540_v22 = vmul.f32 -1.442695, %v1960_v4  ;;  %v2543_v28 = vld [vmem:[%s4528_s1 + $0x30] sm:$0xff] }
 0x712   :  { %2851 = vpow2.f32 %v2538_v27 }
 0x713   :  { %2853 = vpow2.f32 %v2539_v10 }
 0x714   :  { %2855 = vpow2.f32 %v2540_v22 }
 0x715   :  { %2857 = vtanh.f32 %v1959_v48 }
 0x71c   :  { %v2852_v1 = vpop.eup %2851 }
 0x71d   :  { %v2854_v37 = vpop.eup %2853  ;;  %v1964_v49 = vadd.f32 1.0, %v2852_v1 }
 0x71e   :  { %v1970_v50 = vadd.f32 1.0, %v2854_v37  ;;  %v2856_v51 = vpop.eup %2855 }
 0x71f   :  { %2859 = vrcp.f32 %v1964_v49  ;;  %v2858_v52 = vpop.eup %2857  ;;  %v1977_v56 = vadd.f32 1.0, %v2856_v51  ;;  %v2986_v51 = vld [vmem:[%s4526_s3 + $0x24] ss:$16 sps:$4 sm:$0xff]  }
 0x720   :  { %2861 = vrcp.f32 %v1970_v50  ;;  %v2985_v50 = vld [vmem:[%s4526_s3] ss:$16 sps:$4 sm:$0xff]  }
 0x721   :  { %2863 = vrcp.f32 %v1977_v56 }
 0x729   :  { %v2860_v53 = vpop.eup %2859 }
 0x72a   :  { %v2862_v54 = vpop.eup %2861  ;;  %v1981_v55 = vmul.f32 %v2860_v53, %v2858_v52  ;;  %v2987_v52 = vld [vmem:[%s4526_s3 + $0x20] ss:$16 sps:$4 sm:$0xff]  }
 0x72b   :  { %v1980_v57 = vmul.f32 %v2862_v54, %v4316_v62  ;;  %v2864_v14 = vpop.eup %2863 }
 0x72d   :  { %v4434_v5 = vadd.f32 %v1981_v55, %v1980_v57  ;;  %v2025_v63 = vpop.f32.mrb[52].mxu0  ;;  %v2066_v18 = vpop.f32.mrb[52].mxu1 }
 0x72e   :  { %v2073_v3 = vadd.f32 %v2541_v60, %v2025_v63  ;;  %v2027_v23 = vpop.f32.mrb[53].mxu0  ;;  %v2068_v6 = vpop.f32.mrb[53].mxu1  ;;  %v2075_v4 = vadd.f32 %v2543_v28, %v2066_v18 }
 0x72f   :  { %2865 = vtanh.f32 %v4434_v5  ;;  %v2074_v7 = vadd.f32 %v2542_v61, %v2027_v23  ;;  %v2029_v62 = vpop.f32.mrb[54].mxu0  ;;  %v2070_v30 = vpop.f32.mrb[54].mxu1  ;;  %v2076_v27 = vadd.f32 %v2544_v8, %v2068_v6 }
 0x730   :  { %v2545_v24 = vmul.f32 -1.442695, %v2073_v3  ;;  %v2030_v21 = vpop.f32.mrb[55].mxu0  ;;  %v2071_v35 = vpop.f32.mrb[55].mxu1 }
 0x731   :  { %v2546_v11 = vmul.f32 -1.442695, %v2074_v7  ;;  %v2547_v31 = vmul.f32 -1.442695, %v2076_v27  ;;  %v2222_v21 = vld [vmem:[%s4528_s1 + $0x8] sm:$0xff] }
 0x732   :  { %2867 = vpow2.f32 %v2545_v24  ;;  %v2221_v24 = vld [vmem:[%s4528_s1] sm:$0xff] }
 0x733   :  { %2869 = vpow2.f32 %v2546_v11 }
 0x734   :  { %2871 = vpow2.f32 %v2547_v31 }
 0x735   :  { %2873 = vtanh.f32 %v2075_v4 }
 0x739   :  { %v2866_v10 = vpop.eup %2865 }
 0x73a   :  { %v1984_v38 = vmul.f32 %v2866_v10, %v2864_v14 }
 0x73c   :  { %v2868_v22 = vpop.eup %2867  ;;  %2548 = vst [vmem:[%s4529_s4 + $0x30] sm:$0xff] %v1984_v38  ;;  %v2110_v48 = vpack.c.bf16 %v1984_v38, %v1984_v38 }
 0x73d   :  { %v2870_v1 = vpop.eup %2869  ;;  %v2080_v37 = vadd.f32 1.0, %v2868_v22 }
 0x73e   :  { %v2086_v49 = vadd.f32 1.0, %v2870_v1  ;;  %2144 = vmatmul.mubr.bf16.vlgmr.msra.gmra.mrb[56].mxu0 %v2110_v48  ;;  %2185 = vmatmul.mubr.bf16.vlgmr.msra.gmra.mrb[56].mxu1 %v2110_v48  ;;  %v2872_v53 = vpop.eup %2871  ;;  %v2224_v1 = vld [vmem:[%s4528_s1 + $0x18] sm:$0xff] }
 0x73f   :  { %2875 = vrcp.f32 %v2080_v37  ;;  %2227 = vmatpush1.bf16.msra.mxu0 %v2985_v50  ;;  %2268 = vmatpush1.bf16.msra.mxu1 %v3990_v25  ;;  %v2988_v25 = vld [vmem:[%s4526_s3 + $0x44] ss:$16 sps:$4 sm:$0xff]   ;;  %v2093_v55 = vadd.f32 1.0, %v2872_v53 }
 0x740   :  { %2877 = vrcp.f32 %v2086_v49  ;;  %2228 = vmatprep.subr.bf16.mxu0 %v2986_v51  ;;  %2269 = vmatprep.subr.bf16.mxu1 %v3997_v32  ;;  %v2223_v49 = vld [vmem:[%s4528_s1 + $0x10] sm:$0xff] }
 0x741   :  { %2258 = vmatprep.mubr.bf16.mxu0 %v4631_v58  ;;  %2299 = vmatprep.mubr.bf16.mxu1 %v4631_v58  ;;  %v2874_v58 = vpop.eup %2873  ;;  %2879 = vrcp.f32 %v2093_v55 }
 0x743   :  { %2229 = vmatpush1.bf16.msra.mxu0 %v2987_v52  ;;  %2270 = vmatpush1.bf16.msra.mxu1 %v4006_v44 }
 0x744   :  { %2230 = vmatprep.subr.bf16.mxu0 %v2988_v25  ;;  %2271 = vmatprep.subr.bf16.mxu1 %v4013_v33 }
 0x747   :  { %2231 = vmatpush1.bf16.msra.mxu0 %v4019_v34  ;;  %2272 = vmatpush1.bf16.msra.mxu1 %v4025_v29 }
 0x748   :  { %2232 = vmatprep.subr.bf16.mxu0 %v4031_v43  ;;  %2273 = vmatprep.subr.bf16.mxu1 %v4037_v45 }
 0x749   :  { %v2876_v32 = vpop.eup %2875 }
 0x74a   :  { %v2878_v54 = vpop.eup %2877  ;;  %v2097_v44 = vmul.f32 %v2876_v32, %v2874_v58 }
 0x74b   :  { %v2096_v56 = vmul.f32 %v2878_v54, %v4347_v40  ;;  %2233 = vmatpush1.bf16.msra.mxu0 %v4044_v12  ;;  %2274 = vmatpush1.bf16.msra.mxu1 %v4050_v19  ;;  %v2880_v34 = vpop.eup %2879  ;;  %v2550_v12 = vld [vmem:[%s4527_s0 + $0xe0] sm:$0xff]  ;;  %v2551_v19 = vld [vmem:[%s4527_s0 + $0xe8] sm:$0xff] }
 0x74c   :  { %2234 = vmatprep.subr.bf16.mxu0 %v4056_v13  ;;  %2275 = vmatprep.subr.bf16.mxu1 %v4062_v42 }
 0x74d   :  { %v4473_v33 = vadd.f32 %v2097_v44, %v2096_v56 }
 0x74f   :  { %2881 = vtanh.f32 %v4473_v33  ;;  %2235 = vmatpush1.bf16.msra.mxu0 %v4071_v16  ;;  %2276 = vmatpush1.bf16.msra.mxu1 %v4077_v0 }
 0x750   :  { %2236 = vmatprep.subr.bf16.mxu0 %v4083_v36  ;;  %2277 = vmatprep.subr.bf16.mxu1 %v4089_v41 }
 0x753   :  { %2237 = vmatpush1.bf16.msra.mxu0 %v4095_v17  ;;  %2278 = vmatpush1.bf16.msra.mxu1 %v4685_v20 }
 0x754   :  { %2238 = vmatprep.subr.bf16.mxu0 %v4686_v9  ;;  %2279 = vmatprep.subr.bf16.mxu1 %v4687_v47 }
 0x757   :  { %2239 = vmatpush1.bf16.msra.mxu0 %v4688_v26  ;;  %2280 = vmatpush1.bf16.msra.mxu1 %v4689_v2  ;;  %v2553_v26 = vld [vmem:[%s4527_s0 + $0xf8] sm:$0xff] }
 0x758   :  { %2240 = vmatprep.subr.bf16.mxu0 %v4690_v59  ;;  %2281 = vmatprep.subr.bf16.mxu1 %v4691_v39  ;;  %v2552_v59 = vld [vmem:[%s4527_s0 + $0xf0] sm:$0xff] }
 0x759   :  { %v2882_v29 = vpop.eup %2881 }
 0x75a   :  { %v2100_v43 = vmul.f32 %v2882_v29, %v2880_v34 }
 0x75b   :  { %2241 = vmatpush1.bf16.msra.mxu0 %v4143_v15  ;;  %2282 = vmatpush1.bf16.msra.mxu1 %v4149_v46 }
 0x75c   :  { %2549 = vst [vmem:[%s4530_s5 + $0x8] sm:$0xff] %v2100_v43  ;;  %v2225_v45 = vpack.c.bf16 %v2100_v43, %v2100_v43 }
 0x75e   :  { %2259 = vmatmul.mubr.bf16.vlgmr.msra.gmra.mrb[60].mxu0 %v2225_v45  ;;  %2300 = vmatmul.mubr.bf16.vlgmr.msra.gmra.mrb[60].mxu1 %v2225_v45 }
 0x811   :  { %v2145_v13 = vpop.f32.mrb[56].mxu0  ;;  %v2186_v42 = vpop.f32.mrb[56].mxu1 }
 0x812   :  { %v2193_v16 = vadd.f32 %v2550_v12, %v2145_v13  ;;  %v2147_v0 = vpop.f32.mrb[57].mxu0  ;;  %v2188_v36 = vpop.f32.mrb[57].mxu1  ;;  %v2195_v40 = vadd.f32 %v2552_v59, %v2186_v42 }
 0x813   :  { %v2194_v41 = vadd.f32 %v2551_v19, %v2147_v0  ;;  %v2149_v17 = vpop.f32.mrb[58].mxu0  ;;  %v2190_v46 = vpop.f32.mrb[58].mxu1  ;;  %v2196_v2 = vadd.f32 %v2553_v26, %v2188_v36 }
 0x814   :  { %v2554_v15 = vmul.f32 -1.442695, %v2193_v16  ;;  %v2150_v20 = vpop.f32.mrb[59].mxu0  ;;  %v2191_v9 = vpop.f32.mrb[59].mxu1 }
 0x815   :  { %v2555_v47 = vmul.f32 -1.442695, %v2194_v41  ;;  %v2556_v39 = vmul.f32 -1.442695, %v2196_v2 }
 0x816   :  { %2883 = vpow2.f32 %v2554_v15 }
 0x817   :  { %2885 = vpow2.f32 %v2555_v47 }
 0x818   :  { %2887 = vpow2.f32 %v2556_v39 }
 0x819   :  { %2889 = vtanh.f32 %v2195_v40 }
 0x820   :  { %v2884_v57 = vpop.eup %2883 }
 0x821   :  { %v2886_v60 = vpop.eup %2885  ;;  %v2200_v61 = vadd.f32 1.0, %v2884_v57 }
 0x822   :  { %v2206_v63 = vadd.f32 1.0, %v2886_v60  ;;  %v2888_v18 = vpop.eup %2887 }
 0x823   :  { %2891 = vrcp.f32 %v2200_v61  ;;  %v2890_v3 = vpop.eup %2889  ;;  %v2213_v62 = vadd.f32 1.0, %v2888_v18 }
 0x824   :  { %2893 = vrcp.f32 %v2206_v63 }
 0x825   :  { %2895 = vrcp.f32 %v2213_v62 }
 0x82d   :  { %v2892_v23 = vpop.eup %2891 }
 0x82e   :  { %v2894_v6 = vpop.eup %2893  ;;  %v2217_v7 = vmul.f32 %v2892_v23, %v2890_v3 }
 0x82f   :  { %v2216_v30 = vmul.f32 %v2894_v6, %v4434_v5  ;;  %v2896_v50 = vpop.eup %2895 }
 0x831   :  { %v2218_v35 = vadd.f32 %v2217_v7, %v2216_v30  ;;  %v2260_v11 = vpop.f32.mrb[60].mxu0  ;;  %v2301_v8 = vpop.f32.mrb[60].mxu1 }
 0x832   :  { %v2308_v27 = vadd.f32 %v2260_v11, %v2221_v24  ;;  %v2262_v28 = vpop.f32.mrb[61].mxu0  ;;  %v2303_v14 = vpop.f32.mrb[61].mxu1  ;;  %v2310_v53 = vadd.f32 %v2301_v8, %v2223_v49 }
 0x833   :  { %2897 = vtanh.f32 %v2218_v35  ;;  %v2309_v10 = vadd.f32 %v2262_v28, %v2222_v21  ;;  %v2264_v31 = vpop.f32.mrb[62].mxu0  ;;  %v2305_v4 = vpop.f32.mrb[62].mxu1  ;;  %v2311_v37 = vadd.f32 %v2303_v14, %v2224_v1 }
 0x834   :  { %v2557_v5 = vmul.f32 -1.442695, %v2308_v27  ;;  %v2265_v38 = vpop.f32.mrb[63].mxu0  ;;  %v2306_v22 = vpop.f32.mrb[63].mxu1 }
 0x835   :  { %v2558_v48 = vmul.f32 -1.442695, %v2309_v10  ;;  %v2559_v52 = vmul.f32 -1.442695, %v2311_v37 }
 0x836   :  { %2899 = vpow2.f32 %v2557_v5 }
 0x837   :  { %2901 = vpow2.f32 %v2558_v48 }
 0x838   :  { %2903 = vpow2.f32 %v2559_v52 }
 0x839   :  { %2905 = vtanh.f32 %v2310_v53 }
 0x83d   :  { %v2898_v51 = vpop.eup %2897 }
 0x83e   :  { %v2220_v25 = vmul.f32 %v2898_v51, %v2896_v50 }
 0x840   :  { %v2900_v58 = vpop.eup %2899  ;;  %2560 = vst [vmem:[%s4529_s4 + $0x38] sm:$0xff] %v2220_v25 }
 0x841   :  { %v2902_v32 = vpop.eup %2901  ;;  %v2315_v54 = vadd.f32 1.0, %v2900_v58 }
 0x842   :  { %v2321_v44 = vadd.f32 1.0, %v2902_v32  ;;  %v2904_v55 = vpop.eup %2903 }
 0x843   :  { %2907 = vrcp.f32 %v2315_v54  ;;  %v2906_v56 = vpop.eup %2905  ;;  %v2328_v45 = vadd.f32 1.0, %v2904_v55 }
 0x844   :  { %2909 = vrcp.f32 %v2321_v44 }
 0x845   :  { %2911 = vrcp.f32 %v2328_v45 }
 0x84d   :  { %v2908_v34 = vpop.eup %2907 }
 0x84e   :  { %v2910_v29 = vpop.eup %2909  ;;  %v2332_v43 = vmul.f32 %v2908_v34, %v2906_v56 }
 0x84f   :  { %v2331_v12 = vmul.f32 %v2910_v29, %v4473_v33  ;;  %v2912_v13 = vpop.eup %2911 }
 0x851   :  { %v2333_v19 = vadd.f32 %v2332_v43, %v2331_v12 }
 0x853   :  { %2913 = vtanh.f32 %v2333_v19 }
 0x85d   :  { %v2914_v42 = vpop.eup %2913 }
 0x85e   :  { %v2335_v16 = vmul.f32 %v2914_v42, %v2912_v13 }
 0x860   :  { %2338 = vst [vmem:[%s4530_s5] sm:$0xff] %v2335_v16 }

</bundles_post_ra>
